<compile_context>
chip_gen: v6e
topology: v6e:2x2x1
jax: 0.10.0
libtpu: 0.0.40
codegen_flags: <defaults>
</compile_context>

<pallas_src>
import jax
import jax.numpy as jnp
import numpy as np
from jax.experimental import pallas as pl
from jax.experimental.pallas import tpu as pltpu

NUM_HEADS = 4
LN_EPS = 1e-12

# Packing order of the H-sized output-biases / LayerNorm vectors inside the (L, 9, H) slab.
_VEC_H_ORDER = ["bo", "g1", "b1", "cbo", "g2", "b2", "bf", "g3", "b3"]
_VH = {n: i for i, n in enumerate(_VEC_H_ORDER)}
# Packing order of the per-head Q/K/V biases inside the (L, 6*nh, 1, dh) slab.
_B_ATTN_ORDER = ("bq", "bk", "bv", "cbq", "cbk", "cbv")


# ---------------------------------------------------------------------------
# Shared math helpers (pure jnp — used inside the kernel and in the reference).
# ---------------------------------------------------------------------------
def _erf(x, recip):
    # Abramowitz & Stegun 7.1.26 polynomial (max abs err ~1.5e-7).  lax.erf may not lower in
    # Mosaic, so exact erf-GELU is emulated; the divide goes through `recip` so the kernel
    # routes it to the EUP (pl.reciprocal approx) while the reference stays exact.
    a1, a2, a3, a4, a5 = 0.254829592, -0.284496736, 1.421413741, -1.453152027, 1.061405429
    p = 0.3275911
    sgn = jnp.where(x >= 0.0, 1.0, -1.0)
    ax = jnp.abs(x)
    t = recip(1.0 + p * ax)
    poly = ((((a5 * t + a4) * t + a3) * t + a2) * t + a1) * t
    return sgn * (1.0 - poly * jnp.exp(-ax * ax))


def _gelu(x, recip=None):
    # exact (erf-based) GELU, matching HF ACT2FN['gelu']
    if recip is None:
        recip = lambda d: 1.0 / d
    return 0.5 * x * (1.0 + _erf(x * np.float32(1.0 / np.sqrt(2.0)), recip))


def _layernorm(x, gamma, beta):
    mean = jnp.mean(x, axis=-1, keepdims=True)
    var = jnp.mean(jnp.square(x - mean), axis=-1, keepdims=True)
    return (x - mean) * jax.lax.rsqrt(var + LN_EPS) * gamma + beta


# ---------------------------------------------------------------------------
# In-kernel multi-head attention on flattened (batch*seq, feature) activations.
# ---------------------------------------------------------------------------
def _mha_heads(xq_b, xkv_b, batch, sq, sk, num_heads, *, wq, wk, wv, wo, bq, bk, bv):
    """wq/wk/wv/wo/bq/bk/bv: callables h -> per-head VMEM tiles
         wq(h): (K, dh) bf16, wo(h): (dh, H) bf16, bq(h): (1, dh) f32.
    Per-head packed weights mean no lane slice of the (M, H) activations is ever taken, and
    the head concat + output dense is fused into sum_h ctx_h @ Wo_h (no lane concatenate).
    Returns (batch*sq, H) f32 context already projected by Wo (output bias added by caller).
    """
    dh = wq(0).shape[-1]
    h_all = wo(0).shape[-1]
    scale = np.float32(1.0 / np.sqrt(dh))
    out = jnp.zeros((batch * sq, h_all), jnp.float32)
    # TODO(synk): at production head counts fold this static per-head loop into one
    # (batch*nh)-batched contraction; with per-head packed weights the loop is already
    # slice-free and trivially safe to lower.
    for h in range(num_heads):
        qh = jnp.dot(xq_b, wq(h), preferred_element_type=jnp.float32) + bq(h)   # (B*Sq, dh)
        kh = jnp.dot(xkv_b, wk(h), preferred_element_type=jnp.float32) + bk(h)  # (B*Sk, dh)
        vh = jnp.dot(xkv_b, wv(h), preferred_element_type=jnp.float32) + bv(h)  # (B*Sk, dh)
        q3 = qh.reshape(batch, sq, dh)
        k3 = kh.reshape(batch, sk, dh)
        v3 = vh.reshape(batch, sk, dh)
        s = jnp.einsum("bqd,bkd->bqk", q3, k3,
                       preferred_element_type=jnp.float32) * scale              # (B, Sq, Sk)
        m = jnp.max(s, axis=-1, keepdims=True)
        p = jnp.exp(s - m)
        # softmax normalization via approximate reciprocal on the EUP (frees VALU slots)
        p = p * pl.reciprocal(jnp.sum(p, axis=-1, keepdims=True), approx=True)
        ctx = jnp.einsum("bqk,bkd->bqd", p, v3,
                         preferred_element_type=jnp.float32)                    # (B, Sq, dh)
        out = out + jnp.dot(ctx.reshape(batch * sq, dh).astype(jnp.bfloat16), wo(h),
                            preferred_element_type=jnp.float32)
    return out


# ---------------------------------------------------------------------------
# Fused encoder kernel: grid = (batch-blocks [parallel], layer [arbitrary]).
# ---------------------------------------------------------------------------
def bert_encoder_kernel(hs_ref, enc_ref, w_qkvq_ref, w_ckv_ref, w_o_ref, w_fi_ref, w_fo_ref,
                        b_attn_ref, vec_h_ref, vec_i_ref, out_ref, hs_scr, enc_scr):
    l = pl.program_id(1)
    bb, s, h = hs_ref.shape
    t, e = enc_ref.shape[1], enc_ref.shape[2]
    nh = NUM_HEADS
    m = bb * s

    # Layer 0: load this batch block into the VMEM carries.  The hidden state is kept in f32
    # (residual-stream precision); the encoder states are cast to bf16 ONCE here so the
    # per-layer cast is hoisted out of the layer loop.  NOTE: the carry is only correct
    # because the layer axis is the innermost ("arbitrary") grid axis — do not reorder.
    @pl.when(l == 0)
    def _():
        hs_scr[...] = hs_ref[...].reshape(m, h).astype(jnp.float32)
        enc_scr[...] = enc_ref[...].reshape(bb * t, e).astype(jnp.bfloat16)

    hs = hs_scr[...]                       # (M, H)   f32 residual stream
    enc_b = enc_scr[...]                   # (Bb*T, E) bf16

    vecs = vec_h_ref[0]                    # (9, H)  f32 output biases + LayerNorm params
    vec = lambda name: vecs[_VH[name]:_VH[name] + 1, :]        # (1, H) row, broadcasts
    w_head = lambda ref, grp, hh: ref[0, grp * nh + hh]        # per-head weight tile
    b_head = lambda grp, hh: b_attn_ref[0, grp * nh + hh]      # (1, dh) per-head bias

    # ---- BertAttention (self): BertSelfAttention + BertSelfOutput ----------------------
    hs_b = hs.astype(jnp.bfloat16)
    ctx = _mha_heads(hs_b, hs_b, bb, s, s, nh,
                     wq=lambda hh: w_head(w_qkvq_ref, 0, hh),
                     wk=lambda hh: w_head(w_qkvq_ref, 1, hh),
                     wv=lambda hh: w_head(w_qkvq_ref, 2, hh),
                     wo=lambda hh: w_head(w_o_ref, 0, hh),
                     bq=lambda hh: b_head(0, hh),
                     bk=lambda hh: b_head(1, hh),
                     bv=lambda hh: b_head(2, hh))
    attn_out = _layernorm(ctx + vec("bo") + hs, vec("g1"), vec("b1"))

    # ---- BertAttention (cross): K/V from encoder_hidden_states + BertSelfOutput --------
    cctx = _mha_heads(attn_out.astype(jnp.bfloat16), enc_b, bb, s, t, nh,
                      wq=lambda hh: w_head(w_qkvq_ref, 3, hh),
                      wk=lambda hh: w_head(w_ckv_ref, 0, hh),
                      wv=lambda hh: w_head(w_ckv_ref, 1, hh),
                      wo=lambda hh: w_head(w_o_ref, 1, hh),
                      bq=lambda hh: b_head(3, hh),
                      bk=lambda hh: b_head(4, hh),
                      bv=lambda hh: b_head(5, hh))
    cross_out = _layernorm(cctx + vec("cbo") + attn_out, vec("g2"), vec("b2"))

    # ---- BertIntermediate (exact erf GELU) + BertOutput ---------------------------------
    # TODO(synk): stream w_fi / w_fo in I-blocks at production sizes (see header).
    inter = _gelu(jnp.dot(cross_out.astype(jnp.bfloat16), w_fi_ref[0],
                          preferred_element_type=jnp.float32) + vec_i_ref[0],
                  recip=lambda d: pl.reciprocal(d, approx=True))
    ffn = jnp.dot(inter.astype(jnp.bfloat16), w_fo_ref[0],
                  preferred_element_type=jnp.float32) + vec("bf")
    new_hs = _layernorm(ffn + cross_out, vec("g3"), vec("b3"))

    hs_scr[...] = new_hs

    # Only the final layer's activations leave VMEM (one store per batch block).
    @pl.when(l == pl.num_programs(1) - 1)
    def _():
        out_ref[...] = new_hs.reshape(bb, s, h).astype(out_ref.dtype)


# ---------------------------------------------------------------------------
# Wrapper: pack per-layer parameter dicts into bf16 per-head slabs and launch once.
# ---------------------------------------------------------------------------
def pack_layer_params(layer_params, num_heads):
    H = layer_params[0]["wq"].shape[0]
    dh = H // num_heads

    def heads_cols(w):          # (K, H) -> (nh, K, dh): columns h*dh:(h+1)*dh per head
        return jnp.transpose(w.reshape(w.shape[0], num_heads, dh), (1, 0, 2))

    def heads_rows(w):          # (H, N) -> (nh, dh, N): rows h*dh:(h+1)*dh per head
        return w.reshape(num_heads, dh, w.shape[1])

    def heads_bias(b):          # (H,) -> (nh, 1, dh)
        return b.reshape(num_heads, 1, dh)

    # TODO(synk): int8 weights on v5e/v6e (MXU int path) / fp8 on v7x for another ~2x.
    w_qkvq = jnp.stack([jnp.concatenate(
        [heads_cols(p["wq"]), heads_cols(p["wk"]), heads_cols(p["wv"]), heads_cols(p["cwq"])],
        axis=0) for p in layer_params]).astype(jnp.bfloat16)                 # (L, 4*nh, H, dh)
    w_ckv = jnp.stack([jnp.concatenate(
        [heads_cols(p["cwk"]), heads_cols(p["cwv"])], axis=0)
        for p in layer_params]).astype(jnp.bfloat16)                         # (L, 2*nh, E, dh)
    w_o = jnp.stack([jnp.concatenate(
        [heads_rows(p["wo"]), heads_rows(p["cwo"])], axis=0)
        for p in layer_params]).astype(jnp.bfloat16)                         # (L, 2*nh, dh, H)
    w_fi = jnp.stack([p["wi"] for p in layer_params]).astype(jnp.bfloat16)   # (L, H, I)
    w_fo = jnp.stack([p["wf"] for p in layer_params]).astype(jnp.bfloat16)   # (L, I, H)
    b_attn = jnp.stack([jnp.concatenate([heads_bias(p[n]) for n in _B_ATTN_ORDER], axis=0)
                        for p in layer_params])                              # (L, 6*nh, 1, dh)
    vec_h = jnp.stack([jnp.stack([p[n] for n in _VEC_H_ORDER]) for p in layer_params])
    vec_i = jnp.stack([p["bi"][None, :] for p in layer_params])              # (L, 1, I)
    return w_qkvq, w_ckv, w_o, w_fi, w_fo, b_attn, vec_h, vec_i


def _pick_vmem_limit():
    """Generation-aware VMEM request: physical minus ~16 MiB headroom, capped at 100 MiB
    (v7x: 64 MiB physical -> 48 MiB; v5e/v6e: 128 MiB physical -> 100 MiB)."""
    try:
        phys = int(pltpu.get_tpu_info().vmem_capacity_bytes)
    except Exception:
        phys = 64 * 1024 * 1024
    return int(min(max(phys - 16 * 1024 * 1024, 32 * 1024 * 1024), 100 * 1024 * 1024))


def bert_encoder_pallas(hidden_states, encoder_hidden_states, layer_params, *, batch_block=8):
    B, S, H = hidden_states.shape
    _, T, E = encoder_hidden_states.shape
    L = len(layer_params)
    I = layer_params[0]["wi"].shape[1]
    nh = NUM_HEADS
    assert H % nh == 0
    dh = H // nh

    # Fold up to `batch_block` batch elements into each grid step so per-layer weights are
    # streamed from HBM once per block (not once per batch element) and the MXU M dim is Bb*S.
    bb = min(batch_block, B)
    while B % bb:            # TODO(synk): pad the batch instead of shrinking the block
        bb -= 1

    packed = pack_layer_params(layer_params, nh)

    act_map = lambda b, l: (b, 0, 0)        # activation blocks follow the batch-block axis
    w3 = lambda b, l: (l, 0, 0)             # parameter slabs follow the layer axis
    w4 = lambda b, l: (l, 0, 0, 0)

    return pl.pallas_call(
        bert_encoder_kernel,
        out_shape=jax.ShapeDtypeStruct((B, S, H), hidden_states.dtype),
        grid=(B // bb, L),
        in_specs=[
            pl.BlockSpec((bb, S, H), act_map),                  # hidden_states
            pl.BlockSpec((bb, T, E), act_map),                  # encoder_hidden_states
            pl.BlockSpec((1, 4 * nh, H, dh), w4),               # Wq,Wk,Wv,cross-Wq per head (bf16)
            pl.BlockSpec((1, 2 * nh, E, dh), w4),               # cross Wk,Wv per head (bf16)
            pl.BlockSpec((1, 2 * nh, dh, H), w4),               # Wo, cross-Wo per head (bf16)
            pl.BlockSpec((1, H, I), w3),                        # FFN W_in  (bf16)
            pl.BlockSpec((1, I, H), w3),                        # FFN W_out (bf16)
            pl.BlockSpec((1, 6 * nh, 1, dh), w4),               # Q/K/V biases per head (f32)
            pl.BlockSpec((1, len(_VEC_H_ORDER), H), w3),        # output biases + LN params (f32)
            pl.BlockSpec((1, 1, I), w3),                        # FFN intermediate bias (f32)
        ],
        out_specs=pl.BlockSpec((bb, S, H), act_map),
        scratch_shapes=[pltpu.VMEM((bb * S, H), jnp.float32),      # hidden-state carry
                        pltpu.VMEM((bb * T, E), jnp.bfloat16)],    # cast-once encoder states
        compiler_params=pltpu.CompilerParams(
            dimension_semantics=("parallel", "arbitrary"),
            vmem_limit_bytes=_pick_vmem_limit()),
    )(hidden_states, encoder_hidden_states, *packed)


# ---------------------------------------------------------------------------
# Pure-JAX reference, structured like the PyTorch module (concat heads, exact softmax divide).
# `mxu_dtype=jnp.bfloat16` mirrors the kernel's mixed-precision contract (bf16 matmul
# operands, f32 accumulation); `mxu_dtype=jnp.float32` is the full-precision module math.
# ---------------------------------------------------------------------------
def _linear_ref(x, w, b, mxu_dtype):
    return jnp.einsum("bsk,kd->bsd", x.astype(mxu_dtype), w.astype(mxu_dtype),
                      preferred_element_type=jnp.float32) + b


def _mha_ref(q_in, kv_in, wq, bq, wk, bk, wv, bv, num_heads, mxu_dtype):
    q = _linear_ref(q_in, wq, bq, mxu_dtype)
    k = _linear_ref(kv_in, wk, bk, mxu_dtype)
    v = _linear_ref(kv_in, wv, bv, mxu_dtype)
    dh = q.shape[-1] // num_heads
    scale = np.float32(1.0 / np.sqrt(dh))
    ctx = []
    for h in range(num_heads):
        sl = slice(h * dh, (h + 1) * dh)
        s = jnp.einsum("bqd,bkd->bqk", q[..., sl], k[..., sl],
                       preferred_element_type=jnp.float32) * scale
        p = jax.nn.softmax(s, axis=-1)
        ctx.append(jnp.einsum("bqk,bkd->bqd", p, v[..., sl],
                              preferred_element_type=jnp.float32))
    return jnp.concatenate(ctx, axis=-1)


def _layer_forward_ref(hs, enc, p, mxu_dtype):
    ctx = _mha_ref(hs, hs, p["wq"], p["bq"], p["wk"], p["bk"], p["wv"], p["bv"],
                   NUM_HEADS, mxu_dtype)
    attn_out = _layernorm(_linear_ref(ctx, p["wo"], p["bo"], mxu_dtype) + hs,
                          p["g1"], p["b1"])
    cctx = _mha_ref(attn_out, enc, p["cwq"], p["cbq"], p["cwk"], p["cbk"],
                    p["cwv"], p["cbv"], NUM_HEADS, mxu_dtype)
    cross_out = _layernorm(_linear_ref(cctx, p["cwo"], p["cbo"], mxu_dtype) + attn_out,
                           p["g2"], p["b2"])
    inter = _gelu(_linear_ref(cross_out, p["wi"], p["bi"], mxu_dtype))
    ffn = _linear_ref(inter, p["wf"], p["bf"], mxu_dtype)
    return _layernorm(ffn + cross_out, p["g3"], p["b3"])


def bert_encoder_ref(hidden_states, encoder_hidden_states, layer_params,
                     mxu_dtype=jnp.float32):
    hs = hidden_states
    for p in layer_params:
        hs = _layer_forward_ref(hs, encoder_hidden_states, p, mxu_dtype)
    return hs


# ---------------------------------------------------------------------------
# Deterministic synthetic parameters.
# ---------------------------------------------------------------------------
def init_layer_params(key, hidden, inter_size, enc_width):
    ks = iter(jax.random.split(key, 24))

    def w(i, o):
        return jax.random.normal(next(ks), (i, o), jnp.float32) * 0.02

    def b(o):
        return jax.random.normal(next(ks), (o,), jnp.float32) * 0.02

    H, I, E = hidden, inter_size, enc_width
    ones = lambda n: jnp.ones((n,), jnp.float32)
    zeros = lambda n: jnp.zeros((n,), jnp.float32)
    return dict(
        wq=w(H, H), bq=b(H), wk=w(H, H), bk=b(H), wv=w(H, H), bv=b(H),
        wo=w(H, H), bo=b(H), g1=ones(H), b1=zeros(H),
        cwq=w(H, H), cbq=b(H), cwk=w(E, H), cbk=b(H), cwv=w(E, H), cbv=b(H),
        cwo=w(H, H), cbo=b(H), g2=ones(H), b2=zeros(H),
        wi=w(H, I), bi=b(I), wf=w(I, H), bf=b(H), g3=ones(H), b3=zeros(H),
    )


if __name__ == "__main__":
    # Toy config (hidden=32, heads=4, intermediate=64, encoder_width=32, layers=2, batch=2,
    # seq=8).  NOTE: these lane-narrow blocks are for the correctness test only; production
    # shapes (H=768, I=3072, S>=128) are already lane/MXU friendly.
    B, S, T, H, I, NUM_LAYERS = 2, 8, 8, 32, 64, 2
    ENC_WIDTH = H

    key = jax.random.PRNGKey(0)
    k_hs, k_enc, k_params = jax.random.split(key, 3)
    hidden_states = jax.random.normal(k_hs, (B, S, H), jnp.float32)
    encoder_hidden_states = jax.random.normal(k_enc, (B, T, ENC_WIDTH), jnp.float32)
    layer_params = [init_layer_params(k, H, I, ENC_WIDTH)
                    for k in jax.random.split(k_params, NUM_LAYERS)]

    out = bert_encoder_pallas(hidden_states, encoder_hidden_states, layer_params)
    out = jax.block_until_ready(out)
    assert out.shape == (B, S, H)

    # (1) Tight check vs a reference following the same mixed-precision contract (bf16 matmul
    #     operands, f32 accumulation/elementwise) — remaining differences are only the
    #     approximate-reciprocal softmax/GELU divides and MXU accumulation order.
    ref_bf16 = bert_encoder_ref(hidden_states, encoder_hidden_states, layer_params,
                                mxu_dtype=jnp.bfloat16)
    assert jnp.allclose(out, ref_bf16, atol=5e-3, rtol=5e-3), \
        "Pallas output mismatch vs mixed-precision reference"

    # (2) Sanity bound vs the full-f32 module math (pure bf16-rounding error budget).
    ref_f32 = bert_encoder_ref(hidden_states, encoder_hidden_states, layer_params,
                               mxu_dtype=jnp.float32)
    assert jnp.allclose(out, ref_f32, atol=2.5e-2, rtol=2.5e-2), \
        "Pallas output mismatch vs f32 reference"

    print("KERNEL_OK")
</pallas_src>

<mosaic_0001>
module attributes {stable_mosaic.version = 11 : i64} {
  func.func @bert_encoder_kernel(%arg0: i32, %arg1: i32, %arg2: memref<2x8x32xf32, #tpu.memory_space<vmem>>, %arg3: memref<2x8x32xf32, #tpu.memory_space<vmem>>, %arg4: memref<1x16x32x8xbf16, #tpu.memory_space<vmem>>, %arg5: memref<1x8x32x8xbf16, #tpu.memory_space<vmem>>, %arg6: memref<1x8x8x32xbf16, #tpu.memory_space<vmem>>, %arg7: memref<1x32x64xbf16, #tpu.memory_space<vmem>>, %arg8: memref<1x64x32xbf16, #tpu.memory_space<vmem>>, %arg9: memref<1x24x1x8xf32, #tpu.memory_space<vmem>>, %arg10: memref<1x9x32xf32, #tpu.memory_space<vmem>>, %arg11: memref<1x1x64xf32, #tpu.memory_space<vmem>>, %arg12: memref<2x8x32xf32, #tpu.memory_space<vmem>>, %arg13: memref<16x32xf32, #tpu.memory_space<vmem>>, %arg14: memref<16x32xbf16, #tpu.memory_space<vmem>>) attributes {dimension_semantics = [#tpu.dimension_semantics<parallel>, #tpu.dimension_semantics<arbitrary>], iteration_bounds = array<i64: 1, 2>, scalar_prefetch = 0 : i64, scratch_operands = 2 : i64, tpu.core_type = #tpu.core_type<tc>, window_params = [{transform_indices = @transform_0, window_bounds = array<i64: 2, 8, 32>}, {transform_indices = @transform_1, window_bounds = array<i64: 2, 8, 32>}, {transform_indices = @transform_2, window_bounds = array<i64: 1, 16, 32, 8>}, {transform_indices = @transform_3, window_bounds = array<i64: 1, 8, 32, 8>}, {transform_indices = @transform_4, window_bounds = array<i64: 1, 8, 8, 32>}, {transform_indices = @transform_5, window_bounds = array<i64: 1, 32, 64>}, {transform_indices = @transform_6, window_bounds = array<i64: 1, 64, 32>}, {transform_indices = @transform_7, window_bounds = array<i64: 1, 24, 1, 8>}, {transform_indices = @transform_8, window_bounds = array<i64: 1, 9, 32>}, {transform_indices = @transform_9, window_bounds = array<i64: 1, 1, 64>}, {transform_indices = @transform_10, window_bounds = array<i64: 2, 8, 32>}]} {
    %c0_i32 = arith.constant 0 : i32
    %0 = arith.cmpi eq, %arg1, %c0_i32 : i32
    %1 = arith.extui %0 : i1 to i32
    %c0_i32_0 = arith.constant 0 : i32
    %2 = arith.cmpi ne, %1, %c0_i32_0 : i32
    scf.if %2 {
      %c0_325 = arith.constant 0 : index
      %c0_326 = arith.constant 0 : index
      %c0_327 = arith.constant 0 : index
      %503 = vector.load %arg2[%c0_325, %c0_326, %c0_327] : memref<2x8x32xf32, #tpu.memory_space<vmem>>, vector<2x8x32xf32>
      %504 = vector.shape_cast %503 : vector<2x8x32xf32> to vector<16x32xf32>
      %c0_328 = arith.constant 0 : index
      %c0_329 = arith.constant 0 : index
      %505 = vector.load %arg13[%c0_328, %c0_329] : memref<16x32xf32, #tpu.memory_space<vmem>>, vector<16x32xf32>
      tpu.vector_store %arg13[%c0_328, %c0_329], %504 {strides = array<i32>} : memref<16x32xf32, #tpu.memory_space<vmem>>, vector<16x32xf32>,
      %c0_330 = arith.constant 0 : index
      %c0_331 = arith.constant 0 : index
      %c0_332 = arith.constant 0 : index
      %506 = vector.load %arg3[%c0_330, %c0_331, %c0_332] : memref<2x8x32xf32, #tpu.memory_space<vmem>>, vector<2x8x32xf32>
      %507 = vector.shape_cast %506 : vector<2x8x32xf32> to vector<16x32xf32>
      %508 = arith.truncf %507 : vector<16x32xf32> to vector<16x32xbf16>
      %c0_333 = arith.constant 0 : index
      %c0_334 = arith.constant 0 : index
      %509 = vector.load %arg14[%c0_333, %c0_334] : memref<16x32xbf16, #tpu.memory_space<vmem>>, vector<16x32xbf16>
      tpu.vector_store %arg14[%c0_333, %c0_334], %508 {strides = array<i32>} : memref<16x32xbf16, #tpu.memory_space<vmem>>, vector<16x32xbf16>,
    } else {
    }
    %c0 = arith.constant 0 : index
    %c0_1 = arith.constant 0 : index
    %3 = vector.load %arg13[%c0, %c0_1] : memref<16x32xf32, #tpu.memory_space<vmem>>, vector<16x32xf32>
    %c0_2 = arith.constant 0 : index
    %c0_3 = arith.constant 0 : index
    %4 = vector.load %arg14[%c0_2, %c0_3] : memref<16x32xbf16, #tpu.memory_space<vmem>>, vector<16x32xbf16>
    %c0_4 = arith.constant 0 : index
    %c0_5 = arith.constant 0 : index
    %c0_6 = arith.constant 0 : index
    %5 = vector.load %arg10[%c0_4, %c0_5, %c0_6] : memref<1x9x32xf32, #tpu.memory_space<vmem>>, vector<1x9x32xf32>
    %6 = vector.shape_cast %5 : vector<1x9x32xf32> to vector<9x32xf32>
    %7 = arith.truncf %3 : vector<16x32xf32> to vector<16x32xbf16>
    %cst = arith.constant 0.000000e+00 : f32
    %8 = vector.broadcast %cst : f32 to vector<16x32xf32>
    %c0_7 = arith.constant 0 : index
    %c0_8 = arith.constant 0 : index
    %c0_9 = arith.constant 0 : index
    %c0_10 = arith.constant 0 : index
    %9 = vector.load %arg4[%c0_7, %c0_8, %c0_9, %c0_10] : memref<1x16x32x8xbf16, #tpu.memory_space<vmem>>, vector<1x1x32x8xbf16>
    %10 = vector.shape_cast %9 : vector<1x1x32x8xbf16> to vector<32x8xbf16>
    %cst_11 = arith.constant dense<0.000000e+00> : vector<16x8xf32>
    %11 = tpu.matmul %7, %10, %cst_11 {dimension_numbers = #tpu.dot_dimension_numbers<[1], [0], [0], [1], [0, 0, 1, 1], [], []>} : vector<16x32xbf16>, vector<32x8xbf16>, vector<16x8xf32> -> vector<16x8xf32>
    %c0_12 = arith.constant 0 : index
    %c0_13 = arith.constant 0 : index
    %c0_14 = arith.constant 0 : index
    %c0_15 = arith.constant 0 : index
    %12 = vector.load %arg9[%c0_12, %c0_13, %c0_14, %c0_15] : memref<1x24x1x8xf32, #tpu.memory_space<vmem>>, vector<1x1x1x8xf32>
    %13 = vector.shape_cast %12 : vector<1x1x1x8xf32> to vector<1x8xf32>
    %14 = vector.broadcast %13 : vector<1x8xf32> to vector<16x8xf32>
    %15 = arith.addf %11, %14 : vector<16x8xf32>
    %c0_16 = arith.constant 0 : index
    %c4 = arith.constant 4 : index
    %c0_17 = arith.constant 0 : index
    %c0_18 = arith.constant 0 : index
    %16 = vector.load %arg4[%c0_16, %c4, %c0_17, %c0_18] : memref<1x16x32x8xbf16, #tpu.memory_space<vmem>>, vector<1x1x32x8xbf16>
    %17 = vector.shape_cast %16 : vector<1x1x32x8xbf16> to vector<32x8xbf16>
    %cst_19 = arith.constant dense<0.000000e+00> : vector<16x8xf32>
    %18 = tpu.matmul %7, %17, %cst_19 {dimension_numbers = #tpu.dot_dimension_numbers<[1], [0], [0], [1], [0, 0, 1, 1], [], []>} : vector<16x32xbf16>, vector<32x8xbf16>, vector<16x8xf32> -> vector<16x8xf32>
    %c0_20 = arith.constant 0 : index
    %c4_21 = arith.constant 4 : index
    %c0_22 = arith.constant 0 : index
    %c0_23 = arith.constant 0 : index
    %19 = vector.load %arg9[%c0_20, %c4_21, %c0_22, %c0_23] : memref<1x24x1x8xf32, #tpu.memory_space<vmem>>, vector<1x1x1x8xf32>
    %20 = vector.shape_cast %19 : vector<1x1x1x8xf32> to vector<1x8xf32>
    %21 = vector.broadcast %20 : vector<1x8xf32> to vector<16x8xf32>
    %22 = arith.addf %18, %21 : vector<16x8xf32>
    %c0_24 = arith.constant 0 : index
    %c8 = arith.constant 8 : index
    %c0_25 = arith.constant 0 : index
    %c0_26 = arith.constant 0 : index
    %23 = vector.load %arg4[%c0_24, %c8, %c0_25, %c0_26] : memref<1x16x32x8xbf16, #tpu.memory_space<vmem>>, vector<1x1x32x8xbf16>
    %24 = vector.shape_cast %23 : vector<1x1x32x8xbf16> to vector<32x8xbf16>
    %cst_27 = arith.constant dense<0.000000e+00> : vector<16x8xf32>
    %25 = tpu.matmul %7, %24, %cst_27 {dimension_numbers = #tpu.dot_dimension_numbers<[1], [0], [0], [1], [0, 0, 1, 1], [], []>} : vector<16x32xbf16>, vector<32x8xbf16>, vector<16x8xf32> -> vector<16x8xf32>
    %c0_28 = arith.constant 0 : index
    %c8_29 = arith.constant 8 : index
    %c0_30 = arith.constant 0 : index
    %c0_31 = arith.constant 0 : index
    %26 = vector.load %arg9[%c0_28, %c8_29, %c0_30, %c0_31] : memref<1x24x1x8xf32, #tpu.memory_space<vmem>>, vector<1x1x1x8xf32>
    %27 = vector.shape_cast %26 : vector<1x1x1x8xf32> to vector<1x8xf32>
    %28 = vector.broadcast %27 : vector<1x8xf32> to vector<16x8xf32>
    %29 = arith.addf %25, %28 : vector<16x8xf32>
    %30 = vector.shape_cast %15 : vector<16x8xf32> to vector<2x8x8xf32>
    %31 = vector.shape_cast %22 : vector<16x8xf32> to vector<2x8x8xf32>
    %32 = vector.shape_cast %29 : vector<16x8xf32> to vector<2x8x8xf32>
    "tpu.trace_start"() <{level = 10 : i32, message = "bqd,bkd->bqk"}> : () -> ()
    %cst_32 = arith.constant dense<0.000000e+00> : vector<2x8x8xf32>
    %33 = tpu.matmul %30, %31, %cst_32 {dimension_numbers = #tpu.dot_dimension_numbers<[2], [2], [1], [1], [0, 0, 0, 1, 1, 1], [0], [0]>} : vector<2x8x8xf32>, vector<2x8x8xf32>, vector<2x8x8xf32> -> vector<2x8x8xf32>
    "tpu.trace_stop"() : () -> ()
    %cst_33 = arith.constant 0.353553385 : f32
    %34 = vector.broadcast %cst_33 : f32 to vector<2x8x8xf32>
    %35 = arith.mulf %33, %34 : vector<2x8x8xf32>
    %cst_34 = arith.constant dense<0xFF800000> : vector<2x8xf32>
    %36 = vector.multi_reduction <maximumf>, %35, %cst_34 [2] : vector<2x8x8xf32> to vector<2x8xf32>
    %37 = vector.shape_cast %36 : vector<2x8xf32> to vector<2x8x1xf32>
    %38 = vector.broadcast %37 : vector<2x8x1xf32> to vector<2x8x8xf32>
    %39 = arith.subf %35, %38 : vector<2x8x8xf32>
    %40 = math.exp %39 : vector<2x8x8xf32>
    %cst_35 = arith.constant dense<0.000000e+00> : vector<2x8xf32>
    %41 = vector.multi_reduction <add>, %40, %cst_35 [2] : vector<2x8x8xf32> to vector<2x8xf32>
    %42 = vector.shape_cast %41 : vector<2x8xf32> to vector<2x8x1xf32>
    %43 = tpu.reciprocal %42 {approx = true} : vector<2x8x1xf32> -> vector<2x8x1xf32>
    %44 = vector.broadcast %43 : vector<2x8x1xf32> to vector<2x8x8xf32>
    %45 = arith.mulf %40, %44 : vector<2x8x8xf32>
    "tpu.trace_start"() <{level = 10 : i32, message = "bqk,bkd->bqd"}> : () -> ()
    %cst_36 = arith.constant dense<0.000000e+00> : vector<2x8x8xf32>
    %46 = tpu.matmul %45, %32, %cst_36 {dimension_numbers = #tpu.dot_dimension_numbers<[2], [1], [1], [2], [0, 0, 0, 1, 1, 2], [0], [0]>} : vector<2x8x8xf32>, vector<2x8x8xf32>, vector<2x8x8xf32> -> vector<2x8x8xf32>
    "tpu.trace_stop"() : () -> ()
    %47 = vector.shape_cast %46 : vector<2x8x8xf32> to vector<16x8xf32>
    %48 = arith.truncf %47 : vector<16x8xf32> to vector<16x8xbf16>
    %c0_37 = arith.constant 0 : index
    %c0_38 = arith.constant 0 : index
    %c0_39 = arith.constant 0 : index
    %c0_40 = arith.constant 0 : index
    %49 = vector.load %arg6[%c0_37, %c0_38, %c0_39, %c0_40] : memref<1x8x8x32xbf16, #tpu.memory_space<vmem>>, vector<1x1x8x32xbf16>
    %50 = vector.shape_cast %49 : vector<1x1x8x32xbf16> to vector<8x32xbf16>
    %cst_41 = arith.constant dense<0.000000e+00> : vector<16x32xf32>
    %51 = tpu.matmul %48, %50, %cst_41 {dimension_numbers = #tpu.dot_dimension_numbers<[1], [0], [0], [1], [0, 0, 1, 1], [], []>} : vector<16x8xbf16>, vector<8x32xbf16>, vector<16x32xf32> -> vector<16x32xf32>
    %52 = arith.addf %8, %51 : vector<16x32xf32>
    %c0_42 = arith.constant 0 : index
    %c1 = arith.constant 1 : index
    %c0_43 = arith.constant 0 : index
    %c0_44 = arith.constant 0 : index
    %53 = vector.load %arg4[%c0_42, %c1, %c0_43, %c0_44] : memref<1x16x32x8xbf16, #tpu.memory_space<vmem>>, vector<1x1x32x8xbf16>
    %54 = vector.shape_cast %53 : vector<1x1x32x8xbf16> to vector<32x8xbf16>
    %cst_45 = arith.constant dense<0.000000e+00> : vector<16x8xf32>
    %55 = tpu.matmul %7, %54, %cst_45 {dimension_numbers = #tpu.dot_dimension_numbers<[1], [0], [0], [1], [0, 0, 1, 1], [], []>} : vector<16x32xbf16>, vector<32x8xbf16>, vector<16x8xf32> -> vector<16x8xf32>
    %c0_46 = arith.constant 0 : index
    %c1_47 = arith.constant 1 : index
    %c0_48 = arith.constant 0 : index
    %c0_49 = arith.constant 0 : index
    %56 = vector.load %arg9[%c0_46, %c1_47, %c0_48, %c0_49] : memref<1x24x1x8xf32, #tpu.memory_space<vmem>>, vector<1x1x1x8xf32>
    %57 = vector.shape_cast %56 : vector<1x1x1x8xf32> to vector<1x8xf32>
    %58 = vector.broadcast %57 : vector<1x8xf32> to vector<16x8xf32>
    %59 = arith.addf %55, %58 : vector<16x8xf32>
    %c0_50 = arith.constant 0 : index
    %c5 = arith.constant 5 : index
    %c0_51 = arith.constant 0 : index
    %c0_52 = arith.constant 0 : index
    %60 = vector.load %arg4[%c0_50, %c5, %c0_51, %c0_52] : memref<1x16x32x8xbf16, #tpu.memory_space<vmem>>, vector<1x1x32x8xbf16>
    %61 = vector.shape_cast %60 : vector<1x1x32x8xbf16> to vector<32x8xbf16>
    %cst_53 = arith.constant dense<0.000000e+00> : vector<16x8xf32>
    %62 = tpu.matmul %7, %61, %cst_53 {dimension_numbers = #tpu.dot_dimension_numbers<[1], [0], [0], [1], [0, 0, 1, 1], [], []>} : vector<16x32xbf16>, vector<32x8xbf16>, vector<16x8xf32> -> vector<16x8xf32>
    %c0_54 = arith.constant 0 : index
    %c5_55 = arith.constant 5 : index
    %c0_56 = arith.constant 0 : index
    %c0_57 = arith.constant 0 : index
    %63 = vector.load %arg9[%c0_54, %c5_55, %c0_56, %c0_57] : memref<1x24x1x8xf32, #tpu.memory_space<vmem>>, vector<1x1x1x8xf32>
    %64 = vector.shape_cast %63 : vector<1x1x1x8xf32> to vector<1x8xf32>
    %65 = vector.broadcast %64 : vector<1x8xf32> to vector<16x8xf32>
    %66 = arith.addf %62, %65 : vector<16x8xf32>
    %c0_58 = arith.constant 0 : index
    %c9 = arith.constant 9 : index
    %c0_59 = arith.constant 0 : index
    %c0_60 = arith.constant 0 : index
    %67 = vector.load %arg4[%c0_58, %c9, %c0_59, %c0_60] : memref<1x16x32x8xbf16, #tpu.memory_space<vmem>>, vector<1x1x32x8xbf16>
    %68 = vector.shape_cast %67 : vector<1x1x32x8xbf16> to vector<32x8xbf16>
    %cst_61 = arith.constant dense<0.000000e+00> : vector<16x8xf32>
    %69 = tpu.matmul %7, %68, %cst_61 {dimension_numbers = #tpu.dot_dimension_numbers<[1], [0], [0], [1], [0, 0, 1, 1], [], []>} : vector<16x32xbf16>, vector<32x8xbf16>, vector<16x8xf32> -> vector<16x8xf32>
    %c0_62 = arith.constant 0 : index
    %c9_63 = arith.constant 9 : index
    %c0_64 = arith.constant 0 : index
    %c0_65 = arith.constant 0 : index
    %70 = vector.load %arg9[%c0_62, %c9_63, %c0_64, %c0_65] : memref<1x24x1x8xf32, #tpu.memory_space<vmem>>, vector<1x1x1x8xf32>
    %71 = vector.shape_cast %70 : vector<1x1x1x8xf32> to vector<1x8xf32>
    %72 = vector.broadcast %71 : vector<1x8xf32> to vector<16x8xf32>
    %73 = arith.addf %69, %72 : vector<16x8xf32>
    %74 = vector.shape_cast %59 : vector<16x8xf32> to vector<2x8x8xf32>
    %75 = vector.shape_cast %66 : vector<16x8xf32> to vector<2x8x8xf32>
    %76 = vector.shape_cast %73 : vector<16x8xf32> to vector<2x8x8xf32>
    "tpu.trace_start"() <{level = 10 : i32, message = "bqd,bkd->bqk"}> : () -> ()
    %cst_66 = arith.constant dense<0.000000e+00> : vector<2x8x8xf32>
    %77 = tpu.matmul %74, %75, %cst_66 {dimension_numbers = #tpu.dot_dimension_numbers<[2], [2], [1], [1], [0, 0, 0, 1, 1, 1], [0], [0]>} : vector<2x8x8xf32>, vector<2x8x8xf32>, vector<2x8x8xf32> -> vector<2x8x8xf32>
    "tpu.trace_stop"() : () -> ()
    %cst_67 = arith.constant 0.353553385 : f32
    %78 = vector.broadcast %cst_67 : f32 to vector<2x8x8xf32>
    %79 = arith.mulf %77, %78 : vector<2x8x8xf32>
    %cst_68 = arith.constant dense<0xFF800000> : vector<2x8xf32>
    %80 = vector.multi_reduction <maximumf>, %79, %cst_68 [2] : vector<2x8x8xf32> to vector<2x8xf32>
    %81 = vector.shape_cast %80 : vector<2x8xf32> to vector<2x8x1xf32>
    %82 = vector.broadcast %81 : vector<2x8x1xf32> to vector<2x8x8xf32>
    %83 = arith.subf %79, %82 : vector<2x8x8xf32>
    %84 = math.exp %83 : vector<2x8x8xf32>
    %cst_69 = arith.constant dense<0.000000e+00> : vector<2x8xf32>
    %85 = vector.multi_reduction <add>, %84, %cst_69 [2] : vector<2x8x8xf32> to vector<2x8xf32>
    %86 = vector.shape_cast %85 : vector<2x8xf32> to vector<2x8x1xf32>
    %87 = tpu.reciprocal %86 {approx = true} : vector<2x8x1xf32> -> vector<2x8x1xf32>
    %88 = vector.broadcast %87 : vector<2x8x1xf32> to vector<2x8x8xf32>
    %89 = arith.mulf %84, %88 : vector<2x8x8xf32>
    "tpu.trace_start"() <{level = 10 : i32, message = "bqk,bkd->bqd"}> : () -> ()
    %cst_70 = arith.constant dense<0.000000e+00> : vector<2x8x8xf32>
    %90 = tpu.matmul %89, %76, %cst_70 {dimension_numbers = #tpu.dot_dimension_numbers<[2], [1], [1], [2], [0, 0, 0, 1, 1, 2], [0], [0]>} : vector<2x8x8xf32>, vector<2x8x8xf32>, vector<2x8x8xf32> -> vector<2x8x8xf32>
    "tpu.trace_stop"() : () -> ()
    %91 = vector.shape_cast %90 : vector<2x8x8xf32> to vector<16x8xf32>
    %92 = arith.truncf %91 : vector<16x8xf32> to vector<16x8xbf16>
    %c0_71 = arith.constant 0 : index
    %c1_72 = arith.constant 1 : index
    %c0_73 = arith.constant 0 : index
    %c0_74 = arith.constant 0 : index
    %93 = vector.load %arg6[%c0_71, %c1_72, %c0_73, %c0_74] : memref<1x8x8x32xbf16, #tpu.memory_space<vmem>>, vector<1x1x8x32xbf16>
    %94 = vector.shape_cast %93 : vector<1x1x8x32xbf16> to vector<8x32xbf16>
    %cst_75 = arith.constant dense<0.000000e+00> : vector<16x32xf32>
    %95 = tpu.matmul %92, %94, %cst_75 {dimension_numbers = #tpu.dot_dimension_numbers<[1], [0], [0], [1], [0, 0, 1, 1], [], []>} : vector<16x8xbf16>, vector<8x32xbf16>, vector<16x32xf32> -> vector<16x32xf32>
    %96 = arith.addf %52, %95 : vector<16x32xf32>
    %c0_76 = arith.constant 0 : index
    %c2 = arith.constant 2 : index
    %c0_77 = arith.constant 0 : index
    %c0_78 = arith.constant 0 : index
    %97 = vector.load %arg4[%c0_76, %c2, %c0_77, %c0_78] : memref<1x16x32x8xbf16, #tpu.memory_space<vmem>>, vector<1x1x32x8xbf16>
    %98 = vector.shape_cast %97 : vector<1x1x32x8xbf16> to vector<32x8xbf16>
    %cst_79 = arith.constant dense<0.000000e+00> : vector<16x8xf32>
    %99 = tpu.matmul %7, %98, %cst_79 {dimension_numbers = #tpu.dot_dimension_numbers<[1], [0], [0], [1], [0, 0, 1, 1], [], []>} : vector<16x32xbf16>, vector<32x8xbf16>, vector<16x8xf32> -> vector<16x8xf32>
    %c0_80 = arith.constant 0 : index
    %c2_81 = arith.constant 2 : index
    %c0_82 = arith.constant 0 : index
    %c0_83 = arith.constant 0 : index
    %100 = vector.load %arg9[%c0_80, %c2_81, %c0_82, %c0_83] : memref<1x24x1x8xf32, #tpu.memory_space<vmem>>, vector<1x1x1x8xf32>
    %101 = vector.shape_cast %100 : vector<1x1x1x8xf32> to vector<1x8xf32>
    %102 = vector.broadcast %101 : vector<1x8xf32> to vector<16x8xf32>
    %103 = arith.addf %99, %102 : vector<16x8xf32>
    %c0_84 = arith.constant 0 : index
    %c6 = arith.constant 6 : index
    %c0_85 = arith.constant 0 : index
    %c0_86 = arith.constant 0 : index
    %104 = vector.load %arg4[%c0_84, %c6, %c0_85, %c0_86] : memref<1x16x32x8xbf16, #tpu.memory_space<vmem>>, vector<1x1x32x8xbf16>
    %105 = vector.shape_cast %104 : vector<1x1x32x8xbf16> to vector<32x8xbf16>
    %cst_87 = arith.constant dense<0.000000e+00> : vector<16x8xf32>
    %106 = tpu.matmul %7, %105, %cst_87 {dimension_numbers = #tpu.dot_dimension_numbers<[1], [0], [0], [1], [0, 0, 1, 1], [], []>} : vector<16x32xbf16>, vector<32x8xbf16>, vector<16x8xf32> -> vector<16x8xf32>
    %c0_88 = arith.constant 0 : index
    %c6_89 = arith.constant 6 : index
    %c0_90 = arith.constant 0 : index
    %c0_91 = arith.constant 0 : index
    %107 = vector.load %arg9[%c0_88, %c6_89, %c0_90, %c0_91] : memref<1x24x1x8xf32, #tpu.memory_space<vmem>>, vector<1x1x1x8xf32>
    %108 = vector.shape_cast %107 : vector<1x1x1x8xf32> to vector<1x8xf32>
    %109 = vector.broadcast %108 : vector<1x8xf32> to vector<16x8xf32>
    %110 = arith.addf %106, %109 : vector<16x8xf32>
    %c0_92 = arith.constant 0 : index
    %c10 = arith.constant 10 : index
    %c0_93 = arith.constant 0 : index
    %c0_94 = arith.constant 0 : index
    %111 = vector.load %arg4[%c0_92, %c10, %c0_93, %c0_94] : memref<1x16x32x8xbf16, #tpu.memory_space<vmem>>, vector<1x1x32x8xbf16>
    %112 = vector.shape_cast %111 : vector<1x1x32x8xbf16> to vector<32x8xbf16>
    %cst_95 = arith.constant dense<0.000000e+00> : vector<16x8xf32>
    %113 = tpu.matmul %7, %112, %cst_95 {dimension_numbers = #tpu.dot_dimension_numbers<[1], [0], [0], [1], [0, 0, 1, 1], [], []>} : vector<16x32xbf16>, vector<32x8xbf16>, vector<16x8xf32> -> vector<16x8xf32>
    %c0_96 = arith.constant 0 : index
    %c10_97 = arith.constant 10 : index
    %c0_98 = arith.constant 0 : index
    %c0_99 = arith.constant 0 : index
    %114 = vector.load %arg9[%c0_96, %c10_97, %c0_98, %c0_99] : memref<1x24x1x8xf32, #tpu.memory_space<vmem>>, vector<1x1x1x8xf32>
    %115 = vector.shape_cast %114 : vector<1x1x1x8xf32> to vector<1x8xf32>
    %116 = vector.broadcast %115 : vector<1x8xf32> to vector<16x8xf32>
    %117 = arith.addf %113, %116 : vector<16x8xf32>
    %118 = vector.shape_cast %103 : vector<16x8xf32> to vector<2x8x8xf32>
    %119 = vector.shape_cast %110 : vector<16x8xf32> to vector<2x8x8xf32>
    %120 = vector.shape_cast %117 : vector<16x8xf32> to vector<2x8x8xf32>
    "tpu.trace_start"() <{level = 10 : i32, message = "bqd,bkd->bqk"}> : () -> ()
    %cst_100 = arith.constant dense<0.000000e+00> : vector<2x8x8xf32>
    %121 = tpu.matmul %118, %119, %cst_100 {dimension_numbers = #tpu.dot_dimension_numbers<[2], [2], [1], [1], [0, 0, 0, 1, 1, 1], [0], [0]>} : vector<2x8x8xf32>, vector<2x8x8xf32>, vector<2x8x8xf32> -> vector<2x8x8xf32>
    "tpu.trace_stop"() : () -> ()
    %cst_101 = arith.constant 0.353553385 : f32
    %122 = vector.broadcast %cst_101 : f32 to vector<2x8x8xf32>
    %123 = arith.mulf %121, %122 : vector<2x8x8xf32>
    %cst_102 = arith.constant dense<0xFF800000> : vector<2x8xf32>
    %124 = vector.multi_reduction <maximumf>, %123, %cst_102 [2] : vector<2x8x8xf32> to vector<2x8xf32>
    %125 = vector.shape_cast %124 : vector<2x8xf32> to vector<2x8x1xf32>
    %126 = vector.broadcast %125 : vector<2x8x1xf32> to vector<2x8x8xf32>
    %127 = arith.subf %123, %126 : vector<2x8x8xf32>
    %128 = math.exp %127 : vector<2x8x8xf32>
    %cst_103 = arith.constant dense<0.000000e+00> : vector<2x8xf32>
    %129 = vector.multi_reduction <add>, %128, %cst_103 [2] : vector<2x8x8xf32> to vector<2x8xf32>
    %130 = vector.shape_cast %129 : vector<2x8xf32> to vector<2x8x1xf32>
    %131 = tpu.reciprocal %130 {approx = true} : vector<2x8x1xf32> -> vector<2x8x1xf32>
    %132 = vector.broadcast %131 : vector<2x8x1xf32> to vector<2x8x8xf32>
    %133 = arith.mulf %128, %132 : vector<2x8x8xf32>
    "tpu.trace_start"() <{level = 10 : i32, message = "bqk,bkd->bqd"}> : () -> ()
    %cst_104 = arith.constant dense<0.000000e+00> : vector<2x8x8xf32>
    %134 = tpu.matmul %133, %120, %cst_104 {dimension_numbers = #tpu.dot_dimension_numbers<[2], [1], [1], [2], [0, 0, 0, 1, 1, 2], [0], [0]>} : vector<2x8x8xf32>, vector<2x8x8xf32>, vector<2x8x8xf32> -> vector<2x8x8xf32>
    "tpu.trace_stop"() : () -> ()
    %135 = vector.shape_cast %134 : vector<2x8x8xf32> to vector<16x8xf32>
    %136 = arith.truncf %135 : vector<16x8xf32> to vector<16x8xbf16>
    %c0_105 = arith.constant 0 : index
    %c2_106 = arith.constant 2 : index
    %c0_107 = arith.constant 0 : index
    %c0_108 = arith.constant 0 : index
    %137 = vector.load %arg6[%c0_105, %c2_106, %c0_107, %c0_108] : memref<1x8x8x32xbf16, #tpu.memory_space<vmem>>, vector<1x1x8x32xbf16>
    %138 = vector.shape_cast %137 : vector<1x1x8x32xbf16> to vector<8x32xbf16>
    %cst_109 = arith.constant dense<0.000000e+00> : vector<16x32xf32>
    %139 = tpu.matmul %136, %138, %cst_109 {dimension_numbers = #tpu.dot_dimension_numbers<[1], [0], [0], [1], [0, 0, 1, 1], [], []>} : vector<16x8xbf16>, vector<8x32xbf16>, vector<16x32xf32> -> vector<16x32xf32>
    %140 = arith.addf %96, %139 : vector<16x32xf32>
    %c0_110 = arith.constant 0 : index
    %c3 = arith.constant 3 : index
    %c0_111 = arith.constant 0 : index
    %c0_112 = arith.constant 0 : index
    %141 = vector.load %arg4[%c0_110, %c3, %c0_111, %c0_112] : memref<1x16x32x8xbf16, #tpu.memory_space<vmem>>, vector<1x1x32x8xbf16>
    %142 = vector.shape_cast %141 : vector<1x1x32x8xbf16> to vector<32x8xbf16>
    %cst_113 = arith.constant dense<0.000000e+00> : vector<16x8xf32>
    %143 = tpu.matmul %7, %142, %cst_113 {dimension_numbers = #tpu.dot_dimension_numbers<[1], [0], [0], [1], [0, 0, 1, 1], [], []>} : vector<16x32xbf16>, vector<32x8xbf16>, vector<16x8xf32> -> vector<16x8xf32>
    %c0_114 = arith.constant 0 : index
    %c3_115 = arith.constant 3 : index
    %c0_116 = arith.constant 0 : index
    %c0_117 = arith.constant 0 : index
    %144 = vector.load %arg9[%c0_114, %c3_115, %c0_116, %c0_117] : memref<1x24x1x8xf32, #tpu.memory_space<vmem>>, vector<1x1x1x8xf32>
    %145 = vector.shape_cast %144 : vector<1x1x1x8xf32> to vector<1x8xf32>
    %146 = vector.broadcast %145 : vector<1x8xf32> to vector<16x8xf32>
    %147 = arith.addf %143, %146 : vector<16x8xf32>
    %c0_118 = arith.constant 0 : index
    %c7 = arith.constant 7 : index
    %c0_119 = arith.constant 0 : index
    %c0_120 = arith.constant 0 : index
    %148 = vector.load %arg4[%c0_118, %c7, %c0_119, %c0_120] : memref<1x16x32x8xbf16, #tpu.memory_space<vmem>>, vector<1x1x32x8xbf16>
    %149 = vector.shape_cast %148 : vector<1x1x32x8xbf16> to vector<32x8xbf16>
    %cst_121 = arith.constant dense<0.000000e+00> : vector<16x8xf32>
    %150 = tpu.matmul %7, %149, %cst_121 {dimension_numbers = #tpu.dot_dimension_numbers<[1], [0], [0], [1], [0, 0, 1, 1], [], []>} : vector<16x32xbf16>, vector<32x8xbf16>, vector<16x8xf32> -> vector<16x8xf32>
    %c0_122 = arith.constant 0 : index
    %c7_123 = arith.constant 7 : index
    %c0_124 = arith.constant 0 : index
    %c0_125 = arith.constant 0 : index
    %151 = vector.load %arg9[%c0_122, %c7_123, %c0_124, %c0_125] : memref<1x24x1x8xf32, #tpu.memory_space<vmem>>, vector<1x1x1x8xf32>
    %152 = vector.shape_cast %151 : vector<1x1x1x8xf32> to vector<1x8xf32>
    %153 = vector.broadcast %152 : vector<1x8xf32> to vector<16x8xf32>
    %154 = arith.addf %150, %153 : vector<16x8xf32>
    %c0_126 = arith.constant 0 : index
    %c11 = arith.constant 11 : index
    %c0_127 = arith.constant 0 : index
    %c0_128 = arith.constant 0 : index
    %155 = vector.load %arg4[%c0_126, %c11, %c0_127, %c0_128] : memref<1x16x32x8xbf16, #tpu.memory_space<vmem>>, vector<1x1x32x8xbf16>
    %156 = vector.shape_cast %155 : vector<1x1x32x8xbf16> to vector<32x8xbf16>
    %cst_129 = arith.constant dense<0.000000e+00> : vector<16x8xf32>
    %157 = tpu.matmul %7, %156, %cst_129 {dimension_numbers = #tpu.dot_dimension_numbers<[1], [0], [0], [1], [0, 0, 1, 1], [], []>} : vector<16x32xbf16>, vector<32x8xbf16>, vector<16x8xf32> -> vector<16x8xf32>
    %c0_130 = arith.constant 0 : index
    %c11_131 = arith.constant 11 : index
    %c0_132 = arith.constant 0 : index
    %c0_133 = arith.constant 0 : index
    %158 = vector.load %arg9[%c0_130, %c11_131, %c0_132, %c0_133] : memref<1x24x1x8xf32, #tpu.memory_space<vmem>>, vector<1x1x1x8xf32>
    %159 = vector.shape_cast %158 : vector<1x1x1x8xf32> to vector<1x8xf32>
    %160 = vector.broadcast %159 : vector<1x8xf32> to vector<16x8xf32>
    %161 = arith.addf %157, %160 : vector<16x8xf32>
    %162 = vector.shape_cast %147 : vector<16x8xf32> to vector<2x8x8xf32>
    %163 = vector.shape_cast %154 : vector<16x8xf32> to vector<2x8x8xf32>
    %164 = vector.shape_cast %161 : vector<16x8xf32> to vector<2x8x8xf32>
    "tpu.trace_start"() <{level = 10 : i32, message = "bqd,bkd->bqk"}> : () -> ()
    %cst_134 = arith.constant dense<0.000000e+00> : vector<2x8x8xf32>
    %165 = tpu.matmul %162, %163, %cst_134 {dimension_numbers = #tpu.dot_dimension_numbers<[2], [2], [1], [1], [0, 0, 0, 1, 1, 1], [0], [0]>} : vector<2x8x8xf32>, vector<2x8x8xf32>, vector<2x8x8xf32> -> vector<2x8x8xf32>
    "tpu.trace_stop"() : () -> ()
    %cst_135 = arith.constant 0.353553385 : f32
    %166 = vector.broadcast %cst_135 : f32 to vector<2x8x8xf32>
    %167 = arith.mulf %165, %166 : vector<2x8x8xf32>
    %cst_136 = arith.constant dense<0xFF800000> : vector<2x8xf32>
    %168 = vector.multi_reduction <maximumf>, %167, %cst_136 [2] : vector<2x8x8xf32> to vector<2x8xf32>
    %169 = vector.shape_cast %168 : vector<2x8xf32> to vector<2x8x1xf32>
    %170 = vector.broadcast %169 : vector<2x8x1xf32> to vector<2x8x8xf32>
    %171 = arith.subf %167, %170 : vector<2x8x8xf32>
    %172 = math.exp %171 : vector<2x8x8xf32>
    %cst_137 = arith.constant dense<0.000000e+00> : vector<2x8xf32>
    %173 = vector.multi_reduction <add>, %172, %cst_137 [2] : vector<2x8x8xf32> to vector<2x8xf32>
    %174 = vector.shape_cast %173 : vector<2x8xf32> to vector<2x8x1xf32>
    %175 = tpu.reciprocal %174 {approx = true} : vector<2x8x1xf32> -> vector<2x8x1xf32>
    %176 = vector.broadcast %175 : vector<2x8x1xf32> to vector<2x8x8xf32>
    %177 = arith.mulf %172, %176 : vector<2x8x8xf32>
    "tpu.trace_start"() <{level = 10 : i32, message = "bqk,bkd->bqd"}> : () -> ()
    %cst_138 = arith.constant dense<0.000000e+00> : vector<2x8x8xf32>
    %178 = tpu.matmul %177, %164, %cst_138 {dimension_numbers = #tpu.dot_dimension_numbers<[2], [1], [1], [2], [0, 0, 0, 1, 1, 2], [0], [0]>} : vector<2x8x8xf32>, vector<2x8x8xf32>, vector<2x8x8xf32> -> vector<2x8x8xf32>
    "tpu.trace_stop"() : () -> ()
    %179 = vector.shape_cast %178 : vector<2x8x8xf32> to vector<16x8xf32>
    %180 = arith.truncf %179 : vector<16x8xf32> to vector<16x8xbf16>
    %c0_139 = arith.constant 0 : index
    %c3_140 = arith.constant 3 : index
    %c0_141 = arith.constant 0 : index
    %c0_142 = arith.constant 0 : index
    %181 = vector.load %arg6[%c0_139, %c3_140, %c0_141, %c0_142] : memref<1x8x8x32xbf16, #tpu.memory_space<vmem>>, vector<1x1x8x32xbf16>
    %182 = vector.shape_cast %181 : vector<1x1x8x32xbf16> to vector<8x32xbf16>
    %cst_143 = arith.constant dense<0.000000e+00> : vector<16x32xf32>
    %183 = tpu.matmul %180, %182, %cst_143 {dimension_numbers = #tpu.dot_dimension_numbers<[1], [0], [0], [1], [0, 0, 1, 1], [], []>} : vector<16x8xbf16>, vector<8x32xbf16>, vector<16x32xf32> -> vector<16x32xf32>
    %184 = arith.addf %140, %183 : vector<16x32xf32>
    %185 = vector.extract_strided_slice %6 {offsets = [0, 0], sizes = [1, 32], strides = [1, 1]} : vector<9x32xf32> to vector<1x32xf32>
    %186 = vector.broadcast %185 : vector<1x32xf32> to vector<16x32xf32>
    %187 = arith.addf %184, %186 : vector<16x32xf32>
    %188 = arith.addf %187, %3 : vector<16x32xf32>
    %189 = vector.extract_strided_slice %6 {offsets = [1, 0], sizes = [1, 32], strides = [1, 1]} : vector<9x32xf32> to vector<1x32xf32>
    %190 = vector.extract_strided_slice %6 {offsets = [2, 0], sizes = [1, 32], strides = [1, 1]} : vector<9x32xf32> to vector<1x32xf32>
    %cst_144 = arith.constant dense<0.000000e+00> : vector<16xf32>
    %191 = vector.multi_reduction <add>, %188, %cst_144 [1] : vector<16x32xf32> to vector<16xf32>
    %192 = vector.shape_cast %191 : vector<16xf32> to vector<16x1xf32>
    %cst_145 = arith.constant 3.200000e+01 : f32
    %193 = vector.broadcast %cst_145 : f32 to vector<16x1xf32>
    %194 = arith.divf %192, %193 : vector<16x1xf32>
    %195 = vector.broadcast %194 : vector<16x1xf32> to vector<16x32xf32>
    %196 = arith.subf %188, %195 : vector<16x32xf32>
    %197 = arith.mulf %196, %196 : vector<16x32xf32>
    %cst_146 = arith.constant dense<0.000000e+00> : vector<16xf32>
    %198 = vector.multi_reduction <add>, %197, %cst_146 [1] : vector<16x32xf32> to vector<16xf32>
    %199 = vector.shape_cast %198 : vector<16xf32> to vector<16x1xf32>
    %cst_147 = arith.constant 3.200000e+01 : f32
    %200 = vector.broadcast %cst_147 : f32 to vector<16x1xf32>
    %201 = arith.divf %199, %200 : vector<16x1xf32>
    %202 = vector.broadcast %194 : vector<16x1xf32> to vector<16x32xf32>
    %203 = arith.subf %188, %202 : vector<16x32xf32>
    %cst_148 = arith.constant 9.99999996E-13 : f32
    %204 = vector.broadcast %cst_148 : f32 to vector<16x1xf32>
    %205 = arith.addf %201, %204 : vector<16x1xf32>
    %206 = math.rsqrt %205 : vector<16x1xf32>
    %207 = vector.broadcast %206 : vector<16x1xf32> to vector<16x32xf32>
    %208 = arith.mulf %203, %207 : vector<16x32xf32>
    %209 = vector.broadcast %189 : vector<1x32xf32> to vector<16x32xf32>
    %210 = arith.mulf %208, %209 : vector<16x32xf32>
    %211 = vector.broadcast %190 : vector<1x32xf32> to vector<16x32xf32>
    %212 = arith.addf %210, %211 : vector<16x32xf32>
    %213 = arith.truncf %212 : vector<16x32xf32> to vector<16x32xbf16>
    %cst_149 = arith.constant 0.000000e+00 : f32
    %214 = vector.broadcast %cst_149 : f32 to vector<16x32xf32>
    %c0_150 = arith.constant 0 : index
    %c12 = arith.constant 12 : index
    %c0_151 = arith.constant 0 : index
    %c0_152 = arith.constant 0 : index
    %215 = vector.load %arg4[%c0_150, %c12, %c0_151, %c0_152] : memref<1x16x32x8xbf16, #tpu.memory_space<vmem>>, vector<1x1x32x8xbf16>
    %216 = vector.shape_cast %215 : vector<1x1x32x8xbf16> to vector<32x8xbf16>
    %cst_153 = arith.constant dense<0.000000e+00> : vector<16x8xf32>
    %217 = tpu.matmul %213, %216, %cst_153 {dimension_numbers = #tpu.dot_dimension_numbers<[1], [0], [0], [1], [0, 0, 1, 1], [], []>} : vector<16x32xbf16>, vector<32x8xbf16>, vector<16x8xf32> -> vector<16x8xf32>
    %c0_154 = arith.constant 0 : index
    %c12_155 = arith.constant 12 : index
    %c0_156 = arith.constant 0 : index
    %c0_157 = arith.constant 0 : index
    %218 = vector.load %arg9[%c0_154, %c12_155, %c0_156, %c0_157] : memref<1x24x1x8xf32, #tpu.memory_space<vmem>>, vector<1x1x1x8xf32>
    %219 = vector.shape_cast %218 : vector<1x1x1x8xf32> to vector<1x8xf32>
    %220 = vector.broadcast %219 : vector<1x8xf32> to vector<16x8xf32>
    %221 = arith.addf %217, %220 : vector<16x8xf32>
    %c0_158 = arith.constant 0 : index
    %c0_159 = arith.constant 0 : index
    %c0_160 = arith.constant 0 : index
    %c0_161 = arith.constant 0 : index
    %222 = vector.load %arg5[%c0_158, %c0_159, %c0_160, %c0_161] : memref<1x8x32x8xbf16, #tpu.memory_space<vmem>>, vector<1x1x32x8xbf16>
    %223 = vector.shape_cast %222 : vector<1x1x32x8xbf16> to vector<32x8xbf16>
    %cst_162 = arith.constant dense<0.000000e+00> : vector<16x8xf32>
    %224 = tpu.matmul %4, %223, %cst_162 {dimension_numbers = #tpu.dot_dimension_numbers<[1], [0], [0], [1], [0, 0, 1, 1], [], []>} : vector<16x32xbf16>, vector<32x8xbf16>, vector<16x8xf32> -> vector<16x8xf32>
    %c0_163 = arith.constant 0 : index
    %c16 = arith.constant 16 : index
    %c0_164 = arith.constant 0 : index
    %c0_165 = arith.constant 0 : index
    %225 = vector.load %arg9[%c0_163, %c16, %c0_164, %c0_165] : memref<1x24x1x8xf32, #tpu.memory_space<vmem>>, vector<1x1x1x8xf32>
    %226 = vector.shape_cast %225 : vector<1x1x1x8xf32> to vector<1x8xf32>
    %227 = vector.broadcast %226 : vector<1x8xf32> to vector<16x8xf32>
    %228 = arith.addf %224, %227 : vector<16x8xf32>
    %c0_166 = arith.constant 0 : index
    %c4_167 = arith.constant 4 : index
    %c0_168 = arith.constant 0 : index
    %c0_169 = arith.constant 0 : index
    %229 = vector.load %arg5[%c0_166, %c4_167, %c0_168, %c0_169] : memref<1x8x32x8xbf16, #tpu.memory_space<vmem>>, vector<1x1x32x8xbf16>
    %230 = vector.shape_cast %229 : vector<1x1x32x8xbf16> to vector<32x8xbf16>
    %cst_170 = arith.constant dense<0.000000e+00> : vector<16x8xf32>
    %231 = tpu.matmul %4, %230, %cst_170 {dimension_numbers = #tpu.dot_dimension_numbers<[1], [0], [0], [1], [0, 0, 1, 1], [], []>} : vector<16x32xbf16>, vector<32x8xbf16>, vector<16x8xf32> -> vector<16x8xf32>
    %c0_171 = arith.constant 0 : index
    %c20 = arith.constant 20 : index
    %c0_172 = arith.constant 0 : index
    %c0_173 = arith.constant 0 : index
    %232 = vector.load %arg9[%c0_171, %c20, %c0_172, %c0_173] : memref<1x24x1x8xf32, #tpu.memory_space<vmem>>, vector<1x1x1x8xf32>
    %233 = vector.shape_cast %232 : vector<1x1x1x8xf32> to vector<1x8xf32>
    %234 = vector.broadcast %233 : vector<1x8xf32> to vector<16x8xf32>
    %235 = arith.addf %231, %234 : vector<16x8xf32>
    %236 = vector.shape_cast %221 : vector<16x8xf32> to vector<2x8x8xf32>
    %237 = vector.shape_cast %228 : vector<16x8xf32> to vector<2x8x8xf32>
    %238 = vector.shape_cast %235 : vector<16x8xf32> to vector<2x8x8xf32>
    "tpu.trace_start"() <{level = 10 : i32, message = "bqd,bkd->bqk"}> : () -> ()
    %cst_174 = arith.constant dense<0.000000e+00> : vector<2x8x8xf32>
    %239 = tpu.matmul %236, %237, %cst_174 {dimension_numbers = #tpu.dot_dimension_numbers<[2], [2], [1], [1], [0, 0, 0, 1, 1, 1], [0], [0]>} : vector<2x8x8xf32>, vector<2x8x8xf32>, vector<2x8x8xf32> -> vector<2x8x8xf32>
    "tpu.trace_stop"() : () -> ()
    %cst_175 = arith.constant 0.353553385 : f32
    %240 = vector.broadcast %cst_175 : f32 to vector<2x8x8xf32>
    %241 = arith.mulf %239, %240 : vector<2x8x8xf32>
    %cst_176 = arith.constant dense<0xFF800000> : vector<2x8xf32>
    %242 = vector.multi_reduction <maximumf>, %241, %cst_176 [2] : vector<2x8x8xf32> to vector<2x8xf32>
    %243 = vector.shape_cast %242 : vector<2x8xf32> to vector<2x8x1xf32>
    %244 = vector.broadcast %243 : vector<2x8x1xf32> to vector<2x8x8xf32>
    %245 = arith.subf %241, %244 : vector<2x8x8xf32>
    %246 = math.exp %245 : vector<2x8x8xf32>
    %cst_177 = arith.constant dense<0.000000e+00> : vector<2x8xf32>
    %247 = vector.multi_reduction <add>, %246, %cst_177 [2] : vector<2x8x8xf32> to vector<2x8xf32>
    %248 = vector.shape_cast %247 : vector<2x8xf32> to vector<2x8x1xf32>
    %249 = tpu.reciprocal %248 {approx = true} : vector<2x8x1xf32> -> vector<2x8x1xf32>
    %250 = vector.broadcast %249 : vector<2x8x1xf32> to vector<2x8x8xf32>
    %251 = arith.mulf %246, %250 : vector<2x8x8xf32>
    "tpu.trace_start"() <{level = 10 : i32, message = "bqk,bkd->bqd"}> : () -> ()
    %cst_178 = arith.constant dense<0.000000e+00> : vector<2x8x8xf32>
    %252 = tpu.matmul %251, %238, %cst_178 {dimension_numbers = #tpu.dot_dimension_numbers<[2], [1], [1], [2], [0, 0, 0, 1, 1, 2], [0], [0]>} : vector<2x8x8xf32>, vector<2x8x8xf32>, vector<2x8x8xf32> -> vector<2x8x8xf32>
    "tpu.trace_stop"() : () -> ()
    %253 = vector.shape_cast %252 : vector<2x8x8xf32> to vector<16x8xf32>
    %254 = arith.truncf %253 : vector<16x8xf32> to vector<16x8xbf16>
    %c0_179 = arith.constant 0 : index
    %c4_180 = arith.constant 4 : index
    %c0_181 = arith.constant 0 : index
    %c0_182 = arith.constant 0 : index
    %255 = vector.load %arg6[%c0_179, %c4_180, %c0_181, %c0_182] : memref<1x8x8x32xbf16, #tpu.memory_space<vmem>>, vector<1x1x8x32xbf16>
    %256 = vector.shape_cast %255 : vector<1x1x8x32xbf16> to vector<8x32xbf16>
    %cst_183 = arith.constant dense<0.000000e+00> : vector<16x32xf32>
    %257 = tpu.matmul %254, %256, %cst_183 {dimension_numbers = #tpu.dot_dimension_numbers<[1], [0], [0], [1], [0, 0, 1, 1], [], []>} : vector<16x8xbf16>, vector<8x32xbf16>, vector<16x32xf32> -> vector<16x32xf32>
    %258 = arith.addf %214, %257 : vector<16x32xf32>
    %c0_184 = arith.constant 0 : index
    %c13 = arith.constant 13 : index
    %c0_185 = arith.constant 0 : index
    %c0_186 = arith.constant 0 : index
    %259 = vector.load %arg4[%c0_184, %c13, %c0_185, %c0_186] : memref<1x16x32x8xbf16, #tpu.memory_space<vmem>>, vector<1x1x32x8xbf16>
    %260 = vector.shape_cast %259 : vector<1x1x32x8xbf16> to vector<32x8xbf16>
    %cst_187 = arith.constant dense<0.000000e+00> : vector<16x8xf32>
    %261 = tpu.matmul %213, %260, %cst_187 {dimension_numbers = #tpu.dot_dimension_numbers<[1], [0], [0], [1], [0, 0, 1, 1], [], []>} : vector<16x32xbf16>, vector<32x8xbf16>, vector<16x8xf32> -> vector<16x8xf32>
    %c0_188 = arith.constant 0 : index
    %c13_189 = arith.constant 13 : index
    %c0_190 = arith.constant 0 : index
    %c0_191 = arith.constant 0 : index
    %262 = vector.load %arg9[%c0_188, %c13_189, %c0_190, %c0_191] : memref<1x24x1x8xf32, #tpu.memory_space<vmem>>, vector<1x1x1x8xf32>
    %263 = vector.shape_cast %262 : vector<1x1x1x8xf32> to vector<1x8xf32>
    %264 = vector.broadcast %263 : vector<1x8xf32> to vector<16x8xf32>
    %265 = arith.addf %261, %264 : vector<16x8xf32>
    %c0_192 = arith.constant 0 : index
    %c1_193 = arith.constant 1 : index
    %c0_194 = arith.constant 0 : index
    %c0_195 = arith.constant 0 : index
    %266 = vector.load %arg5[%c0_192, %c1_193, %c0_194, %c0_195] : memref<1x8x32x8xbf16, #tpu.memory_space<vmem>>, vector<1x1x32x8xbf16>
    %267 = vector.shape_cast %266 : vector<1x1x32x8xbf16> to vector<32x8xbf16>
    %cst_196 = arith.constant dense<0.000000e+00> : vector<16x8xf32>
    %268 = tpu.matmul %4, %267, %cst_196 {dimension_numbers = #tpu.dot_dimension_numbers<[1], [0], [0], [1], [0, 0, 1, 1], [], []>} : vector<16x32xbf16>, vector<32x8xbf16>, vector<16x8xf32> -> vector<16x8xf32>
    %c0_197 = arith.constant 0 : index
    %c17 = arith.constant 17 : index
    %c0_198 = arith.constant 0 : index
    %c0_199 = arith.constant 0 : index
    %269 = vector.load %arg9[%c0_197, %c17, %c0_198, %c0_199] : memref<1x24x1x8xf32, #tpu.memory_space<vmem>>, vector<1x1x1x8xf32>
    %270 = vector.shape_cast %269 : vector<1x1x1x8xf32> to vector<1x8xf32>
    %271 = vector.broadcast %270 : vector<1x8xf32> to vector<16x8xf32>
    %272 = arith.addf %268, %271 : vector<16x8xf32>
    %c0_200 = arith.constant 0 : index
    %c5_201 = arith.constant 5 : index
    %c0_202 = arith.constant 0 : index
    %c0_203 = arith.constant 0 : index
    %273 = vector.load %arg5[%c0_200, %c5_201, %c0_202, %c0_203] : memref<1x8x32x8xbf16, #tpu.memory_space<vmem>>, vector<1x1x32x8xbf16>
    %274 = vector.shape_cast %273 : vector<1x1x32x8xbf16> to vector<32x8xbf16>
    %cst_204 = arith.constant dense<0.000000e+00> : vector<16x8xf32>
    %275 = tpu.matmul %4, %274, %cst_204 {dimension_numbers = #tpu.dot_dimension_numbers<[1], [0], [0], [1], [0, 0, 1, 1], [], []>} : vector<16x32xbf16>, vector<32x8xbf16>, vector<16x8xf32> -> vector<16x8xf32>
    %c0_205 = arith.constant 0 : index
    %c21 = arith.constant 21 : index
    %c0_206 = arith.constant 0 : index
    %c0_207 = arith.constant 0 : index
    %276 = vector.load %arg9[%c0_205, %c21, %c0_206, %c0_207] : memref<1x24x1x8xf32, #tpu.memory_space<vmem>>, vector<1x1x1x8xf32>
    %277 = vector.shape_cast %276 : vector<1x1x1x8xf32> to vector<1x8xf32>
    %278 = vector.broadcast %277 : vector<1x8xf32> to vector<16x8xf32>
    %279 = arith.addf %275, %278 : vector<16x8xf32>
    %280 = vector.shape_cast %265 : vector<16x8xf32> to vector<2x8x8xf32>
    %281 = vector.shape_cast %272 : vector<16x8xf32> to vector<2x8x8xf32>
    %282 = vector.shape_cast %279 : vector<16x8xf32> to vector<2x8x8xf32>
    "tpu.trace_start"() <{level = 10 : i32, message = "bqd,bkd->bqk"}> : () -> ()
    %cst_208 = arith.constant dense<0.000000e+00> : vector<2x8x8xf32>
    %283 = tpu.matmul %280, %281, %cst_208 {dimension_numbers = #tpu.dot_dimension_numbers<[2], [2], [1], [1], [0, 0, 0, 1, 1, 1], [0], [0]>} : vector<2x8x8xf32>, vector<2x8x8xf32>, vector<2x8x8xf32> -> vector<2x8x8xf32>
    "tpu.trace_stop"() : () -> ()
    %cst_209 = arith.constant 0.353553385 : f32
    %284 = vector.broadcast %cst_209 : f32 to vector<2x8x8xf32>
    %285 = arith.mulf %283, %284 : vector<2x8x8xf32>
    %cst_210 = arith.constant dense<0xFF800000> : vector<2x8xf32>
    %286 = vector.multi_reduction <maximumf>, %285, %cst_210 [2] : vector<2x8x8xf32> to vector<2x8xf32>
    %287 = vector.shape_cast %286 : vector<2x8xf32> to vector<2x8x1xf32>
    %288 = vector.broadcast %287 : vector<2x8x1xf32> to vector<2x8x8xf32>
    %289 = arith.subf %285, %288 : vector<2x8x8xf32>
    %290 = math.exp %289 : vector<2x8x8xf32>
    %cst_211 = arith.constant dense<0.000000e+00> : vector<2x8xf32>
    %291 = vector.multi_reduction <add>, %290, %cst_211 [2] : vector<2x8x8xf32> to vector<2x8xf32>
    %292 = vector.shape_cast %291 : vector<2x8xf32> to vector<2x8x1xf32>
    %293 = tpu.reciprocal %292 {approx = true} : vector<2x8x1xf32> -> vector<2x8x1xf32>
    %294 = vector.broadcast %293 : vector<2x8x1xf32> to vector<2x8x8xf32>
    %295 = arith.mulf %290, %294 : vector<2x8x8xf32>
    "tpu.trace_start"() <{level = 10 : i32, message = "bqk,bkd->bqd"}> : () -> ()
    %cst_212 = arith.constant dense<0.000000e+00> : vector<2x8x8xf32>
    %296 = tpu.matmul %295, %282, %cst_212 {dimension_numbers = #tpu.dot_dimension_numbers<[2], [1], [1], [2], [0, 0, 0, 1, 1, 2], [0], [0]>} : vector<2x8x8xf32>, vector<2x8x8xf32>, vector<2x8x8xf32> -> vector<2x8x8xf32>
    "tpu.trace_stop"() : () -> ()
    %297 = vector.shape_cast %296 : vector<2x8x8xf32> to vector<16x8xf32>
    %298 = arith.truncf %297 : vector<16x8xf32> to vector<16x8xbf16>
    %c0_213 = arith.constant 0 : index
    %c5_214 = arith.constant 5 : index
    %c0_215 = arith.constant 0 : index
    %c0_216 = arith.constant 0 : index
    %299 = vector.load %arg6[%c0_213, %c5_214, %c0_215, %c0_216] : memref<1x8x8x32xbf16, #tpu.memory_space<vmem>>, vector<1x1x8x32xbf16>
    %300 = vector.shape_cast %299 : vector<1x1x8x32xbf16> to vector<8x32xbf16>
    %cst_217 = arith.constant dense<0.000000e+00> : vector<16x32xf32>
    %301 = tpu.matmul %298, %300, %cst_217 {dimension_numbers = #tpu.dot_dimension_numbers<[1], [0], [0], [1], [0, 0, 1, 1], [], []>} : vector<16x8xbf16>, vector<8x32xbf16>, vector<16x32xf32> -> vector<16x32xf32>
    %302 = arith.addf %258, %301 : vector<16x32xf32>
    %c0_218 = arith.constant 0 : index
    %c14 = arith.constant 14 : index
    %c0_219 = arith.constant 0 : index
    %c0_220 = arith.constant 0 : index
    %303 = vector.load %arg4[%c0_218, %c14, %c0_219, %c0_220] : memref<1x16x32x8xbf16, #tpu.memory_space<vmem>>, vector<1x1x32x8xbf16>
    %304 = vector.shape_cast %303 : vector<1x1x32x8xbf16> to vector<32x8xbf16>
    %cst_221 = arith.constant dense<0.000000e+00> : vector<16x8xf32>
    %305 = tpu.matmul %213, %304, %cst_221 {dimension_numbers = #tpu.dot_dimension_numbers<[1], [0], [0], [1], [0, 0, 1, 1], [], []>} : vector<16x32xbf16>, vector<32x8xbf16>, vector<16x8xf32> -> vector<16x8xf32>
    %c0_222 = arith.constant 0 : index
    %c14_223 = arith.constant 14 : index
    %c0_224 = arith.constant 0 : index
    %c0_225 = arith.constant 0 : index
    %306 = vector.load %arg9[%c0_222, %c14_223, %c0_224, %c0_225] : memref<1x24x1x8xf32, #tpu.memory_space<vmem>>, vector<1x1x1x8xf32>
    %307 = vector.shape_cast %306 : vector<1x1x1x8xf32> to vector<1x8xf32>
    %308 = vector.broadcast %307 : vector<1x8xf32> to vector<16x8xf32>
    %309 = arith.addf %305, %308 : vector<16x8xf32>
    %c0_226 = arith.constant 0 : index
    %c2_227 = arith.constant 2 : index
    %c0_228 = arith.constant 0 : index
    %c0_229 = arith.constant 0 : index
    %310 = vector.load %arg5[%c0_226, %c2_227, %c0_228, %c0_229] : memref<1x8x32x8xbf16, #tpu.memory_space<vmem>>, vector<1x1x32x8xbf16>
    %311 = vector.shape_cast %310 : vector<1x1x32x8xbf16> to vector<32x8xbf16>
    %cst_230 = arith.constant dense<0.000000e+00> : vector<16x8xf32>
    %312 = tpu.matmul %4, %311, %cst_230 {dimension_numbers = #tpu.dot_dimension_numbers<[1], [0], [0], [1], [0, 0, 1, 1], [], []>} : vector<16x32xbf16>, vector<32x8xbf16>, vector<16x8xf32> -> vector<16x8xf32>
    %c0_231 = arith.constant 0 : index
    %c18 = arith.constant 18 : index
    %c0_232 = arith.constant 0 : index
    %c0_233 = arith.constant 0 : index
    %313 = vector.load %arg9[%c0_231, %c18, %c0_232, %c0_233] : memref<1x24x1x8xf32, #tpu.memory_space<vmem>>, vector<1x1x1x8xf32>
    %314 = vector.shape_cast %313 : vector<1x1x1x8xf32> to vector<1x8xf32>
    %315 = vector.broadcast %314 : vector<1x8xf32> to vector<16x8xf32>
    %316 = arith.addf %312, %315 : vector<16x8xf32>
    %c0_234 = arith.constant 0 : index
    %c6_235 = arith.constant 6 : index
    %c0_236 = arith.constant 0 : index
    %c0_237 = arith.constant 0 : index
    %317 = vector.load %arg5[%c0_234, %c6_235, %c0_236, %c0_237] : memref<1x8x32x8xbf16, #tpu.memory_space<vmem>>, vector<1x1x32x8xbf16>
    %318 = vector.shape_cast %317 : vector<1x1x32x8xbf16> to vector<32x8xbf16>
    %cst_238 = arith.constant dense<0.000000e+00> : vector<16x8xf32>
    %319 = tpu.matmul %4, %318, %cst_238 {dimension_numbers = #tpu.dot_dimension_numbers<[1], [0], [0], [1], [0, 0, 1, 1], [], []>} : vector<16x32xbf16>, vector<32x8xbf16>, vector<16x8xf32> -> vector<16x8xf32>
    %c0_239 = arith.constant 0 : index
    %c22 = arith.constant 22 : index
    %c0_240 = arith.constant 0 : index
    %c0_241 = arith.constant 0 : index
    %320 = vector.load %arg9[%c0_239, %c22, %c0_240, %c0_241] : memref<1x24x1x8xf32, #tpu.memory_space<vmem>>, vector<1x1x1x8xf32>
    %321 = vector.shape_cast %320 : vector<1x1x1x8xf32> to vector<1x8xf32>
    %322 = vector.broadcast %321 : vector<1x8xf32> to vector<16x8xf32>
    %323 = arith.addf %319, %322 : vector<16x8xf32>
    %324 = vector.shape_cast %309 : vector<16x8xf32> to vector<2x8x8xf32>
    %325 = vector.shape_cast %316 : vector<16x8xf32> to vector<2x8x8xf32>
    %326 = vector.shape_cast %323 : vector<16x8xf32> to vector<2x8x8xf32>
    "tpu.trace_start"() <{level = 10 : i32, message = "bqd,bkd->bqk"}> : () -> ()
    %cst_242 = arith.constant dense<0.000000e+00> : vector<2x8x8xf32>
    %327 = tpu.matmul %324, %325, %cst_242 {dimension_numbers = #tpu.dot_dimension_numbers<[2], [2], [1], [1], [0, 0, 0, 1, 1, 1], [0], [0]>} : vector<2x8x8xf32>, vector<2x8x8xf32>, vector<2x8x8xf32> -> vector<2x8x8xf32>
    "tpu.trace_stop"() : () -> ()
    %cst_243 = arith.constant 0.353553385 : f32
    %328 = vector.broadcast %cst_243 : f32 to vector<2x8x8xf32>
    %329 = arith.mulf %327, %328 : vector<2x8x8xf32>
    %cst_244 = arith.constant dense<0xFF800000> : vector<2x8xf32>
    %330 = vector.multi_reduction <maximumf>, %329, %cst_244 [2] : vector<2x8x8xf32> to vector<2x8xf32>
    %331 = vector.shape_cast %330 : vector<2x8xf32> to vector<2x8x1xf32>
    %332 = vector.broadcast %331 : vector<2x8x1xf32> to vector<2x8x8xf32>
    %333 = arith.subf %329, %332 : vector<2x8x8xf32>
    %334 = math.exp %333 : vector<2x8x8xf32>
    %cst_245 = arith.constant dense<0.000000e+00> : vector<2x8xf32>
    %335 = vector.multi_reduction <add>, %334, %cst_245 [2] : vector<2x8x8xf32> to vector<2x8xf32>
    %336 = vector.shape_cast %335 : vector<2x8xf32> to vector<2x8x1xf32>
    %337 = tpu.reciprocal %336 {approx = true} : vector<2x8x1xf32> -> vector<2x8x1xf32>
    %338 = vector.broadcast %337 : vector<2x8x1xf32> to vector<2x8x8xf32>
    %339 = arith.mulf %334, %338 : vector<2x8x8xf32>
    "tpu.trace_start"() <{level = 10 : i32, message = "bqk,bkd->bqd"}> : () -> ()
    %cst_246 = arith.constant dense<0.000000e+00> : vector<2x8x8xf32>
    %340 = tpu.matmul %339, %326, %cst_246 {dimension_numbers = #tpu.dot_dimension_numbers<[2], [1], [1], [2], [0, 0, 0, 1, 1, 2], [0], [0]>} : vector<2x8x8xf32>, vector<2x8x8xf32>, vector<2x8x8xf32> -> vector<2x8x8xf32>
    "tpu.trace_stop"() : () -> ()
    %341 = vector.shape_cast %340 : vector<2x8x8xf32> to vector<16x8xf32>
    %342 = arith.truncf %341 : vector<16x8xf32> to vector<16x8xbf16>
    %c0_247 = arith.constant 0 : index
    %c6_248 = arith.constant 6 : index
    %c0_249 = arith.constant 0 : index
    %c0_250 = arith.constant 0 : index
    %343 = vector.load %arg6[%c0_247, %c6_248, %c0_249, %c0_250] : memref<1x8x8x32xbf16, #tpu.memory_space<vmem>>, vector<1x1x8x32xbf16>
    %344 = vector.shape_cast %343 : vector<1x1x8x32xbf16> to vector<8x32xbf16>
    %cst_251 = arith.constant dense<0.000000e+00> : vector<16x32xf32>
    %345 = tpu.matmul %342, %344, %cst_251 {dimension_numbers = #tpu.dot_dimension_numbers<[1], [0], [0], [1], [0, 0, 1, 1], [], []>} : vector<16x8xbf16>, vector<8x32xbf16>, vector<16x32xf32> -> vector<16x32xf32>
    %346 = arith.addf %302, %345 : vector<16x32xf32>
    %c0_252 = arith.constant 0 : index
    %c15 = arith.constant 15 : index
    %c0_253 = arith.constant 0 : index
    %c0_254 = arith.constant 0 : index
    %347 = vector.load %arg4[%c0_252, %c15, %c0_253, %c0_254] : memref<1x16x32x8xbf16, #tpu.memory_space<vmem>>, vector<1x1x32x8xbf16>
    %348 = vector.shape_cast %347 : vector<1x1x32x8xbf16> to vector<32x8xbf16>
    %cst_255 = arith.constant dense<0.000000e+00> : vector<16x8xf32>
    %349 = tpu.matmul %213, %348, %cst_255 {dimension_numbers = #tpu.dot_dimension_numbers<[1], [0], [0], [1], [0, 0, 1, 1], [], []>} : vector<16x32xbf16>, vector<32x8xbf16>, vector<16x8xf32> -> vector<16x8xf32>
    %c0_256 = arith.constant 0 : index
    %c15_257 = arith.constant 15 : index
    %c0_258 = arith.constant 0 : index
    %c0_259 = arith.constant 0 : index
    %350 = vector.load %arg9[%c0_256, %c15_257, %c0_258, %c0_259] : memref<1x24x1x8xf32, #tpu.memory_space<vmem>>, vector<1x1x1x8xf32>
    %351 = vector.shape_cast %350 : vector<1x1x1x8xf32> to vector<1x8xf32>
    %352 = vector.broadcast %351 : vector<1x8xf32> to vector<16x8xf32>
    %353 = arith.addf %349, %352 : vector<16x8xf32>
    %c0_260 = arith.constant 0 : index
    %c3_261 = arith.constant 3 : index
    %c0_262 = arith.constant 0 : index
    %c0_263 = arith.constant 0 : index
    %354 = vector.load %arg5[%c0_260, %c3_261, %c0_262, %c0_263] : memref<1x8x32x8xbf16, #tpu.memory_space<vmem>>, vector<1x1x32x8xbf16>
    %355 = vector.shape_cast %354 : vector<1x1x32x8xbf16> to vector<32x8xbf16>
    %cst_264 = arith.constant dense<0.000000e+00> : vector<16x8xf32>
    %356 = tpu.matmul %4, %355, %cst_264 {dimension_numbers = #tpu.dot_dimension_numbers<[1], [0], [0], [1], [0, 0, 1, 1], [], []>} : vector<16x32xbf16>, vector<32x8xbf16>, vector<16x8xf32> -> vector<16x8xf32>
    %c0_265 = arith.constant 0 : index
    %c19 = arith.constant 19 : index
    %c0_266 = arith.constant 0 : index
    %c0_267 = arith.constant 0 : index
    %357 = vector.load %arg9[%c0_265, %c19, %c0_266, %c0_267] : memref<1x24x1x8xf32, #tpu.memory_space<vmem>>, vector<1x1x1x8xf32>
    %358 = vector.shape_cast %357 : vector<1x1x1x8xf32> to vector<1x8xf32>
    %359 = vector.broadcast %358 : vector<1x8xf32> to vector<16x8xf32>
    %360 = arith.addf %356, %359 : vector<16x8xf32>
    %c0_268 = arith.constant 0 : index
    %c7_269 = arith.constant 7 : index
    %c0_270 = arith.constant 0 : index
    %c0_271 = arith.constant 0 : index
    %361 = vector.load %arg5[%c0_268, %c7_269, %c0_270, %c0_271] : memref<1x8x32x8xbf16, #tpu.memory_space<vmem>>, vector<1x1x32x8xbf16>
    %362 = vector.shape_cast %361 : vector<1x1x32x8xbf16> to vector<32x8xbf16>
    %cst_272 = arith.constant dense<0.000000e+00> : vector<16x8xf32>
    %363 = tpu.matmul %4, %362, %cst_272 {dimension_numbers = #tpu.dot_dimension_numbers<[1], [0], [0], [1], [0, 0, 1, 1], [], []>} : vector<16x32xbf16>, vector<32x8xbf16>, vector<16x8xf32> -> vector<16x8xf32>
    %c0_273 = arith.constant 0 : index
    %c23 = arith.constant 23 : index
    %c0_274 = arith.constant 0 : index
    %c0_275 = arith.constant 0 : index
    %364 = vector.load %arg9[%c0_273, %c23, %c0_274, %c0_275] : memref<1x24x1x8xf32, #tpu.memory_space<vmem>>, vector<1x1x1x8xf32>
    %365 = vector.shape_cast %364 : vector<1x1x1x8xf32> to vector<1x8xf32>
    %366 = vector.broadcast %365 : vector<1x8xf32> to vector<16x8xf32>
    %367 = arith.addf %363, %366 : vector<16x8xf32>
    %368 = vector.shape_cast %353 : vector<16x8xf32> to vector<2x8x8xf32>
    %369 = vector.shape_cast %360 : vector<16x8xf32> to vector<2x8x8xf32>
    %370 = vector.shape_cast %367 : vector<16x8xf32> to vector<2x8x8xf32>
    "tpu.trace_start"() <{level = 10 : i32, message = "bqd,bkd->bqk"}> : () -> ()
    %cst_276 = arith.constant dense<0.000000e+00> : vector<2x8x8xf32>
    %371 = tpu.matmul %368, %369, %cst_276 {dimension_numbers = #tpu.dot_dimension_numbers<[2], [2], [1], [1], [0, 0, 0, 1, 1, 1], [0], [0]>} : vector<2x8x8xf32>, vector<2x8x8xf32>, vector<2x8x8xf32> -> vector<2x8x8xf32>
    "tpu.trace_stop"() : () -> ()
    %cst_277 = arith.constant 0.353553385 : f32
    %372 = vector.broadcast %cst_277 : f32 to vector<2x8x8xf32>
    %373 = arith.mulf %371, %372 : vector<2x8x8xf32>
    %cst_278 = arith.constant dense<0xFF800000> : vector<2x8xf32>
    %374 = vector.multi_reduction <maximumf>, %373, %cst_278 [2] : vector<2x8x8xf32> to vector<2x8xf32>
    %375 = vector.shape_cast %374 : vector<2x8xf32> to vector<2x8x1xf32>
    %376 = vector.broadcast %375 : vector<2x8x1xf32> to vector<2x8x8xf32>
    %377 = arith.subf %373, %376 : vector<2x8x8xf32>
    %378 = math.exp %377 : vector<2x8x8xf32>
    %cst_279 = arith.constant dense<0.000000e+00> : vector<2x8xf32>
    %379 = vector.multi_reduction <add>, %378, %cst_279 [2] : vector<2x8x8xf32> to vector<2x8xf32>
    %380 = vector.shape_cast %379 : vector<2x8xf32> to vector<2x8x1xf32>
    %381 = tpu.reciprocal %380 {approx = true} : vector<2x8x1xf32> -> vector<2x8x1xf32>
    %382 = vector.broadcast %381 : vector<2x8x1xf32> to vector<2x8x8xf32>
    %383 = arith.mulf %378, %382 : vector<2x8x8xf32>
    "tpu.trace_start"() <{level = 10 : i32, message = "bqk,bkd->bqd"}> : () -> ()
    %cst_280 = arith.constant dense<0.000000e+00> : vector<2x8x8xf32>
    %384 = tpu.matmul %383, %370, %cst_280 {dimension_numbers = #tpu.dot_dimension_numbers<[2], [1], [1], [2], [0, 0, 0, 1, 1, 2], [0], [0]>} : vector<2x8x8xf32>, vector<2x8x8xf32>, vector<2x8x8xf32> -> vector<2x8x8xf32>
    "tpu.trace_stop"() : () -> ()
    %385 = vector.shape_cast %384 : vector<2x8x8xf32> to vector<16x8xf32>
    %386 = arith.truncf %385 : vector<16x8xf32> to vector<16x8xbf16>
    %c0_281 = arith.constant 0 : index
    %c7_282 = arith.constant 7 : index
    %c0_283 = arith.constant 0 : index
    %c0_284 = arith.constant 0 : index
    %387 = vector.load %arg6[%c0_281, %c7_282, %c0_283, %c0_284] : memref<1x8x8x32xbf16, #tpu.memory_space<vmem>>, vector<1x1x8x32xbf16>
    %388 = vector.shape_cast %387 : vector<1x1x8x32xbf16> to vector<8x32xbf16>
    %cst_285 = arith.constant dense<0.000000e+00> : vector<16x32xf32>
    %389 = tpu.matmul %386, %388, %cst_285 {dimension_numbers = #tpu.dot_dimension_numbers<[1], [0], [0], [1], [0, 0, 1, 1], [], []>} : vector<16x8xbf16>, vector<8x32xbf16>, vector<16x32xf32> -> vector<16x32xf32>
    %390 = arith.addf %346, %389 : vector<16x32xf32>
    %391 = vector.extract_strided_slice %6 {offsets = [3, 0], sizes = [1, 32], strides = [1, 1]} : vector<9x32xf32> to vector<1x32xf32>
    %392 = vector.broadcast %391 : vector<1x32xf32> to vector<16x32xf32>
    %393 = arith.addf %390, %392 : vector<16x32xf32>
    %394 = arith.addf %393, %212 : vector<16x32xf32>
    %395 = vector.extract_strided_slice %6 {offsets = [4, 0], sizes = [1, 32], strides = [1, 1]} : vector<9x32xf32> to vector<1x32xf32>
    %396 = vector.extract_strided_slice %6 {offsets = [5, 0], sizes = [1, 32], strides = [1, 1]} : vector<9x32xf32> to vector<1x32xf32>
    %cst_286 = arith.constant dense<0.000000e+00> : vector<16xf32>
    %397 = vector.multi_reduction <add>, %394, %cst_286 [1] : vector<16x32xf32> to vector<16xf32>
    %398 = vector.shape_cast %397 : vector<16xf32> to vector<16x1xf32>
    %cst_287 = arith.constant 3.200000e+01 : f32
    %399 = vector.broadcast %cst_287 : f32 to vector<16x1xf32>
    %400 = arith.divf %398, %399 : vector<16x1xf32>
    %401 = vector.broadcast %400 : vector<16x1xf32> to vector<16x32xf32>
    %402 = arith.subf %394, %401 : vector<16x32xf32>
    %403 = arith.mulf %402, %402 : vector<16x32xf32>
    %cst_288 = arith.constant dense<0.000000e+00> : vector<16xf32>
    %404 = vector.multi_reduction <add>, %403, %cst_288 [1] : vector<16x32xf32> to vector<16xf32>
    %405 = vector.shape_cast %404 : vector<16xf32> to vector<16x1xf32>
    %cst_289 = arith.constant 3.200000e+01 : f32
    %406 = vector.broadcast %cst_289 : f32 to vector<16x1xf32>
    %407 = arith.divf %405, %406 : vector<16x1xf32>
    %408 = vector.broadcast %400 : vector<16x1xf32> to vector<16x32xf32>
    %409 = arith.subf %394, %408 : vector<16x32xf32>
    %cst_290 = arith.constant 9.99999996E-13 : f32
    %410 = vector.broadcast %cst_290 : f32 to vector<16x1xf32>
    %411 = arith.addf %407, %410 : vector<16x1xf32>
    %412 = math.rsqrt %411 : vector<16x1xf32>
    %413 = vector.broadcast %412 : vector<16x1xf32> to vector<16x32xf32>
    %414 = arith.mulf %409, %413 : vector<16x32xf32>
    %415 = vector.broadcast %395 : vector<1x32xf32> to vector<16x32xf32>
    %416 = arith.mulf %414, %415 : vector<16x32xf32>
    %417 = vector.broadcast %396 : vector<1x32xf32> to vector<16x32xf32>
    %418 = arith.addf %416, %417 : vector<16x32xf32>
    %419 = arith.truncf %418 : vector<16x32xf32> to vector<16x32xbf16>
    %c0_291 = arith.constant 0 : index
    %c0_292 = arith.constant 0 : index
    %c0_293 = arith.constant 0 : index
    %420 = vector.load %arg7[%c0_291, %c0_292, %c0_293] : memref<1x32x64xbf16, #tpu.memory_space<vmem>>, vector<1x32x64xbf16>
    %421 = vector.shape_cast %420 : vector<1x32x64xbf16> to vector<32x64xbf16>
    %cst_294 = arith.constant dense<0.000000e+00> : vector<16x64xf32>
    %422 = tpu.matmul %419, %421, %cst_294 {dimension_numbers = #tpu.dot_dimension_numbers<[1], [0], [0], [1], [0, 0, 1, 1], [], []>} : vector<16x32xbf16>, vector<32x64xbf16>, vector<16x64xf32> -> vector<16x64xf32>
    %c0_295 = arith.constant 0 : index
    %c0_296 = arith.constant 0 : index
    %c0_297 = arith.constant 0 : index
    %423 = vector.load %arg11[%c0_295, %c0_296, %c0_297] : memref<1x1x64xf32, #tpu.memory_space<vmem>>, vector<1x1x64xf32>
    %424 = vector.shape_cast %423 : vector<1x1x64xf32> to vector<1x64xf32>
    %425 = vector.broadcast %424 : vector<1x64xf32> to vector<16x64xf32>
    %426 = arith.addf %422, %425 : vector<16x64xf32>
    %cst_298 = arith.constant 5.000000e-01 : f32
    %427 = vector.broadcast %cst_298 : f32 to vector<16x64xf32>
    %428 = arith.mulf %427, %426 : vector<16x64xf32>
    %cst_299 = arith.constant 0.707106769 : f32
    %429 = vector.broadcast %cst_299 : f32 to vector<16x64xf32>
    %430 = arith.mulf %426, %429 : vector<16x64xf32>
    %cst_300 = arith.constant 0.000000e+00 : f32
    %431 = vector.broadcast %cst_300 : f32 to vector<16x64xf32>
    %432 = arith.cmpf oge, %430, %431 : vector<16x64xf32>
    %cst_301 = arith.constant 1.000000e+00 : f32
    %cst_302 = arith.constant -1.000000e+00 : f32
    %433 = vector.broadcast %cst_301 : f32 to vector<16x64xf32>
    %434 = vector.broadcast %cst_302 : f32 to vector<16x64xf32>
    %435 = arith.select %432, %433, %434 : vector<16x64xi1>, vector<16x64xf32>
    %436 = math.absf %430 : vector<16x64xf32>
    %cst_303 = arith.constant 0.327591091 : f32
    %437 = vector.broadcast %cst_303 : f32 to vector<16x64xf32>
    %438 = arith.mulf %437, %436 : vector<16x64xf32>
    %cst_304 = arith.constant 1.000000e+00 : f32
    %439 = vector.broadcast %cst_304 : f32 to vector<16x64xf32>
    %440 = arith.addf %439, %438 : vector<16x64xf32>
    %441 = tpu.reciprocal %440 {approx = true} : vector<16x64xf32> -> vector<16x64xf32>
    %cst_305 = arith.constant 1.06140542 : f32
    %442 = vector.broadcast %cst_305 : f32 to vector<16x64xf32>
    %443 = arith.mulf %442, %441 : vector<16x64xf32>
    %cst_306 = arith.constant -1.45315206 : f32
    %444 = vector.broadcast %cst_306 : f32 to vector<16x64xf32>
    %445 = arith.addf %443, %444 : vector<16x64xf32>
    %446 = arith.mulf %445, %441 : vector<16x64xf32>
    %cst_307 = arith.constant 1.42141378 : f32
    %447 = vector.broadcast %cst_307 : f32 to vector<16x64xf32>
    %448 = arith.addf %446, %447 : vector<16x64xf32>
    %449 = arith.mulf %448, %441 : vector<16x64xf32>
    %cst_308 = arith.constant -0.284496725 : f32
    %450 = vector.broadcast %cst_308 : f32 to vector<16x64xf32>
    %451 = arith.addf %449, %450 : vector<16x64xf32>
    %452 = arith.mulf %451, %441 : vector<16x64xf32>
    %cst_309 = arith.constant 0.254829586 : f32
    %453 = vector.broadcast %cst_309 : f32 to vector<16x64xf32>
    %454 = arith.addf %452, %453 : vector<16x64xf32>
    %455 = arith.mulf %454, %441 : vector<16x64xf32>
    %cst_310 = arith.constant 0.000000e+00 : f32
    %456 = vector.broadcast %cst_310 : f32 to vector<16x64xf32>
    %457 = arith.subf %456, %436 : vector<16x64xf32>
    %458 = arith.mulf %457, %436 : vector<16x64xf32>
    %459 = math.exp %458 : vector<16x64xf32>
    %460 = arith.mulf %455, %459 : vector<16x64xf32>
    %cst_311 = arith.constant 1.000000e+00 : f32
    %461 = vector.broadcast %cst_311 : f32 to vector<16x64xf32>
    %462 = arith.subf %461, %460 : vector<16x64xf32>
    %463 = arith.mulf %435, %462 : vector<16x64xf32>
    %cst_312 = arith.constant 1.000000e+00 : f32
    %464 = vector.broadcast %cst_312 : f32 to vector<16x64xf32>
    %465 = arith.addf %464, %463 : vector<16x64xf32>
    %466 = arith.mulf %428, %465 : vector<16x64xf32>
    %467 = arith.truncf %466 : vector<16x64xf32> to vector<16x64xbf16>
    %c0_313 = arith.constant 0 : index
    %c0_314 = arith.constant 0 : index
    %c0_315 = arith.constant 0 : index
    %468 = vector.load %arg8[%c0_313, %c0_314, %c0_315] : memref<1x64x32xbf16, #tpu.memory_space<vmem>>, vector<1x64x32xbf16>
    %469 = vector.shape_cast %468 : vector<1x64x32xbf16> to vector<64x32xbf16>
    %cst_316 = arith.constant dense<0.000000e+00> : vector<16x32xf32>
    %470 = tpu.matmul %467, %469, %cst_316 {dimension_numbers = #tpu.dot_dimension_numbers<[1], [0], [0], [1], [0, 0, 1, 1], [], []>} : vector<16x64xbf16>, vector<64x32xbf16>, vector<16x32xf32> -> vector<16x32xf32>
    %471 = vector.extract_strided_slice %6 {offsets = [6, 0], sizes = [1, 32], strides = [1, 1]} : vector<9x32xf32> to vector<1x32xf32>
    %472 = vector.broadcast %471 : vector<1x32xf32> to vector<16x32xf32>
    %473 = arith.addf %470, %472 : vector<16x32xf32>
    %474 = arith.addf %473, %418 : vector<16x32xf32>
    %475 = vector.extract_strided_slice %6 {offsets = [7, 0], sizes = [1, 32], strides = [1, 1]} : vector<9x32xf32> to vector<1x32xf32>
    %476 = vector.extract_strided_slice %6 {offsets = [8, 0], sizes = [1, 32], strides = [1, 1]} : vector<9x32xf32> to vector<1x32xf32>
    %cst_317 = arith.constant dense<0.000000e+00> : vector<16xf32>
    %477 = vector.multi_reduction <add>, %474, %cst_317 [1] : vector<16x32xf32> to vector<16xf32>
    %478 = vector.shape_cast %477 : vector<16xf32> to vector<16x1xf32>
    %cst_318 = arith.constant 3.200000e+01 : f32
    %479 = vector.broadcast %cst_318 : f32 to vector<16x1xf32>
    %480 = arith.divf %478, %479 : vector<16x1xf32>
    %481 = vector.broadcast %480 : vector<16x1xf32> to vector<16x32xf32>
    %482 = arith.subf %474, %481 : vector<16x32xf32>
    %483 = arith.mulf %482, %482 : vector<16x32xf32>
    %cst_319 = arith.constant dense<0.000000e+00> : vector<16xf32>
    %484 = vector.multi_reduction <add>, %483, %cst_319 [1] : vector<16x32xf32> to vector<16xf32>
    %485 = vector.shape_cast %484 : vector<16xf32> to vector<16x1xf32>
    %cst_320 = arith.constant 3.200000e+01 : f32
    %486 = vector.broadcast %cst_320 : f32 to vector<16x1xf32>
    %487 = arith.divf %485, %486 : vector<16x1xf32>
    %488 = vector.broadcast %480 : vector<16x1xf32> to vector<16x32xf32>
    %489 = arith.subf %474, %488 : vector<16x32xf32>
    %cst_321 = arith.constant 9.99999996E-13 : f32
    %490 = vector.broadcast %cst_321 : f32 to vector<16x1xf32>
    %491 = arith.addf %487, %490 : vector<16x1xf32>
    %492 = math.rsqrt %491 : vector<16x1xf32>
    %493 = vector.broadcast %492 : vector<16x1xf32> to vector<16x32xf32>
    %494 = arith.mulf %489, %493 : vector<16x32xf32>
    %495 = vector.broadcast %475 : vector<1x32xf32> to vector<16x32xf32>
    %496 = arith.mulf %494, %495 : vector<16x32xf32>
    %497 = vector.broadcast %476 : vector<1x32xf32> to vector<16x32xf32>
    %498 = arith.addf %496, %497 : vector<16x32xf32>
    %c0_322 = arith.constant 0 : index
    %c0_323 = arith.constant 0 : index
    %499 = vector.load %arg13[%c0_322, %c0_323] : memref<16x32xf32, #tpu.memory_space<vmem>>, vector<16x32xf32>
    tpu.vector_store %arg13[%c0_322, %c0_323], %498 {strides = array<i32>} : memref<16x32xf32, #tpu.memory_space<vmem>>, vector<16x32xf32>,
    %c1_i32 = arith.constant 1 : i32
    %500 = arith.cmpi eq, %arg1, %c1_i32 : i32
    %501 = arith.extui %500 : i1 to i32
    %c0_i32_324 = arith.constant 0 : i32
    %502 = arith.cmpi ne, %501, %c0_i32_324 : i32
    scf.if %502 {
      %503 = vector.shape_cast %498 : vector<16x32xf32> to vector<2x8x32xf32>
      %c0_325 = arith.constant 0 : index
      %c0_326 = arith.constant 0 : index
      %c0_327 = arith.constant 0 : index
      %504 = vector.load %arg12[%c0_325, %c0_326, %c0_327] : memref<2x8x32xf32, #tpu.memory_space<vmem>>, vector<2x8x32xf32>
      tpu.vector_store %arg12[%c0_325, %c0_326, %c0_327], %503 {strides = array<i32>} : memref<2x8x32xf32, #tpu.memory_space<vmem>>, vector<2x8x32xf32>,
    } else {
    }
    return
  }
  func.func @transform_0(%arg0: i32, %arg1: i32) -> (i32, i32, i32) {
    %c0_i32 = arith.constant 0 : i32
    %c0_i32_0 = arith.constant 0 : i32
    %c0_i32_1 = arith.constant 0 : i32
    return %arg0, %c0_i32, %c0_i32_0 : i32, i32, i32
  }
  func.func @transform_1(%arg0: i32, %arg1: i32) -> (i32, i32, i32) {
    %c0_i32 = arith.constant 0 : i32
    %c0_i32_0 = arith.constant 0 : i32
    %c0_i32_1 = arith.constant 0 : i32
    return %arg0, %c0_i32, %c0_i32_0 : i32, i32, i32
  }
  func.func @transform_2(%arg0: i32, %arg1: i32) -> (i32, i32, i32, i32) {
    %c0_i32 = arith.constant 0 : i32
    %c0_i32_0 = arith.constant 0 : i32
    %c0_i32_1 = arith.constant 0 : i32
    %c0_i32_2 = arith.constant 0 : i32
    return %arg1, %c0_i32, %c0_i32_0, %c0_i32_1 : i32, i32, i32, i32
  }
  func.func @transform_3(%arg0: i32, %arg1: i32) -> (i32, i32, i32, i32) {
    %c0_i32 = arith.constant 0 : i32
    %c0_i32_0 = arith.constant 0 : i32
    %c0_i32_1 = arith.constant 0 : i32
    %c0_i32_2 = arith.constant 0 : i32
    return %arg1, %c0_i32, %c0_i32_0, %c0_i32_1 : i32, i32, i32, i32
  }
  func.func @transform_4(%arg0: i32, %arg1: i32) -> (i32, i32, i32, i32) {
    %c0_i32 = arith.constant 0 : i32
    %c0_i32_0 = arith.constant 0 : i32
    %c0_i32_1 = arith.constant 0 : i32
    %c0_i32_2 = arith.constant 0 : i32
    return %arg1, %c0_i32, %c0_i32_0, %c0_i32_1 : i32, i32, i32, i32
  }
  func.func @transform_5(%arg0: i32, %arg1: i32) -> (i32, i32, i32) {
    %c0_i32 = arith.constant 0 : i32
    %c0_i32_0 = arith.constant 0 : i32
    %c0_i32_1 = arith.constant 0 : i32
    return %arg1, %c0_i32, %c0_i32_0 : i32, i32, i32
  }
  func.func @transform_6(%arg0: i32, %arg1: i32) -> (i32, i32, i32) {
    %c0_i32 = arith.constant 0 : i32
    %c0_i32_0 = arith.constant 0 : i32
    %c0_i32_1 = arith.constant 0 : i32
    return %arg1, %c0_i32, %c0_i32_0 : i32, i32, i32
  }
  func.func @transform_7(%arg0: i32, %arg1: i32) -> (i32, i32, i32, i32) {
    %c0_i32 = arith.constant 0 : i32
    %c0_i32_0 = arith.constant 0 : i32
    %c0_i32_1 = arith.constant 0 : i32
    %c0_i32_2 = arith.constant 0 : i32
    return %arg1, %c0_i32, %c0_i32_0, %c0_i32_1 : i32, i32, i32, i32
  }
  func.func @transform_8(%arg0: i32, %arg1: i32) -> (i32, i32, i32) {
    %c0_i32 = arith.constant 0 : i32
    %c0_i32_0 = arith.constant 0 : i32
    %c0_i32_1 = arith.constant 0 : i32
    return %arg1, %c0_i32, %c0_i32_0 : i32, i32, i32
  }
  func.func @transform_9(%arg0: i32, %arg1: i32) -> (i32, i32, i32) {
    %c0_i32 = arith.constant 0 : i32
    %c0_i32_0 = arith.constant 0 : i32
    %c0_i32_1 = arith.constant 0 : i32
    return %arg1, %c0_i32, %c0_i32_0 : i32, i32, i32
  }
  func.func @transform_10(%arg0: i32, %arg1: i32) -> (i32, i32, i32) {
    %c0_i32 = arith.constant 0 : i32
    %c0_i32_0 = arith.constant 0 : i32
    %c0_i32_1 = arith.constant 0 : i32
    return %arg0, %c0_i32, %c0_i32_0 : i32, i32, i32
  }
}

</mosaic_0001>

<bundles_post_ra>
// kernel: tpu_custom_call.1
= control target key start
LH: loop header
LB: loop body
LE: loop exit
PB: predicated region body
PF: predicated region fallthrough
CT: control target
= control target key end

     0   :  { %s7542_s0 = inlined_call_operand.vmem [shape: f32[2,8,32], index: 0, kind: input, shape index: {}]   ;;  %s7543_s1 = inlined_call_operand.vmem [shape: f32[2,8,32], index: 1, kind: input, shape index: {}]   ;;  %s7544_s2 = inlined_call_operand.vmem [shape: bf16[2,16,32,8], index: 2, kind: input, shape index: {}]   ;;  %s7545_s3 = inlined_call_operand.vmem [shape: bf16[2,8,32,8], index: 3, kind: input, shape index: {}]   ;;  %s7546_s4 = inlined_call_operand.vmem [shape: bf16[2,8,8,32], index: 4, kind: input, shape index: {}]   ;;  %s7547_s5 = inlined_call_operand.vmem [shape: bf16[2,32,64], index: 5, kind: input, shape index: {}]   ;;  %s7548_s6 = inlined_call_operand.vmem [shape: bf16[2,64,32], index: 6, kind: input, shape index: {}]   ;;  %s7549_s7 = inlined_call_operand.vmem [shape: f32[2,24,1,8], index: 7, kind: input, shape index: {}]   ;;  %s7550_s8 = inlined_call_operand.vmem [shape: f32[2,9,32], index: 8, kind: input, shape index: {}]   ;;  %s7551_s9 = inlined_call_operand.vmem [shape: f32[2,1,64], index: 9, kind: input, shape index: {}]   ;;  %s7552_s10 = inlined_call_operand.hbm [shape: f32[2,8,32], index: 10, kind: output, shape index: {}]  }
   0x1   :  { %7554 = sst [smem:[#allocation9_spill]] %s7544_s2 }
   0x2   :  { %7555 = sst [smem:[#allocation10_spill]] %s7545_s3 }
   0x3   :  { %7556 = sst [smem:[#allocation11_spill]] %s7546_s4 }
   0x4   :  { %15 = vsyncpa [#allocation5], 0  ;;  %s6854_s13 = smov 0   ;;  %s6856_s14 = smov 0  }
   0x5   :  { %s6858_s15 = smov 0  }
   0x6 LB: > { %7557 = sst [smem:[#allocation7_spill]] %s6787_s14  ;;  %s30_s17 = sadd.s32 1, %s6787_s14  ;;  %s6791_s15 = sphi %s6858_s15, %s21_s15   ;;  %s6787_s14 = sphi %s6856_s14, %s7565_s14   ;;  %s6783_s13 = sphi %s6854_s13, %s7564_s13  }
   0x7   : > { %p31_p0 = scmp.ge.s32.totalorder %s30_s17, 2  ;;  %p5672_p1 = scmp.ge.s32.totalorder %s6791_s15, 1 }
   0x8   : > { %p414_p2 = scmp.lt.s32.totalorder %s6791_s15, 3 }
   0x9   : > { %s7567_s17 = smov (%p31_p0, %s30_s17), 0 }
   0xa   : > { %7558 = sst [smem:[#allocation8_spill]] %s7567_s17  ;;  %p415_p3 = pnand %p5672_p1, %p414_p2 }
   0xb   : > { %p501_p4 = scmp.lt.s32.totalorder (!%p415_p3), %s6783_s13, 1  ;;  %s7559_s2 = sld [smem:[#allocation9_spill]] (!%p415_p3) }
   0xc   : > { %418 = sbr.rel (%p415_p3) target bundleno = 8731 (0x221b), region = 60  ;;  %s7560_s3 = sld [smem:[#allocation10_spill]] (!%p415_p3) }
   0xd   : > { %s7561_s4 = sld [smem:[#allocation11_spill]] (!%p415_p3)  ;;  %p5685_p5 = scmp.ne.s32.totalorder (!%p415_p3), %s6783_s13, 0 }
  0x11   : > { %s6877_s18 = scalar_select %p501_p4, %s6783_s13, 1 }
  0x13   : > { %s5974_s19 = sshll.u32 %s6877_s18, 8  ;;  %s5975_s20 = sshll.u32 %s6877_s18, 7 }
  0x14   : > { %s6884_s23 = scalar_lea.vmem %s7559_s2, %s5974_s19  ;;  %s6889_s26 = scalar_lea.vmem %s7560_s3, %s5975_s20 }
  0x15   : > { %s5976_s27 = sshll.u32 %s6877_s18, 5  ;;  %s5977_s28 = sshll.u32 %s6877_s18, 4 }
  0x16   : > { %s6896_s11 = scalar_lea.vmem %s7561_s4, %s5976_s27  ;;  %s6901_s17 = scalar_lea.vmem %s7547_s5, %s5977_s28 }
  0x17   : > { %s6906_s22 = scalar_lea.vmem %s7548_s6, %s5976_s27  ;;  %s6562_s24 = smul.u32 24, %s6877_s18 }
  0x18   : > { %s6912_s2 = scalar_lea.vmem %s7550_s8, %s5977_s28  ;;  %s537_s30 = scalar_lea.vmem %s7551_s9, %s6877_s18 }
  0x19   : > { %s6921_s16 = scalar_lea.vmem %s7549_s7, %s6562_s24  ;;  %543 = sbr.rel (%p5685_p5) target bundleno = 35 (0x23), region = 64 }
  0x1e   : > { %v544_v0 = vld [vmem:[%s7542_s0] sm:$0xff]  ;;  %vm546_vm0 = vcmask 261120   ;;  %v545_v1 = vld [vmem:[%s7542_s0 + $0x8] sm:$0xff]  ;;  %vm559_vm1 = vcmask 257024  }
  0x1f   : > { %v549_v2 = vld [vmem:[%s7543_s1] sm:$0xff]  ;;  %547 = vst.msk [vmem:[#allocation2] sm:$0xff] %vm546_vm0, %v544_v0  ;;  %548 = vst.msk [vmem:[#allocation2 + $0x8] sm:$0xff] %vm546_vm0, %v545_v1  ;;  %v550_v4 = vld [vmem:[%s7543_s1 + $0x8] sm:$0xff] }
  0x20   : > { %v5980_v3 = vpack.c.bf16 %v549_v2, %v549_v2  ;;  %v5981_v5 = vpack.c.bf16 %v550_v4, %v550_v4 }
  0x22   : > { %560 = vst.msk [vmem:[#allocation3] sm:$0xf] %vm559_vm1, %v5980_v3  ;;  %561 = vst.msk [vmem:[#allocation3 + $0x4] sm:$0xf] %vm559_vm1, %v5981_v5 }
  0x23 PF: > { %v6599_v6 = vld [vmem:[%s6884_s23 + $0x8] sm:$0xff]   ;;  %v6793_v7 = vmov 0.0   ;;  %v6601_v9 = vld [vmem:[%s6884_s23] sm:$0xff]   ;;  %vm6794_vm2 = vmmov 0   ;;  %vm592_vm3 = vcmask 261120   ;;  %vm769_vm4 = vcmask 64512  }
  0x24   : > { %6142 = vmatprep.subr.bf16.mxu0 %v6793_v7  ;;  %6150 = vmatprep.subr.bf16.mxu1 %v6793_v7  ;;  %v6600_v8 = vld [vmem:[%s6884_s23 + $0x48] sm:$0xff]   ;;  %v6602_v10 = vld [vmem:[%s6884_s23 + $0x40] sm:$0xff]   ;;  %v6605_v58 = vld [vmem:[%s6884_s23 + $0x58] sm:$0xff]   ;;  %vm1620_vm5 = vcmask 1043456   ;;  %vm5401_vm8 = vcmask 523264   ;;  %p5969_p6 = scmp.ne.s32.totalorder %s6783_s13, 1 }
  0x25   : > { %6143 = vmatpush3.bf16.msra.mxu0 %v6599_v6  ;;  %6146 = vmatprep.mubr.msk.bf16.mxu0 %vm6794_vm2, %v6793_v7  ;;  %v6603_v14 = vld [vmem:[%s6884_s23 + $0x88] sm:$0xff]   ;;  %v6604_v15 = vld [vmem:[%s6884_s23 + $0x80] sm:$0xff]   ;;  %v6606_v61 = vld [vmem:[%s6884_s23 + $0x18] sm:$0xff]  }
  0x26   : > { %6151 = vmatpush3.bf16.msra.mxu1 %v6600_v8  ;;  %6144 = vmatprep.subr.bf16.mxu0 %v6793_v7  ;;  %v562_v11 = vld [vmem:[#allocation2] sm:$0xff]  ;;  %v563_v12 = vld [vmem:[#allocation2 + $0x8] sm:$0xff]  ;;  %v6607_v62 = vld [vmem:[%s6884_s23 + $0x50] sm:$0xff]  }
  0x27   : > { %6152 = vmatprep.subr.bf16.mxu1 %v6793_v7  ;;  %6154 = vmatprep.mubr.msk.bf16.mxu1 %vm6794_vm2, %v6793_v7  ;;  %v6948_v13 = vpack.c.bf16 %v563_v12, %v562_v11  ;;  %v5697_v16 = vld [vmem:[%s6921_s16 + $0x4] ss:$0 sm:$0xff]  ;;  %v5688_v17 = vld [vmem:[%s6921_s16] ss:$0 sm:$0xff]  ;;  %v5706_v28 = vld [vmem:[%s6921_s16 + $0x8] ss:$0 sm:$0xff] }
  0x28   : > { %v6608_v0 = vld [vmem:[%s6884_s23 + $0x10] sm:$0xff]   ;;  %v5730_v6 = vld [vmem:[%s6921_s16 + $0x5] ss:$0 sm:$0xff]  ;;  %v5721_v11 = vld [vmem:[%s6921_s16 + $0x1] ss:$0 sm:$0xff] }
  0x29   : > { %6145 = vmatpush3.bf16.msra.mxu0 %v6601_v9 }
  0x2a   : > { %6153 = vmatpush3.bf16.msra.mxu1 %v6602_v10  ;;  %6158 = vmatprep.subr.bf16.mxu0 %v6793_v7 }
  0x2b   : > { %6171 = vmatprep.subr.mxu1 %v6793_v7 }
  0x2c   : > { %6147 = vmatmul.mubr.msk.bf16.vlgmr.msra.gmra.mxu0 %vm592_vm3, %v6948_v13 }
  0x2d   : > { %6155 = vmatmul.mubr.msk.bf16.vlgmr.msra.gmra.mxu1 %vm592_vm3, %v6948_v13  ;;  %6159 = vmatpush3.bf16.msra.mxu0 %v6603_v14 }
  0x2e   : > { %6160 = vmatprep.subr.bf16.mxu0 %v6793_v7  ;;  %6162 = vmatprep.mubr.msk.bf16.mxu0 %vm6794_vm2, %v6793_v7 }
  0x2f   : > { %6173 = vmatprep.mubr.msk.f32.mxu1 %vm6794_vm2, %v6793_v7 }
  0x31   : > { %6161 = vmatpush3.bf16.msra.mxu0 %v6604_v15 }
  0x32   : > { %6166 = vmatprep.subr.mxu0 %v6793_v7 }
  0x34   : > { %6163 = vmatmul.mubr.msk.bf16.vlgmr.msra.gmra.mxu0 %vm592_vm3, %v6948_v13 }
  0x35   : > { %6168 = vmatprep.mubr.msk.f32.mxu0 %vm6794_vm2, %v6793_v7 }
  0xec   : > { %v630_v18 = vpop.f32.mrf.mxu0 }
  0xed   : > { %v696_v19 = vpop.f32.mrf.mxu1  ;;  %v631_v22 = vadd.f32 %v5688_v17, %v630_v18 }
  0xee   : > { %v697_v20 = vadd.f32 %v5697_v16, %v696_v19  ;;  %v6148_v21 = vpop.f32.mrf.mxu0 }
  0xef   : > { %v6156_v23 = vpop.f32.mrf.mxu1 }
  0xf0   : > { %6167 = vmatpush3.xpose.msk.msra.mxu0 %vm769_vm4, %v697_v20  ;;  %v633_v24 = vpop.f32.mrf.mxu0  ;;  %v6610_v23 = vld [vmem:[%s6884_s23 + $0x90] sm:$0xff]  }
  0xf1   : > { %v699_v25 = vpop.f32.mrf.mxu1  ;;  %6176 = vmatprep.subr.mxu0 %v6793_v7  ;;  %v634_v31 = vadd.f32 %v5688_v17, %v633_v24 }
  0xf2   : > { %v700_v26 = vadd.f32 %v5697_v16, %v699_v25  ;;  %v6149_v27 = vpop.f32.mrf.mxu0 }
  0xf3   : > { %v6157_v29 = vpop.f32.mrf.mxu1  ;;  %6169 = vmatmul.mubr.msk.f32.vlgmr.msra.gmra.mxu0 %vm769_vm4, %v631_v22  ;;  %v6609_v22 = vld [vmem:[%s6884_s23 + $0x98] sm:$0xff]  }
  0xf4   : > { %6172 = vmatpush3.xpose.msk.msra.mxu1 %vm769_vm4, %v700_v26  ;;  %v762_v30 = vpop.f32.mrf.mxu0  ;;  %6178 = vmatprep.mubr.msk.f32.mxu0 %vm6794_vm2, %v6793_v7 }
  0xf5   : > { %v763_v32 = vadd.f32 %v5706_v28, %v762_v30  ;;  %6181 = vmatprep.subr.mxu1 %v6793_v7 }
  0xf6   : > { %v6164_v33 = vpop.f32.mrf.mxu0 }
  0xf7   : > { %6174 = vmatmul.mubr.msk.f32.vlgmr.msra.gmra.mxu1 %vm769_vm4, %v634_v31  ;;  %6177 = vmatpush3.msra.mxu0 %v763_v32 }
  0xf8   : > { %v765_v34 = vpop.f32.mrf.mxu0  ;;  %6183 = vmatprep.mubr.msk.f32.mxu1 %vm6794_vm2, %v6793_v7  ;;  %6186 = vmatprep.subr.bf16.mxu0 %v6793_v7 }
  0xf9   : > { %v766_v35 = vadd.f32 %v5706_v28, %v765_v34 }
  0xfa   : > { %v6165_v36 = vpop.f32.mrf.mxu0 }
  0xfb   : > { %6182 = vmatpush3.msra.mxu1 %v766_v35 }
  0xfc   : > { %6194 = vmatprep.subr.bf16.mxu1 %v6793_v7 }
 0x1b3   : > { %v842_v37 = vpop.f32.mrf.mxu0 }
 0x1b4   : > { %v922_v42 = vmul.f32 0.35355338, %v842_v37 }
 0x1b5   : > { %v6170_v38 = vpop.f32.mrf.mxu0 }
 0x1b6   : > { %v924_v44 = vsel %vm769_vm4, %v922_v42, -inf }
 0x1b7   : > { %v918_v39 = vpop.f32.mrf.mxu1 }
 0x1b8   : > { %v923_v40 = vmul.f32 0.35355338, %v918_v39 }
 0x1b9   : > { %v6175_v41 = vpop.f32.mrf.mxu1 }
 0x1ba   : > { %v927_v43 = vsel %vm769_vm4, %v923_v40, -inf }
 0x1bb   : > { %928 = vmax.xlane.f32.xlu0 %v927_v43 }
 0x1bf   : > { %925 = vmax.xlane.f32.xlu0 %v924_v44 }
 0x244   : > { %v929_v45 = vpop.xlane.xlu0 %928 }
 0x245   : > { %v931_v46 = vsub.f32 %v923_v40, %v929_v45 }
 0x247   : > { %v934_v47 = vmul.f32 1.442695, %v931_v46 }
 0x248   : > { %v926_v48 = vpop.xlane.xlu0 %925 }
 0x249   : > { %6654 = vpow2.f32 %v934_v47  ;;  %v930_v49 = vsub.f32 %v922_v42, %v926_v48  ;;  %v5739_v42 = vld [vmem:[%s6921_s16 + $0x9] ss:$0 sm:$0xff] }
 0x24b   : > { %v932_v50 = vmul.f32 1.442695, %v930_v49 }
 0x24d   : > { %6656 = vpow2.f32 %v932_v50 }
 0x256   : > { %v6655_v51 = vpop.eup %6654 }
 0x257   : > { %v939_v52 = vsel %vm769_vm4, %v6655_v51, 0.0 }
 0x258   : > { %940 = vadd.xlane.f32.xlu1 %v939_v52 }
 0x25a   : > { %v6657_v53 = vpop.eup %6656 }
 0x25b   : > { %v936_v54 = vsel %vm769_vm4, %v6657_v53, 0.0 }
 0x25c   : > { %937 = vadd.xlane.f32.xlu1 %v936_v54 }
 0x2e1   : > { %v941_v55 = vpop.xlane.xlu1 %940 }
 0x2e2   : > { %6658 = vrcp.f32 %v941_v55 }
 0x2e5   : > { %v938_v56 = vpop.xlane.xlu1 %937 }
 0x2e6   : > { %6660 = vrcp.f32 %v938_v56 }
 0x2ef   : > { %v6659_v57 = vpop.eup %6658 }
 0x2f0   : > { %v945_v59 = vmul.f32 %v6659_v57, %v6655_v51  ;;  %v6611_v57 = vld [vmem:[%s6884_s23 + $0x68] sm:$0xff]  }
 0x2f2   : > { %6184 = vmatmul.mubr.msk.f32.vlgmr.msra.gmra.mxu1 %vm769_vm4, %v945_v59  ;;  %v5749_v59 = vld [vmem:[%s6896_s11 + $0x4] sm:$0xf] }
 0x2f3   : > { %v6661_v60 = vpop.eup %6660  ;;  %6195 = vmatpush3.bf16.msra.mxu1 %v6605_v58  ;;  %6198 = vmatprep.mubr.msk.bf16.mxu1 %vm6794_vm2, %v6793_v7  ;;  %v6612_v58 = vld [vmem:[%s6884_s23 + $0x60] sm:$0xff]  }
 0x2f4   : > { %6196 = vmatprep.subr.bf16.mxu1 %v6793_v7  ;;  %v944_v63 = vmul.f32 %v6661_v60, %v6657_v53  ;;  %v1093_v53 = vld [vmem:[%s6896_s11] sm:$0xf]  ;;  %v1622_v60 = vsel %vm1620_vm5, %v5749_v59, 0 }
 0x2f5   : > { %v1669_v56 = vsel %vm1620_vm5, %v1093_v53, 0 }
 0x2f6   : > { %6179 = vmatmul.mubr.msk.f32.vlgmr.msra.gmra.mxu0 %vm769_vm4, %v944_v63 }
 0x2f7   : > { %6187 = vmatpush3.bf16.msra.mxu0 %v6606_v61  ;;  %6197 = vmatpush3.bf16.msra.mxu1 %v6607_v62 }
 0x2f8   : > { %6188 = vmatprep.subr.bf16.mxu0 %v6793_v7  ;;  %6190 = vmatprep.mubr.msk.bf16.mxu0 %vm6794_vm2, %v6793_v7 }
 0x2f9   : > { %6210 = vmatprep.subr.mxu1 %v6793_v7 }
 0x2fa   : > { %6199 = vmatmul.mubr.msk.bf16.vlgmr.msra.gmra.mxu1 %vm592_vm3, %v6948_v13 }
 0x2fb   : > { %6189 = vmatpush3.bf16.msra.mxu0 %v6608_v0  ;;  %6212 = vmatprep.mubr.msk.f32.mxu1 %vm6794_vm2, %v6793_v7  ;;  %v6613_v0 = vld [vmem:[%s6884_s23 + $0x28] sm:$0xff]  }
 0x2fc   : > { %6202 = vmatprep.subr.bf16.mxu0 %v6793_v7 }
 0x2fe   : > { %6191 = vmatmul.mubr.msk.bf16.vlgmr.msra.gmra.mxu0 %vm592_vm3, %v6948_v13 }
 0x2ff   : > { %6206 = vmatprep.mubr.msk.bf16.mxu0 %vm6794_vm2, %v6793_v7  ;;  %6203 = vmatpush3.bf16.msra.mxu0 %v6609_v22 }
 0x300   : > { %6204 = vmatprep.subr.bf16.mxu0 %v6793_v7 }
 0x303   : > { %6205 = vmatpush3.bf16.msra.mxu0 %v6610_v23 }
 0x304   : > { %6220 = vmatprep.subr.mxu0 %v6793_v7 }
 0x306   : > { %6207 = vmatmul.mubr.msk.bf16.vlgmr.msra.gmra.mxu0 %vm592_vm3, %v6948_v13 }
 0x307   : > { %6222 = vmatprep.mubr.msk.f32.mxu0 %vm6794_vm2, %v6793_v7 }
 0x3b2   : > { %v7009_v1 = vpop.f32.mrf.mxu1 }
 0x3b4   : > { %v6185_v2 = vpop.f32.mrf.mxu1 }
 0x3b6   : > { %v7011_v3 = vpop.f32.mrf.mxu0 }
 0x3b7   : > { %v1092_v4 = vpack.c.bf16 %v7009_v1, %v7011_v3 }
 0x3b8   : > { %v6180_v5 = vpop.f32.mrf.mxu0 }
 0x3ba   : > { %v1219_v8 = vpop.f32.mrf.mxu1 }
 0x3bb   : > { %v1220_v9 = vadd.f32 %v5730_v6, %v1219_v8 }
 0x3bc   : > { %v6200_v10 = vpop.f32.mrf.mxu1 }
 0x3bd   : > { %6211 = vmatpush3.xpose.msk.msra.mxu1 %vm769_vm4, %v1220_v9  ;;  %v5766_v9 = vld [vmem:[%s6921_s16 + $0x6] ss:$0 sm:$0xff] }
 0x3be   : > { %v1153_v12 = vpop.f32.mrf.mxu0  ;;  %v1222_v14 = vpop.f32.mrf.mxu1  ;;  %6215 = vmatprep.subr.mxu1 %v6793_v7 }
 0x3bf   : > { %v1154_v15 = vadd.f32 %v5721_v11, %v1153_v12  ;;  %v1223_v16 = vadd.f32 %v5730_v6, %v1222_v14 }
 0x3c0   : > { %v6192_v17 = vpop.f32.mrf.mxu0  ;;  %v6201_v18 = vpop.f32.mrf.mxu1 }
 0x3c1   : > { %6213 = vmatmul.mubr.msk.f32.vlgmr.msra.gmra.mxu1 %vm769_vm4, %v1154_v15 }
 0x3c2   : > { %6216 = vmatpush3.xpose.msk.msra.mxu1 %vm769_vm4, %v1223_v16  ;;  %v1156_v19 = vpop.f32.mrf.mxu0  ;;  %6217 = vmatprep.mubr.msk.f32.mxu1 %vm6794_vm2, %v6793_v7 }
 0x3c3   : > { %v1157_v20 = vadd.f32 %v5721_v11, %v1156_v19  ;;  %6225 = vmatprep.subr.mxu1 %v6793_v7 }
 0x3c4   : > { %v6193_v21 = vpop.f32.mrf.mxu0 }
 0x3c5   : > { %6218 = vmatmul.mubr.msk.f32.vlgmr.msra.gmra.mxu1 %vm769_vm4, %v1157_v20  ;;  %v5757_v21 = vld [vmem:[%s6921_s16 + $0x2] ss:$0 sm:$0xff] }
 0x3c6   : > { %6227 = vmatprep.mubr.msk.f32.mxu1 %vm6794_vm2, %v6793_v7  ;;  %v1285_v43 = vpop.f32.mrf.mxu0 }
 0x3c7   : > { %v1286_v44 = vadd.f32 %v5739_v42, %v1285_v43 }
 0x3c8   : > { %v6208_v45 = vpop.f32.mrf.mxu0 }
 0x3c9   : > { %6221 = vmatpush3.msra.mxu0 %v1286_v44 }
 0x3ca   : > { %v1288_v46 = vpop.f32.mrf.mxu0  ;;  %6230 = vmatprep.subr.bf16.mxu0 %v6793_v7 }
 0x3cb   : > { %v1289_v47 = vadd.f32 %v5739_v42, %v1288_v46 }
 0x3cc   : > { %v6209_v48 = vpop.f32.mrf.mxu0 }
 0x3cd   : > { %6226 = vmatpush3.msra.mxu1 %v1289_v47  ;;  %v5775_v48 = vld [vmem:[%s6921_s16 + $0xa] ss:$0 sm:$0xff] }
 0x3ce   : > { %6236 = vmatprep.subr.bf16.mxu1 %v6793_v7 }
 0x481   : > { %v1364_v24 = vpop.f32.mrf.mxu1 }
 0x482   : > { %v1444_v25 = vmul.f32 0.35355338, %v1364_v24 }
 0x483   : > { %v6214_v26 = vpop.f32.mrf.mxu1 }
 0x484   : > { %v1446_v27 = vsel %vm769_vm4, %v1444_v25, -inf }
 0x485   : > { %1447 = vmax.xlane.f32.xlu0 %v1446_v27  ;;  %v1440_v28 = vpop.f32.mrf.mxu1 }
 0x486   : > { %v1445_v29 = vmul.f32 0.35355338, %v1440_v28  ;;  %v6615_v28 = vld [vmem:[%s6884_s23 + $0xa8] sm:$0xff]  }
 0x487   : > { %v6219_v30 = vpop.f32.mrf.mxu1 }
 0x488   : > { %v1449_v31 = vsel %vm769_vm4, %v1445_v29, -inf }
 0x489   : > { %1450 = vmax.xlane.f32.xlu1 %v1449_v31 }
 0x50e   : > { %v1448_v32 = vpop.xlane.xlu0 %1447 }
 0x50f   : > { %v1452_v33 = vsub.f32 %v1444_v25, %v1448_v32 }
 0x511   : > { %v1454_v34 = vmul.f32 1.442695, %v1452_v33 }
 0x512   : > { %v1451_v35 = vpop.xlane.xlu1 %1450 }
 0x513   : > { %6662 = vpow2.f32 %v1454_v34  ;;  %v1453_v36 = vsub.f32 %v1445_v29, %v1451_v35  ;;  %v6616_v29 = vld [vmem:[%s6884_s23 + $0xa0] sm:$0xff]  }
 0x515   : > { %v1456_v37 = vmul.f32 1.442695, %v1453_v36 }
 0x517   : > { %6664 = vpow2.f32 %v1456_v37 }
 0x520   : > { %v6663_v38 = vpop.eup %6662 }
 0x521   : > { %v1458_v39 = vsel %vm769_vm4, %v6663_v38, 0.0 }
 0x522   : > { %1459 = vadd.xlane.f32.xlu0 %v1458_v39 }
 0x524   : > { %v6665_v40 = vpop.eup %6664 }
 0x525   : > { %v1461_v41 = vsel %vm769_vm4, %v6665_v40, 0.0 }
 0x526   : > { %1462 = vadd.xlane.f32.xlu1 %v1461_v41 }
 0x5ab   : > { %v1460_v49 = vpop.xlane.xlu0 %1459 }
 0x5ac   : > { %6666 = vrcp.f32 %v1460_v49 }
 0x5af   : > { %v1463_v50 = vpop.xlane.xlu1 %1462 }
 0x5b0   : > { %6668 = vrcp.f32 %v1463_v50 }
 0x5b9   : > { %v6667_v51 = vpop.eup %6666 }
 0x5ba   : > { %v1466_v52 = vmul.f32 %v6667_v51, %v6663_v38 }
 0x5bc   : > { %6223 = vmatmul.mubr.msk.f32.vlgmr.msra.gmra.mxu0 %vm769_vm4, %v1466_v52 }
 0x5bd   : > { %v6669_v54 = vpop.eup %6668  ;;  %6232 = vmatprep.mubr.msk.bf16.mxu0 %vm6794_vm2, %v6793_v7  ;;  %6231 = vmatpush3.bf16.msra.mxu0 %v1622_v60 }
 0x5be   : > { %v1467_v55 = vmul.f32 %v6669_v54, %v6665_v40  ;;  %6242 = vmatprep.subr.bf16.mxu0 %v6793_v7 }
 0x5c0   : > { %6228 = vmatmul.mubr.msk.f32.vlgmr.msra.gmra.mxu1 %vm769_vm4, %v1467_v55 }
 0x5c1   : > { %6237 = vmatpush3.bf16.msra.mxu1 %v1669_v56  ;;  %6238 = vmatprep.mubr.msk.bf16.mxu1 %vm6794_vm2, %v6793_v7 }
 0x5c2   : > { %6250 = vmatprep.subr.bf16.mxu1 %v6793_v7 }
 0x5c4   : > { %6239 = vmatmul.mubr.msk.bf16.vlgmr.msra.gmra.mxu1 %vm769_vm4, %v1092_v4  ;;  %v6614_v4 = vld [vmem:[%s6884_s23 + $0x20] sm:$0xff]  }
 0x5c5   : > { %6251 = vmatpush3.bf16.msra.mxu1 %v6611_v57  ;;  %6254 = vmatprep.mubr.msk.bf16.mxu1 %vm6794_vm2, %v6793_v7 }
 0x5c6   : > { %6252 = vmatprep.subr.bf16.mxu1 %v6793_v7 }
 0x5c9   : > { %6253 = vmatpush3.bf16.msra.mxu1 %v6612_v58 }
 0x5ca   : > { %6266 = vmatprep.subr.mxu1 %v6793_v7 }
 0x5cc   : > { %6255 = vmatmul.mubr.msk.bf16.vlgmr.msra.gmra.mxu1 %vm592_vm3, %v6948_v13 }
 0x5cd   : > { %6268 = vmatprep.mubr.msk.f32.mxu1 %vm6794_vm2, %v6793_v7 }
 0x67c   : > { %v1537_v61 = vpop.f32.mrf.mxu0 }
 0x67e   : > { %v6224_v62 = vpop.f32.mrf.mxu0 }
 0x680   : > { %v1610_v63 = vpop.f32.mrf.mxu1 }
 0x681   : > { %v1614_v1 = vpack.c.bf16 %v1610_v63, %v1537_v61  ;;  %v5785_v61 = vld [vmem:[%s6896_s11 + $0x8] sm:$0xf]  ;;  %v6617_v63 = vld [vmem:[%s6884_s23 + $0x38] sm:$0xff]  }
 0x682   : > { %v6229_v2 = vpop.f32.mrf.mxu1  ;;  %v2239_v62 = vsel %vm1620_vm5, %v5785_v61, 0 }
 0x683   : > { %6233 = vmatmul.mubr.msk.bf16.vlgmr.msra.gmra.mxu0 %vm769_vm4, %v1614_v1 }
 0x684   : > { %v7070_v3 = vpop.f32.mrf.mxu1  ;;  %6243 = vmatpush3.bf16.msra.mxu0 %v6613_v0  ;;  %6246 = vmatprep.mubr.msk.bf16.mxu0 %vm6794_vm2, %v6793_v7  ;;  %v6619_v0 = vld [vmem:[%s6884_s23 + $0x30] sm:$0xff]  }
 0x685   : > { %6244 = vmatprep.subr.bf16.mxu0 %v6793_v7 }
 0x686   : > { %v6240_v5 = vpop.f32.mrf.mxu1 }
 0x687   : > { %v6618_v5 = vld [vmem:[%s6884_s23 + $0x78] sm:$0xff]  }
 0x688   : > { %v7076_v6 = vpop.f32.mrf.mxu1  ;;  %6245 = vmatpush3.bf16.msra.mxu0 %v6614_v4 }
 0x689   : > { %6258 = vmatprep.subr.bf16.mxu0 %v6793_v7 }
 0x68a   : > { %v6241_v8 = vpop.f32.mrf.mxu1 }
 0x68b   : > { %6247 = vmatmul.mubr.msk.bf16.vlgmr.msra.gmra.mxu0 %vm592_vm3, %v6948_v13 }
 0x68c   : > { %6262 = vmatprep.mubr.msk.bf16.mxu0 %vm6794_vm2, %v6793_v7  ;;  %v1837_v10 = vpop.f32.mrf.mxu1  ;;  %6259 = vmatpush3.bf16.msra.mxu0 %v6615_v28 }
 0x68d   : > { %v1838_v11 = vadd.f32 %v5766_v9, %v1837_v10  ;;  %6260 = vmatprep.subr.bf16.mxu0 %v6793_v7  ;;  %v6620_v10 = vld [vmem:[%s6884_s23 + $0x70] sm:$0xff]  }
 0x68e   : > { %v6256_v12 = vpop.f32.mrf.mxu1 }
 0x68f   : > { %6267 = vmatpush3.xpose.msk.msra.mxu1 %vm769_vm4, %v1838_v11 }
 0x690   : > { %v1840_v14 = vpop.f32.mrf.mxu1  ;;  %6271 = vmatprep.subr.mxu1 %v6793_v7  ;;  %6261 = vmatpush3.bf16.msra.mxu0 %v6616_v29 }
 0x691   : > { %v1841_v15 = vadd.f32 %v5766_v9, %v1840_v14  ;;  %6276 = vmatprep.subr.mxu0 %v6793_v7 }
 0x692   : > { %v6257_v16 = vpop.f32.mrf.mxu1 }
 0x693   : > { %6263 = vmatmul.mubr.msk.bf16.vlgmr.msra.gmra.mxu0 %vm592_vm3, %v6948_v13 }
 0x694   : > { %6278 = vmatprep.mubr.msk.f32.mxu0 %vm6794_vm2, %v6793_v7 }
 0x743   : > { %v7086_v17 = vpop.f32.mrf.mxu0 }
 0x744   : > { %v1706_v16 = vadd.f32 %v7070_v3, %v7086_v17 }
 0x745   : > { %v6234_v18 = vpop.f32.mrf.mxu0 }
 0x747   : > { %v7088_v19 = vpop.f32.mrf.mxu0 }
 0x749   : > { %v6235_v20 = vpop.f32.mrf.mxu0 }
 0x74b   : > { %v1771_v22 = vpop.f32.mrf.mxu0 }
 0x74c   : > { %v1772_v23 = vadd.f32 %v5757_v21, %v1771_v22  ;;  %v1709_v22 = vadd.f32 %v7076_v6, %v7088_v19  ;;  %v6621_v19 = vld [vmem:[%s6884_s23 + $0xb8] sm:$0xff]  }
 0x74d   : > { %v6248_v24 = vpop.f32.mrf.mxu0 }
 0x74e   : > { %6269 = vmatmul.mubr.msk.f32.vlgmr.msra.gmra.mxu1 %vm769_vm4, %v1772_v23 }
 0x74f   : > { %6272 = vmatpush3.xpose.msk.msra.mxu1 %vm769_vm4, %v1841_v15  ;;  %v1774_v25 = vpop.f32.mrf.mxu0  ;;  %6273 = vmatprep.mubr.msk.f32.mxu1 %vm6794_vm2, %v6793_v7 }
 0x750   : > { %v1775_v26 = vadd.f32 %v5757_v21, %v1774_v25  ;;  %6281 = vmatprep.subr.mxu1 %v6793_v7 }
 0x751   : > { %v6249_v27 = vpop.f32.mrf.mxu0 }
 0x752   : > { %6274 = vmatmul.mubr.msk.f32.vlgmr.msra.gmra.mxu1 %vm769_vm4, %v1775_v26  ;;  %v5801_v26 = vld [vmem:[%s6921_s16 + $0x7] ss:$0 sm:$0xff]  ;;  %v5792_v27 = vld [vmem:[%s6921_s16 + $0x3] ss:$0 sm:$0xff] }
 0x753   : > { %6283 = vmatprep.mubr.msk.f32.mxu1 %vm6794_vm2, %v6793_v7  ;;  %v1903_v49 = vpop.f32.mrf.mxu0 }
 0x754   : > { %v1904_v50 = vadd.f32 %v5775_v48, %v1903_v49 }
 0x755   : > { %v6264_v51 = vpop.f32.mrf.mxu0 }
 0x756   : > { %6277 = vmatpush3.msra.mxu0 %v1904_v50  ;;  %v5810_v51 = vld [vmem:[%s6921_s16 + $0xb] ss:$0 sm:$0xff] }
 0x757   : > { %v1906_v52 = vpop.f32.mrf.mxu0  ;;  %6286 = vmatprep.subr.bf16.mxu0 %v6793_v7 }
 0x758   : > { %v1907_v53 = vadd.f32 %v5775_v48, %v1906_v52 }
 0x759   : > { %v6265_v54 = vpop.f32.mrf.mxu0 }
 0x75a   : > { %6282 = vmatpush3.msra.mxu1 %v1907_v53 }
 0x75b   : > { %6292 = vmatprep.subr.bf16.mxu1 %v6793_v7 }
 0x80e   : > { %v1982_v30 = vpop.f32.mrf.mxu1 }
 0x80f   : > { %v2062_v31 = vmul.f32 0.35355338, %v1982_v30 }
 0x810   : > { %v6270_v32 = vpop.f32.mrf.mxu1 }
 0x811   : > { %v2064_v33 = vsel %vm769_vm4, %v2062_v31, -inf }
 0x812   : > { %2065 = vmax.xlane.f32.xlu0 %v2064_v33  ;;  %v2058_v34 = vpop.f32.mrf.mxu1  ;;  %v6622_v33 = vld [vmem:[%s6884_s23 + $0xb0] sm:$0xff]  }
 0x813   : > { %v2063_v35 = vmul.f32 0.35355338, %v2058_v34 }
 0x814   : > { %v6275_v36 = vpop.f32.mrf.mxu1 }
 0x815   : > { %v2067_v37 = vsel %vm769_vm4, %v2063_v35, -inf }
 0x816   : > { %2068 = vmax.xlane.f32.xlu1 %v2067_v37 }
 0x89b   : > { %v2066_v38 = vpop.xlane.xlu0 %2065 }
 0x89c   : > { %v2070_v39 = vsub.f32 %v2062_v31, %v2066_v38 }
 0x89e   : > { %v2072_v40 = vmul.f32 1.442695, %v2070_v39 }
 0x89f   : > { %v2069_v41 = vpop.xlane.xlu1 %2068 }
 0x8a0   : > { %6670 = vpow2.f32 %v2072_v40  ;;  %v2071_v42 = vsub.f32 %v2063_v35, %v2069_v41 }
 0x8a2   : > { %v2074_v43 = vmul.f32 1.442695, %v2071_v42 }
 0x8a4   : > { %6672 = vpow2.f32 %v2074_v43 }
 0x8ad   : > { %v6671_v44 = vpop.eup %6670 }
 0x8ae   : > { %v2076_v45 = vsel %vm769_vm4, %v6671_v44, 0.0 }
 0x8af   : > { %2077 = vadd.xlane.f32.xlu0 %v2076_v45 }
 0x8b1   : > { %v6673_v46 = vpop.eup %6672 }
 0x8b2   : > { %v2079_v47 = vsel %vm769_vm4, %v6673_v46, 0.0 }
 0x8b3   : > { %2080 = vadd.xlane.f32.xlu1 %v2079_v47 }
 0x938   : > { %v2078_v55 = vpop.xlane.xlu0 %2077 }
 0x939   : > { %6674 = vrcp.f32 %v2078_v55 }
 0x93c   : > { %v2081_v56 = vpop.xlane.xlu1 %2080 }
 0x93d   : > { %6676 = vrcp.f32 %v2081_v56 }
 0x946   : > { %v6675_v57 = vpop.eup %6674 }
 0x947   : > { %v2084_v58 = vmul.f32 %v6675_v57, %v6671_v44 }
 0x949   : > { %6279 = vmatmul.mubr.msk.f32.vlgmr.msra.gmra.mxu0 %vm769_vm4, %v2084_v58 }
 0x94a   : > { %v6677_v59 = vpop.eup %6676  ;;  %6288 = vmatprep.mubr.msk.bf16.mxu0 %vm6794_vm2, %v6793_v7  ;;  %6287 = vmatpush3.bf16.msra.mxu0 %v2239_v62 }
 0x94b   : > { %v2085_v60 = vmul.f32 %v6677_v59, %v6673_v46  ;;  %6300 = vmatprep.subr.bf16.mxu0 %v6793_v7 }
 0x94d   : > { %6284 = vmatmul.mubr.msk.f32.vlgmr.msra.gmra.mxu1 %vm769_vm4, %v2085_v60 }
 0x94e   : > { %6296 = vmatprep.mubr.msk.bf16.mxu1 %vm6794_vm2, %v6793_v7  ;;  %6293 = vmatpush3.bf16.msra.mxu1 %v6617_v63 }
 0x94f   : > { %6294 = vmatprep.subr.bf16.mxu1 %v6793_v7 }
 0x952   : > { %6295 = vmatpush3.bf16.msra.mxu1 %v6619_v0  ;;  %v5820_v0 = vld [vmem:[%s6896_s11 + $0xc] sm:$0xf] }
 0x953   : > { %6308 = vmatprep.subr.bf16.mxu1 %v6793_v7 }
 0x955   : > { %6297 = vmatmul.mubr.msk.bf16.vlgmr.msra.gmra.mxu1 %vm592_vm3, %v6948_v13 }
 0x956   : > { %6312 = vmatprep.mubr.msk.bf16.mxu1 %vm6794_vm2, %v6793_v7  ;;  %6309 = vmatpush3.bf16.msra.mxu1 %v6621_v19 }
 0x957   : > { %6310 = vmatprep.subr.bf16.mxu1 %v6793_v7 }
 0x95a   : > { %6311 = vmatpush3.bf16.msra.mxu1 %v6622_v33 }
 0x95b   : > { %6326 = vmatprep.subr.mxu1 %v6793_v7 }
 0x95d   : > { %6313 = vmatmul.mubr.msk.bf16.vlgmr.msra.gmra.mxu1 %vm592_vm3, %v6948_v13 }
 0x95e   : > { %6328 = vmatprep.mubr.msk.f32.mxu1 %vm6794_vm2, %v6793_v7 }
 0xa09   : > { %v2155_v1 = vpop.f32.mrf.mxu0 }
 0xa0b   : > { %v6280_v2 = vpop.f32.mrf.mxu0 }
 0xa0d   : > { %v2228_v4 = vpop.f32.mrf.mxu1 }
 0xa0e   : > { %v2232_v8 = vpack.c.bf16 %v2228_v4, %v2155_v1  ;;  %v2811_v1 = vsel %vm1620_vm5, %v5820_v0, 0 }
 0xa0f   : > { %v6285_v9 = vpop.f32.mrf.mxu1 }
 0xa10   : > { %6289 = vmatmul.mubr.msk.bf16.vlgmr.msra.gmra.mxu0 %vm769_vm4, %v2232_v8 }
 0xa11   : > { %6301 = vmatpush3.bf16.msra.mxu0 %v6618_v5  ;;  %6304 = vmatprep.mubr.msk.bf16.mxu0 %vm6794_vm2, %v6793_v7 }
 0xa12   : > { %6302 = vmatprep.subr.bf16.mxu0 %v6793_v7 }
 0xa15   : > { %6303 = vmatpush3.bf16.msra.mxu0 %v6620_v10  ;;  %v2343_v11 = vpop.f32.mrf.mxu1  ;;  %v2856_v10 = vlaneseq }
 0xa16   : > { %6316 = vmatprep.subr.mxu0 %v6793_v7  ;;  %v2344_v30 = vadd.f32 %v5792_v27, %v2343_v11 }
 0xa17   : > { %v6298_v12 = vpop.f32.mrf.mxu1  ;;  %v7189_v11 = vshrl.u32 %v2856_v10, 7 }
 0xa18   : > { %6305 = vmatmul.mubr.msk.bf16.vlgmr.msra.gmra.mxu0 %vm592_vm3, %v6948_v13 }
 0xa19   : > { %6318 = vmatprep.mubr.msk.f32.mxu0 %vm6794_vm2, %v6793_v7  ;;  %v2346_v14 = vpop.f32.mrf.mxu1  ;;  %v2858_v12 = vsub.s32 0, %v7189_v11 }
 0xa1a   : > { %v2347_v6 = vadd.f32 %v5792_v27, %v2346_v14  ;;  %v7193_v14 = vld [vmem:[%s6912_s2] sm:$0xff] }
 0xa1b   : > { %v6299_v15 = vpop.f32.mrf.mxu1 }
 0xa1c   : > { %v2859_v15 = vrot.slane %v7193_v14, %v2858_v12 }
 0xa1d   : > { %v2475_v52 = vpop.f32.mrf.mxu1 }
 0xa1e   : > { %v2476_v53 = vadd.f32 %v5810_v51, %v2475_v52  ;;  %v2899_v52 = vsub.s32 2, %v7189_v11 }
 0xa1f   : > { %v6314_v54 = vpop.f32.mrf.mxu1 }
 0xa20   : > { %6327 = vmatpush3.msra.mxu1 %v2476_v53 }
 0xa21   : > { %v2478_v55 = vpop.f32.mrf.mxu1  ;;  %6336 = vmatprep.subr.bf16.mxu1 %v6793_v7 }
 0xa22   : > { %v2479_v56 = vadd.f32 %v5810_v51, %v2478_v55 }
 0xa23   : > { %v6315_v57 = vpop.f32.mrf.mxu1 }
 0xad0   : > { %v2275_v18 = vpop.f32.mrf.mxu0 }
 0xad1   : > { %v7144_v20 = vadd.f32 %v2275_v18, %v1706_v16 }
 0xad2   : > { %v6290_v21 = vpop.f32.mrf.mxu0 }
 0xad4   : > { %v2278_v23 = vpop.f32.mrf.mxu0 }
 0xad5   : > { %v7148_v24 = vadd.f32 %v2278_v23, %v1709_v22 }
 0xad6   : > { %v6291_v25 = vpop.f32.mrf.mxu0 }
 0xad8   : > { %v2409_v28 = vpop.f32.mrf.mxu0 }
 0xad9   : > { %v2410_v29 = vadd.f32 %v5801_v26, %v2409_v28 }
 0xada   : > { %v6306_v31 = vpop.f32.mrf.mxu0 }
 0xadb   : > { %6317 = vmatpush3.xpose.msk.msra.mxu0 %vm769_vm4, %v2410_v29  ;;  %v6739_v31 = vld [vmem:[#allocation2 + $0x8] sm:$0xff] }
 0xadc   : > { %v2412_v3 = vpop.f32.mrf.mxu0  ;;  %6321 = vmatprep.subr.mxu0 %v6793_v7 }
 0xadd   : > { %v2413_v17 = vadd.f32 %v5801_v26, %v2412_v3  ;;  %v6738_v26 = vld [vmem:[#allocation2] sm:$0xff] }
 0xade   : > { %v6307_v32 = vpop.f32.mrf.mxu0  ;;  %6319 = vmatmul.mubr.msk.f32.vlgmr.msra.gmra.mxu0 %vm769_vm4, %v2344_v30 }
 0xadf   : > { %6322 = vmatpush3.xpose.msk.msra.mxu0 %vm769_vm4, %v2413_v17  ;;  %6323 = vmatprep.mubr.msk.f32.mxu0 %vm6794_vm2, %v6793_v7 }
 0xae0   : > { %6331 = vmatprep.subr.mxu0 %v6793_v7 }
 0xae2   : > { %6324 = vmatmul.mubr.msk.f32.vlgmr.msra.gmra.mxu0 %vm769_vm4, %v2347_v6 }
 0xae3   : > { %6333 = vmatprep.mubr.msk.f32.mxu0 %vm6794_vm2, %v6793_v7  ;;  %6332 = vmatpush3.msra.mxu0 %v2479_v56  ;;  %v2900_v56 = vrot.slane %v7193_v14, %v2899_v52 }
 0xae4   : > { %6342 = vmatprep.subr.bf16.mxu0 %v6793_v7 }
 0xb9e   : > { %v2554_v34 = vpop.f32.mrf.mxu0 }
 0xb9f   : > { %v2634_v35 = vmul.f32 0.35355338, %v2554_v34 }
 0xba0   : > { %v6320_v36 = vpop.f32.mrf.mxu0 }
 0xba1   : > { %v2636_v37 = vsel %vm769_vm4, %v2634_v35, -inf }
 0xba2   : > { %2637 = vmax.xlane.f32.xlu0 %v2636_v37  ;;  %v2630_v38 = vpop.f32.mrf.mxu0 }
 0xba3   : > { %v2635_v39 = vmul.f32 0.35355338, %v2630_v38  ;;  %v6623_v38 = vld [vmem:[%s6889_s26 + $0x8] sm:$0xff]  }
 0xba4   : > { %v6325_v40 = vpop.f32.mrf.mxu0 }
 0xba5   : > { %v2639_v41 = vsel %vm769_vm4, %v2635_v39, -inf  ;;  %v7205_v40 = vld [vmem:[#allocation3] sm:$0xff]  }
 0xba6   : > { %2640 = vmax.xlane.f32.xlu1 %v2639_v41  ;;  %v6626_v41 = vld [vmem:[%s6884_s23 + $0xc8] sm:$0xff]  }
 0xc2b   : > { %v2638_v42 = vpop.xlane.xlu0 %2637 }
 0xc2c   : > { %v2642_v43 = vsub.f32 %v2634_v35, %v2638_v42  ;;  %v6627_v42 = vld [vmem:[%s6884_s23 + $0xc0] sm:$0xff]  }
 0xc2e   : > { %v2644_v44 = vmul.f32 1.442695, %v2642_v43 }
 0xc2f   : > { %v2641_v13 = vpop.xlane.xlu1 %2640 }
 0xc30   : > { %6678 = vpow2.f32 %v2644_v44  ;;  %v2643_v45 = vsub.f32 %v2635_v39, %v2641_v13  ;;  %v6624_v39 = vld [vmem:[%s6889_s26] sm:$0xff]  }
 0xc32   : > { %v2646_v46 = vmul.f32 1.442695, %v2643_v45 }
 0xc34   : > { %6680 = vpow2.f32 %v2646_v46 }
 0xc3d   : > { %v6679_v47 = vpop.eup %6678 }
 0xc3e   : > { %v2648_v48 = vsel %vm769_vm4, %v6679_v47, 0.0 }
 0xc3f   : > { %2649 = vadd.xlane.f32.xlu0 %v2648_v48  ;;  %v2893_v48 = vsub.s32 1, %v7189_v11 }
 0xc41   : > { %v6681_v49 = vpop.eup %6680  ;;  %v2894_v51 = vrot.slane %v7193_v14, %v2893_v48  ;;  %v6631_v48 = vld [vmem:[%s6884_s23 + $0xd0] sm:$0xff]  }
 0xc42   : > { %v2651_v50 = vsel %vm769_vm4, %v6681_v49, 0.0 }
 0xc43   : > { %2652 = vadd.xlane.f32.xlu1 %v2651_v50 }
 0xcc8   : > { %v2650_v58 = vpop.xlane.xlu0 %2649 }
 0xcc9   : > { %6682 = vrcp.f32 %v2650_v58 }
 0xccc   : > { %v2653_v59 = vpop.xlane.xlu1 %2652 }
 0xccd   : > { %6684 = vrcp.f32 %v2653_v59 }
 0xcd6   : > { %v6683_v60 = vpop.eup %6682 }
 0xcd7   : > { %v2656_v61 = vmul.f32 %v6683_v60, %v6679_v47 }
 0xcd9   : > { %6329 = vmatmul.mubr.msk.f32.vlgmr.msra.gmra.mxu1 %vm769_vm4, %v2656_v61  ;;  %v5832_v61 = vld [vmem:[%s6921_s16 + $0x10] ss:$0 sm:$0xff] }
 0xcda   : > { %v6685_v62 = vpop.eup %6684  ;;  %6338 = vmatprep.mubr.msk.bf16.mxu1 %vm6794_vm2, %v6793_v7  ;;  %6337 = vmatpush3.bf16.msra.mxu1 %v2811_v1 }
 0xcdb   : > { %v2657_v63 = vmul.f32 %v6685_v62, %v6681_v49  ;;  %6350 = vmatprep.subr.bf16.mxu1 %v6793_v7 }
 0xcdd   : > { %6334 = vmatmul.mubr.msk.f32.vlgmr.msra.gmra.mxu0 %vm769_vm4, %v2657_v63 }
 0xcde   : > { %6346 = vmatprep.mubr.msk.bf16.mxu0 %vm6794_vm2, %v6793_v7  ;;  %6343 = vmatpush3.bf16.msra.mxu0 %v6626_v41 }
 0xcdf   : > { %6344 = vmatprep.subr.bf16.mxu0 %v6793_v7 }
 0xce2   : > { %6345 = vmatpush3.bf16.msra.mxu0 %v6627_v42 }
 0xce3   : > { %6358 = vmatprep.subr.bf16.mxu0 %v6793_v7 }
 0xd99   : > { %v2727_v2 = vpop.f32.mrf.mxu1 }
 0xd9b   : > { %v6330_v4 = vpop.f32.mrf.mxu1 }
 0xd9d   : > { %v2800_v5 = vpop.f32.mrf.mxu0 }
 0xd9e   : > { %v2804_v8 = vpack.c.bf16 %v2800_v5, %v2727_v2  ;;  %v5827_v5 = vld [vmem:[%s6921_s16 + $0xc] ss:$0 sm:$0xff] }
 0xd9f   : > { %v6335_v9 = vpop.f32.mrf.mxu0 }
 0xda0   : > { %6339 = vmatmul.mubr.msk.bf16.vlgmr.msra.gmra.mxu1 %vm769_vm4, %v2804_v8 }
 0xda1   : > { %6354 = vmatprep.mubr.msk.bf16.mxu1 %vm6794_vm2, %v6793_v7  ;;  %6351 = vmatpush3.bf16.msra.mxu1 %v6623_v38 }
 0xda2   : > { %6352 = vmatprep.subr.bf16.mxu1 %v6793_v7 }
 0xda5   : > { %6353 = vmatpush3.bf16.msra.mxu1 %v6624_v39 }
 0xda6   : > { %6366 = vmatprep.subr.mxu1 %v6793_v7 }
 0xda8   : > { %6355 = vmatmul.mubr.msk.bf16.vlgmr.msra.gmra.mxu1 %vm592_vm3, %v7205_v40 }
 0xda9   : > { %6368 = vmatprep.mubr.msk.f32.mxu1 %vm6794_vm2, %v6793_v7 }
 0xe60   : > { %v2847_v16 = vpop.f32.mrf.mxu1 }
 0xe61   : > { %v2854_v18 = vadd.f32 %v2847_v16, %v7144_v20 }
 0xe62   : > { %v6340_v21 = vpop.f32.mrf.mxu1 }
 0xe63   : > { %v2860_v22 = vadd.f32 %v2859_v15, %v2854_v18  ;;  %v6628_v18 = vld [vmem:[%s6889_s26 + $0x48] sm:$0xff]   ;;  %v6629_v21 = vld [vmem:[%s6889_s26 + $0x40] sm:$0xff]  }
 0xe64   : > { %v2850_v23 = vpop.f32.mrf.mxu1 }
 0xe65   : > { %v2855_v25 = vadd.f32 %v2850_v23, %v7148_v24  ;;  %v2862_v27 = vadd.f32 %v6738_v26, %v2860_v22 }
 0xe66   : > { %v6341_v28 = vpop.f32.mrf.mxu1 }
 0xe67   : > { %v2861_v29 = vadd.f32 %v2859_v15, %v2855_v25  ;;  %v2864_v30 = vsel %vm592_vm3, %v2862_v27, 0.0 }
 0xe68   : > { %2865 = vadd.xlane.f32.xlu0 %v2864_v30  ;;  %v3039_v62 = vpop.f32.mrf.mxu1 }
 0xe69   : > { %v2863_v3 = vadd.f32 %v6739_v31, %v2861_v29  ;;  %v3040_v63 = vadd.f32 %v5832_v61, %v3039_v62  ;;  %v5867_v62 = vld [vmem:[%s6921_s16 + $0x11] ss:$0 sm:$0xff] }
 0xe6a   : > { %v6356_v0 = vpop.f32.mrf.mxu1 }
 0xe6b   : > { %v2867_v17 = vsel %vm592_vm3, %v2863_v3, 0.0  ;;  %6367 = vmatpush3.xpose.msk.msra.mxu1 %vm769_vm4, %v3040_v63 }
 0xe6c   : > { %2868 = vadd.xlane.f32.xlu1 %v2867_v17  ;;  %v3042_v1 = vpop.f32.mrf.mxu1  ;;  %6371 = vmatprep.subr.mxu1 %v6793_v7 }
 0xe6d   : > { %v3043_v2 = vadd.f32 %v5832_v61, %v3042_v1  ;;  %v5858_v1 = vld [vmem:[%s6921_s16 + $0xd] ss:$0 sm:$0xff] }
 0xe6e   : > { %v6357_v4 = vpop.f32.mrf.mxu1 }
 0xef1   : > { %v2866_v20 = vpop.xlane.xlu0 %2865 }
 0xef2   : > { %v2871_v32 = vmul.f32 0.03125, %v2866_v20 }
 0xef4   : > { %v2873_v6 = vsub.f32 %v2862_v27, %v2871_v32 }
 0xef5   : > { %v2869_v19 = vpop.xlane.xlu1 %2868 }
 0xef6   : > { %v2872_v33 = vmul.f32 0.03125, %v2869_v19  ;;  %v2875_v24 = vmul.f32 %v2873_v6, %v2873_v6 }
 0xef8   : > { %v2874_v34 = vsub.f32 %v2863_v3, %v2872_v33  ;;  %v2877_v35 = vsel %vm592_vm3, %v2875_v24, 0.0 }
 0xef9   : > { %2878 = vadd.xlane.f32.xlu0 %v2877_v35  ;;  %v5842_v35 = vld [vmem:[%s6921_s16 + $0x14] ss:$0 sm:$0xff] }
 0xefa   : > { %v2876_v36 = vmul.f32 %v2874_v34, %v2874_v34 }
 0xefc   : > { %v2880_v37 = vsel %vm592_vm3, %v2876_v36, 0.0 }
 0xefd   : > { %2881 = vadd.xlane.f32.xlu1 %v2880_v37 }
 0xf82   : > { %v2879_v43 = vpop.xlane.xlu0 %2878 }
 0xf83   : > { %v2883_v44 = vmul.f32 0.03125, %v2879_v43 }
 0xf85   : > { %v2885_v13 = vadd.f32 1e-12, %v2883_v44 }
 0xf86   : > { %v2882_v45 = vpop.xlane.xlu1 %2881 }
 0xf87   : > { %6686 = vrsqrt.f32 %v2885_v13  ;;  %v2884_v46 = vmul.f32 0.03125, %v2882_v45  ;;  %v6630_v45 = vld [vmem:[%s6884_s23 + $0xd8] sm:$0xff]  }
 0xf89   : > { %v2886_v47 = vadd.f32 1e-12, %v2884_v46 }
 0xf8b   : > { %6688 = vrsqrt.f32 %v2886_v47 }
 0xf94   : > { %v6687_v49 = vpop.eup %6686 }
 0xf95   : > { %v2889_v50 = vmul.f32 %v6687_v49, %v2873_v6  ;;  %v6632_v49 = vld [vmem:[%s6889_s26 + $0x18] sm:$0xff]  }
 0xf97   : > { %v2895_v55 = vmul.f32 %v2894_v51, %v2889_v50 }
 0xf98   : > { %v6689_v53 = vpop.eup %6688 }
 0xf99   : > { %v2890_v54 = vmul.f32 %v6689_v53, %v2874_v34  ;;  %v7220_v58 = vadd.f32 %v2900_v56, %v2895_v55 }
 0xf9b   : > { %v2896_v57 = vmul.f32 %v2894_v51, %v2890_v54  ;;  %v6633_v51 = vld [vmem:[%s6889_s26 + $0x10] sm:$0xff]  }
 0xf9d   : > { %v7222_v59 = vadd.f32 %v2900_v56, %v2896_v57 }
 0xf9f   : > { %v7226_v60 = vpack.c.bf16 %v7222_v59, %v7220_v58 }
 0xfa1   : > { %6347 = vmatmul.mubr.msk.bf16.vlgmr.msra.gmra.mxu0 %vm592_vm3, %v7226_v60 }
 0xfa2   : > { %6362 = vmatprep.mubr.msk.bf16.mxu0 %vm6794_vm2, %v6793_v7  ;;  %6359 = vmatpush3.bf16.msra.mxu0 %v6628_v18  ;;  %v6635_v18 = vld [vmem:[%s6889_s26 + $0x50] sm:$0xff]  }
 0xfa3   : > { %6360 = vmatprep.subr.bf16.mxu0 %v6793_v7 }
 0xfa6   : > { %6361 = vmatpush3.bf16.msra.mxu0 %v6629_v21 }
 0xfa7   : > { %6376 = vmatprep.subr.mxu0 %v6793_v7 }
 0xfa9   : > { %6363 = vmatmul.mubr.msk.bf16.vlgmr.msra.gmra.mxu0 %vm592_vm3, %v7205_v40 }
 0xfaa   : > { %6378 = vmatprep.mubr.msk.f32.mxu0 %vm6794_vm2, %v6793_v7 }
0x1061   : > { %v2966_v8 = vpop.f32.mrf.mxu0 }
0x1062   : > { %v2967_v9 = vadd.f32 %v5827_v5, %v2966_v8 }
0x1063   : > { %v6348_v10 = vpop.f32.mrf.mxu0 }
0x1064   : > { %6369 = vmatmul.mubr.msk.f32.vlgmr.msra.gmra.mxu1 %vm769_vm4, %v2967_v9 }
0x1065   : > { %6372 = vmatpush3.xpose.msk.msra.mxu1 %vm769_vm4, %v3043_v2  ;;  %v2969_v12 = vpop.f32.mrf.mxu0  ;;  %6373 = vmatprep.mubr.msk.f32.mxu1 %vm6794_vm2, %v6793_v7 }
0x1066   : > { %v2970_v15 = vadd.f32 %v5827_v5, %v2969_v12  ;;  %6381 = vmatprep.subr.mxu1 %v6793_v7 }
0x1067   : > { %v6349_v16 = vpop.f32.mrf.mxu0 }
0x1068   : > { %6374 = vmatmul.mubr.msk.f32.vlgmr.msra.gmra.mxu1 %vm769_vm4, %v2970_v15  ;;  %v6634_v16 = vld [vmem:[%s6889_s26 + $0x58] sm:$0xff]  }
0x1069   : > { %6383 = vmatprep.mubr.msk.f32.mxu1 %vm6794_vm2, %v6793_v7  ;;  %v3105_v36 = vpop.f32.mrf.mxu0 }
0x106a   : > { %v3106_v37 = vadd.f32 %v5842_v35, %v3105_v36 }
0x106b   : > { %v6364_v38 = vpop.f32.mrf.mxu0 }
0x106c   : > { %6377 = vmatpush3.msra.mxu0 %v3106_v37 }
0x106d   : > { %v3108_v39 = vpop.f32.mrf.mxu0  ;;  %6386 = vmatprep.subr.bf16.mxu0 %v6793_v7 }
0x106e   : > { %v3109_v41 = vadd.f32 %v5842_v35, %v3108_v39 }
0x106f   : > { %v6365_v42 = vpop.f32.mrf.mxu0 }
0x1070   : > { %6382 = vmatpush3.msra.mxu1 %v3109_v41 }
0x1071   : > { %6394 = vmatprep.subr.bf16.mxu1 %v6793_v7 }
0x1124   : > { %v3184_v22 = vpop.f32.mrf.mxu1 }
0x1125   : > { %v3264_v23 = vmul.f32 0.35355338, %v3184_v22 }
0x1126   : > { %v6370_v25 = vpop.f32.mrf.mxu1 }
0x1127   : > { %v3266_v26 = vsel %vm769_vm4, %v3264_v23, -inf }
0x1128   : > { %3267 = vmax.xlane.f32.xlu1 %v3266_v26  ;;  %v3260_v27 = vpop.f32.mrf.mxu1 }
0x1129   : > { %v3265_v28 = vmul.f32 0.35355338, %v3260_v27 }
0x112a   : > { %v6375_v29 = vpop.f32.mrf.mxu1 }
0x112b   : > { %v3269_v30 = vsel %vm769_vm4, %v3265_v28, -inf }
0x112c   : > { %3270 = vmax.xlane.f32.xlu0 %v3269_v30 }
0x11b1   : > { %v3268_v31 = vpop.xlane.xlu1 %3267 }
0x11b2   : > { %v3272_v3 = vsub.f32 %v3264_v23, %v3268_v31 }
0x11b4   : > { %v3274_v17 = vmul.f32 1.442695, %v3272_v3 }
0x11b5   : > { %v3271_v20 = vpop.xlane.xlu0 %3270 }
0x11b6   : > { %6690 = vpow2.f32 %v3274_v17  ;;  %v3273_v32 = vsub.f32 %v3265_v28, %v3271_v20 }
0x11b8   : > { %v3276_v6 = vmul.f32 1.442695, %v3273_v32 }
0x11ba   : > { %6692 = vpow2.f32 %v3276_v6 }
0x11c3   : > { %v6691_v19 = vpop.eup %6690 }
0x11c4   : > { %v3278_v33 = vsel %vm769_vm4, %v6691_v19, 0.0 }
0x11c5   : > { %3279 = vadd.xlane.f32.xlu1 %v3278_v33 }
0x11c7   : > { %v6693_v24 = vpop.eup %6692 }
0x11c8   : > { %v3281_v34 = vsel %vm769_vm4, %v6693_v24, 0.0 }
0x11c9   : > { %3282 = vadd.xlane.f32.xlu0 %v3281_v34  ;;  %v5876_v34 = vld [vmem:[%s6921_s16 + $0x15] ss:$0 sm:$0xff] }
0x124e   : > { %v3280_v43 = vpop.xlane.xlu1 %3279 }
0x124f   : > { %6694 = vrcp.f32 %v3280_v43 }
0x1252   : > { %v3283_v44 = vpop.xlane.xlu0 %3282 }
0x1253   : > { %6696 = vrcp.f32 %v3283_v44 }
0x125c   : > { %v6695_v13 = vpop.eup %6694 }
0x125d   : > { %v3286_v46 = vmul.f32 %v6695_v13, %v6691_v19 }
0x125f   : > { %6379 = vmatmul.mubr.msk.f32.vlgmr.msra.gmra.mxu0 %vm769_vm4, %v3286_v46 }
0x1260   : > { %v6697_v47 = vpop.eup %6696  ;;  %6387 = vmatpush3.bf16.msra.mxu0 %v6630_v45  ;;  %6390 = vmatprep.mubr.msk.bf16.mxu0 %vm6794_vm2, %v6793_v7  ;;  %v5852_v45 = vld [vmem:[%s6896_s11 + $0x10] sm:$0xf] }
0x1261   : > { %6388 = vmatprep.subr.bf16.mxu0 %v6793_v7  ;;  %v3287_v50 = vmul.f32 %v6697_v47, %v6693_v24 }
0x1263   : > { %6384 = vmatmul.mubr.msk.f32.vlgmr.msra.gmra.mxu1 %vm769_vm4, %v3287_v50  ;;  %v6637_v50 = vld [vmem:[%s6889_s26 + $0x20] sm:$0xff]  }
0x1264   : > { %6389 = vmatpush3.bf16.msra.mxu0 %v6631_v48  ;;  %6395 = vmatpush3.bf16.msra.mxu1 %v6632_v49  ;;  %v4011_v48 = vsel %vm1620_vm5, %v5852_v45, 0  ;;  %v6636_v49 = vld [vmem:[%s6889_s26 + $0x28] sm:$0xff]   ;;  %v5912_v45 = vld [vmem:[%s6921_s16 + $0x16] ss:$0 sm:$0xff] }
0x1265   : > { %6396 = vmatprep.subr.bf16.mxu1 %v6793_v7  ;;  %6398 = vmatprep.mubr.msk.bf16.mxu1 %vm6794_vm2, %v6793_v7 }
0x1266   : > { %6402 = vmatprep.subr.bf16.mxu0 %v6793_v7 }
0x1267   : > { %6391 = vmatmul.mubr.msk.bf16.vlgmr.msra.gmra.mxu0 %vm592_vm3, %v7226_v60 }
0x1268   : > { %6397 = vmatpush3.bf16.msra.mxu1 %v6633_v51  ;;  %6406 = vmatprep.mubr.msk.bf16.mxu0 %vm6794_vm2, %v6793_v7  ;;  %v5886_v51 = vld [vmem:[%s6896_s11 + $0x14] sm:$0xf] }
0x1269   : > { %6410 = vmatprep.subr.mxu1 %v6793_v7  ;;  %6403 = vmatpush3.bf16.msra.mxu0 %v6634_v16 }
0x126a   : > { %6404 = vmatprep.subr.bf16.mxu0 %v6793_v7 }
0x126b   : > { %6399 = vmatmul.mubr.msk.bf16.vlgmr.msra.gmra.mxu1 %vm592_vm3, %v7205_v40 }
0x126c   : > { %6412 = vmatprep.mubr.msk.f32.mxu1 %vm6794_vm2, %v6793_v7 }
0x126d   : > { %6405 = vmatpush3.bf16.msra.mxu0 %v6635_v18 }
0x126e   : > { %6420 = vmatprep.subr.mxu0 %v6793_v7 }
0x1270   : > { %6407 = vmatmul.mubr.msk.bf16.vlgmr.msra.gmra.mxu0 %vm592_vm3, %v7205_v40 }
0x1271   : > { %6422 = vmatprep.mubr.msk.f32.mxu0 %vm6794_vm2, %v6793_v7 }
0x131f   : > { %v7281_v52 = vpop.f32.mrf.mxu0 }
0x1321   : > { %v6380_v53 = vpop.f32.mrf.mxu0 }
0x1322   : > { %v3964_v53 = vsel %vm1620_vm5, %v5886_v51, 0 }
0x1323   : > { %v7283_v54 = vpop.f32.mrf.mxu1 }
0x1324   : > { %v3434_v55 = vpack.c.bf16 %v7283_v54, %v7281_v52 }
0x1325   : > { %v6385_v56 = vpop.f32.mrf.mxu1 }
0x1326   : > { %v6638_v56 = vld [vmem:[%s6884_s23 + $0xe8] sm:$0xff]  }
0x1327   : > { %v3496_v57 = vpop.f32.mrf.mxu0 }
0x1328   : > { %v3497_v8 = vadd.f32 %v5858_v1, %v3496_v57 }
0x1329   : > { %v6392_v61 = vpop.f32.mrf.mxu0 }
0x132b   : > { %v3499_v63 = vpop.f32.mrf.mxu0  ;;  %v3562_v0 = vpop.f32.mrf.mxu1 }
0x132c   : > { %v3563_v2 = vadd.f32 %v5867_v62, %v3562_v0  ;;  %v3500_v15 = vadd.f32 %v5858_v1, %v3499_v63  ;;  %v6639_v63 = vld [vmem:[%s6884_s23 + $0xe0] sm:$0xff]  }
0x132d   : > { %v6393_v4 = vpop.f32.mrf.mxu0  ;;  %v6400_v5 = vpop.f32.mrf.mxu1 }
0x132e   : > { %6411 = vmatpush3.xpose.msk.msra.mxu1 %vm769_vm4, %v3563_v2  ;;  %v5903_v4 = vld [vmem:[%s6921_s16 + $0x12] ss:$0 sm:$0xff] }
0x132f   : > { %v3565_v9 = vpop.f32.mrf.mxu1  ;;  %6415 = vmatprep.subr.mxu1 %v6793_v7 }
0x1330   : > { %v3566_v10 = vadd.f32 %v5867_v62, %v3565_v9  ;;  %v3628_v35 = vpop.f32.mrf.mxu0 }
0x1331   : > { %v6401_v12 = vpop.f32.mrf.mxu1  ;;  %6413 = vmatmul.mubr.msk.f32.vlgmr.msra.gmra.mxu1 %vm769_vm4, %v3497_v8  ;;  %v3629_v36 = vadd.f32 %v5876_v34, %v3628_v35 }
0x1332   : > { %6416 = vmatpush3.xpose.msk.msra.mxu1 %vm769_vm4, %v3566_v10  ;;  %6417 = vmatprep.mubr.msk.f32.mxu1 %vm6794_vm2, %v6793_v7  ;;  %v6408_v37 = vpop.f32.mrf.mxu0 }
0x1333   : > { %6425 = vmatprep.subr.mxu1 %v6793_v7  ;;  %6421 = vmatpush3.msra.mxu0 %v3629_v36 }
0x1334   : > { %v3631_v38 = vpop.f32.mrf.mxu0  ;;  %6430 = vmatprep.subr.bf16.mxu0 %v6793_v7 }
0x1335   : > { %6418 = vmatmul.mubr.msk.f32.vlgmr.msra.gmra.mxu1 %vm769_vm4, %v3500_v15  ;;  %v3632_v39 = vadd.f32 %v5876_v34, %v3631_v38 }
0x1336   : > { %6427 = vmatprep.mubr.msk.f32.mxu1 %vm6794_vm2, %v6793_v7  ;;  %v6409_v41 = vpop.f32.mrf.mxu0 }
0x1337   : > { %6426 = vmatpush3.msra.mxu1 %v3632_v39 }
0x1338   : > { %6436 = vmatprep.subr.bf16.mxu1 %v6793_v7 }
0x13f1   : > { %v3707_v21 = vpop.f32.mrf.mxu1 }
0x13f2   : > { %v3787_v22 = vmul.f32 0.35355338, %v3707_v21 }
0x13f3   : > { %v6414_v23 = vpop.f32.mrf.mxu1 }
0x13f4   : > { %v3789_v25 = vsel %vm769_vm4, %v3787_v22, -inf  ;;  %v5894_v23 = vld [vmem:[%s6921_s16 + $0xe] ss:$0 sm:$0xff] }
0x13f5   : > { %3790 = vmax.xlane.f32.xlu0 %v3789_v25  ;;  %v3783_v26 = vpop.f32.mrf.mxu1 }
0x13f6   : > { %v3788_v27 = vmul.f32 0.35355338, %v3783_v26 }
0x13f7   : > { %v6419_v28 = vpop.f32.mrf.mxu1 }
0x13f8   : > { %v3792_v29 = vsel %vm769_vm4, %v3788_v27, -inf }
0x13f9   : > { %3793 = vmax.xlane.f32.xlu1 %v3792_v29 }
0x147e   : > { %v3791_v30 = vpop.xlane.xlu0 %3790 }
0x147f   : > { %v3795_v31 = vsub.f32 %v3787_v22, %v3791_v30 }
0x1481   : > { %v3797_v3 = vmul.f32 1.442695, %v3795_v31  ;;  %v6640_v31 = vld [vmem:[%s6889_s26 + $0x68] sm:$0xff]  }
0x1482   : > { %v3794_v17 = vpop.xlane.xlu1 %3793 }
0x1483   : > { %6698 = vpow2.f32 %v3797_v3  ;;  %v3796_v20 = vsub.f32 %v3788_v27, %v3794_v17  ;;  %v6641_v3 = vld [vmem:[%s6889_s26 + $0x60] sm:$0xff]  }
0x1485   : > { %v3799_v32 = vmul.f32 1.442695, %v3796_v20 }
0x1487   : > { %6700 = vpow2.f32 %v3799_v32 }
0x1490   : > { %v6699_v6 = vpop.eup %6698 }
0x1491   : > { %v3801_v19 = vsel %vm769_vm4, %v6699_v6, 0.0 }
0x1492   : > { %3802 = vadd.xlane.f32.xlu0 %v3801_v19 }
0x1494   : > { %v6701_v33 = vpop.eup %6700 }
0x1495   : > { %v3804_v24 = vsel %vm769_vm4, %v6701_v33, 0.0 }
0x1496   : > { %3805 = vadd.xlane.f32.xlu1 %v3804_v24 }
0x151b   : > { %v3803_v42 = vpop.xlane.xlu0 %3802 }
0x151c   : > { %6702 = vrcp.f32 %v3803_v42 }
0x151f   : > { %v3806_v43 = vpop.xlane.xlu1 %3805 }
0x1520   : > { %6704 = vrcp.f32 %v3806_v43 }
0x1529   : > { %v6703_v44 = vpop.eup %6702 }
0x152a   : > { %v3809_v13 = vmul.f32 %v6703_v44, %v6699_v6 }
0x152c   : > { %6423 = vmatmul.mubr.msk.f32.vlgmr.msra.gmra.mxu0 %vm769_vm4, %v3809_v13 }
0x152d   : > { %v6705_v46 = vpop.eup %6704  ;;  %6432 = vmatprep.mubr.msk.bf16.mxu0 %vm6794_vm2, %v6793_v7  ;;  %6431 = vmatpush3.bf16.msra.mxu0 %v3964_v53 }
0x152e   : > { %v3810_v47 = vmul.f32 %v6705_v46, %v6701_v33  ;;  %6442 = vmatprep.subr.bf16.mxu0 %v6793_v7 }
0x1530   : > { %6428 = vmatmul.mubr.msk.f32.vlgmr.msra.gmra.mxu1 %vm769_vm4, %v3810_v47 }
0x1531   : > { %6437 = vmatpush3.bf16.msra.mxu1 %v4011_v48  ;;  %6438 = vmatprep.mubr.msk.bf16.mxu1 %vm6794_vm2, %v6793_v7 }
0x1532   : > { %6450 = vmatprep.subr.bf16.mxu1 %v6793_v7 }
0x1534   : > { %6439 = vmatmul.mubr.msk.bf16.vlgmr.msra.gmra.mxu1 %vm769_vm4, %v3434_v55 }
0x1535   : > { %6451 = vmatpush3.bf16.msra.mxu1 %v6636_v49  ;;  %6454 = vmatprep.mubr.msk.bf16.mxu1 %vm6794_vm2, %v6793_v7 }
0x1536   : > { %6452 = vmatprep.subr.bf16.mxu1 %v6793_v7 }
0x1539   : > { %6453 = vmatpush3.bf16.msra.mxu1 %v6637_v50 }
0x153a   : > { %6466 = vmatprep.subr.mxu1 %v6793_v7 }
0x153c   : > { %6455 = vmatmul.mubr.msk.bf16.vlgmr.msra.gmra.mxu1 %vm592_vm3, %v7205_v40 }
0x153d   : > { %6468 = vmatprep.mubr.msk.f32.mxu1 %vm6794_vm2, %v6793_v7 }
0x15ec   : > { %v3880_v52 = vpop.f32.mrf.mxu0 }
0x15ee   : > { %v6424_v54 = vpop.f32.mrf.mxu0 }
0x15f0   : > { %v3953_v55 = vpop.f32.mrf.mxu1 }
0x15f1   : > { %v3957_v57 = vpack.c.bf16 %v3953_v55, %v3880_v52 }
0x15f2   : > { %v6429_v61 = vpop.f32.mrf.mxu1 }
0x15f3   : > { %6433 = vmatmul.mubr.msk.bf16.vlgmr.msra.gmra.mxu0 %vm769_vm4, %v3957_v57  ;;  %v6642_v57 = vld [vmem:[%s6884_s23 + $0xf8] sm:$0xff]  }
0x15f4   : > { %v7342_v62 = vpop.f32.mrf.mxu1  ;;  %6443 = vmatpush3.bf16.msra.mxu0 %v6638_v56  ;;  %6446 = vmatprep.mubr.msk.bf16.mxu0 %vm6794_vm2, %v6793_v7 }
0x15f5   : > { %6444 = vmatprep.subr.bf16.mxu0 %v6793_v7 }
0x15f6   : > { %v6440_v0 = vpop.f32.mrf.mxu1 }
0x15f7   : > { %v5922_v0 = vld [vmem:[%s6896_s11 + $0x18] sm:$0xf] }
0x15f8   : > { %v7348_v1 = vpop.f32.mrf.mxu1  ;;  %6445 = vmatpush3.bf16.msra.mxu0 %v6639_v63  ;;  %v6643_v63 = vld [vmem:[%s6884_s23 + $0xf0] sm:$0xff]  }
0x15f9   : > { %6458 = vmatprep.subr.bf16.mxu0 %v6793_v7 }
0x15fa   : > { %v6441_v2 = vpop.f32.mrf.mxu1 }
0x15fb   : > { %6447 = vmatmul.mubr.msk.bf16.vlgmr.msra.gmra.mxu0 %vm592_vm3, %v7226_v60  ;;  %v4581_v2 = vsel %vm1620_vm5, %v5922_v0, 0 }
0x15fc   : > { %6462 = vmatprep.mubr.msk.bf16.mxu0 %vm6794_vm2, %v6793_v7  ;;  %v4179_v5 = vpop.f32.mrf.mxu1  ;;  %6459 = vmatpush3.bf16.msra.mxu0 %v6640_v31 }
0x15fd   : > { %v4180_v8 = vadd.f32 %v5903_v4, %v4179_v5  ;;  %6460 = vmatprep.subr.bf16.mxu0 %v6793_v7 }
0x15fe   : > { %v6456_v9 = vpop.f32.mrf.mxu1 }
0x15ff   : > { %6467 = vmatpush3.xpose.msk.msra.mxu1 %vm769_vm4, %v4180_v8  ;;  %v6644_v9 = vld [vmem:[%s6889_s26 + $0x38] sm:$0xff]  }
0x1600   : > { %v4182_v10 = vpop.f32.mrf.mxu1  ;;  %6471 = vmatprep.subr.mxu1 %v6793_v7  ;;  %6461 = vmatpush3.bf16.msra.mxu0 %v6641_v3 }
0x1601   : > { %v4183_v12 = vadd.f32 %v5903_v4, %v4182_v10  ;;  %6476 = vmatprep.subr.mxu0 %v6793_v7 }
0x1602   : > { %v6457_v15 = vpop.f32.mrf.mxu1 }
0x1603   : > { %6463 = vmatmul.mubr.msk.bf16.vlgmr.msra.gmra.mxu0 %vm592_vm3, %v7205_v40  ;;  %v6645_v15 = vld [vmem:[%s6889_s26 + $0x30] sm:$0xff]  }
0x1604   : > { %6478 = vmatprep.mubr.msk.f32.mxu0 %vm6794_vm2, %v6793_v7 }
0x16b3   : > { %v7358_v16 = vpop.f32.mrf.mxu0 }
0x16b5   : > { %v6434_v18 = vpop.f32.mrf.mxu0 }
0x16b7   : > { %v7360_v21 = vpop.f32.mrf.mxu0 }
0x16b9   : > { %v6435_v22 = vpop.f32.mrf.mxu0 }
0x16bb   : > { %v4113_v25 = vpop.f32.mrf.mxu0 }
0x16bc   : > { %v4114_v26 = vadd.f32 %v5894_v23, %v4113_v25  ;;  %v4048_v25 = vadd.f32 %v7342_v62, %v7358_v16 }
0x16bd   : > { %v6448_v27 = vpop.f32.mrf.mxu0 }
0x16be   : > { %6469 = vmatmul.mubr.msk.f32.vlgmr.msra.gmra.mxu1 %vm769_vm4, %v4114_v26 }
0x16bf   : > { %6472 = vmatpush3.xpose.msk.msra.mxu1 %vm769_vm4, %v4183_v12  ;;  %v4116_v28 = vpop.f32.mrf.mxu0  ;;  %6473 = vmatprep.mubr.msk.f32.mxu1 %vm6794_vm2, %v6793_v7 }
0x16c0   : > { %v4117_v29 = vadd.f32 %v5894_v23, %v4116_v28  ;;  %6481 = vmatprep.subr.mxu1 %v6793_v7 }
0x16c1   : > { %v6449_v30 = vpop.f32.mrf.mxu0 }
0x16c2   : > { %6474 = vmatmul.mubr.msk.f32.vlgmr.msra.gmra.mxu1 %vm769_vm4, %v4117_v29  ;;  %v4051_v29 = vadd.f32 %v7348_v1, %v7360_v21  ;;  %v6646_v21 = vld [vmem:[%s6889_s26 + $0x78] sm:$0xff]  }
0x16c3   : > { %6483 = vmatprep.mubr.msk.f32.mxu1 %vm6794_vm2, %v6793_v7  ;;  %v4245_v46 = vpop.f32.mrf.mxu0 }
0x16c4   : > { %v4246_v47 = vadd.f32 %v5912_v45, %v4245_v46 }
0x16c5   : > { %v6464_v48 = vpop.f32.mrf.mxu0 }
0x16c6   : > { %6477 = vmatpush3.msra.mxu0 %v4246_v47 }
0x16c7   : > { %v4248_v49 = vpop.f32.mrf.mxu0  ;;  %6486 = vmatprep.subr.bf16.mxu0 %v6793_v7 }
0x16c8   : > { %v4249_v50 = vadd.f32 %v5912_v45, %v4248_v49 }
0x16c9   : > { %v6465_v51 = vpop.f32.mrf.mxu0 }
0x16ca   : > { %6482 = vmatpush3.msra.mxu1 %v4249_v50 }
0x16cb   : > { %6492 = vmatprep.subr.bf16.mxu1 %v6793_v7 }
0x177e   : > { %v4324_v17 = vpop.f32.mrf.mxu1 }
0x177f   : > { %v4404_v20 = vmul.f32 0.35355338, %v4324_v17  ;;  %v5938_v17 = vld [vmem:[%s6921_s16 + $0x13] ss:$0 sm:$0xff] }
0x1780   : > { %v6470_v32 = vpop.f32.mrf.mxu1 }
0x1781   : > { %v4406_v6 = vsel %vm769_vm4, %v4404_v20, -inf  ;;  %v5929_v32 = vld [vmem:[%s6921_s16 + $0xf] ss:$0 sm:$0xff] }
0x1782   : > { %4407 = vmax.xlane.f32.xlu0 %v4406_v6  ;;  %v4400_v19 = vpop.f32.mrf.mxu1 }
0x1783   : > { %v4405_v33 = vmul.f32 0.35355338, %v4400_v19 }
0x1784   : > { %v6475_v24 = vpop.f32.mrf.mxu1 }
0x1785   : > { %v4409_v34 = vsel %vm769_vm4, %v4405_v33, -inf }
0x1786   : > { %4410 = vmax.xlane.f32.xlu1 %v4409_v34  ;;  %v6647_v34 = vld [vmem:[%s6889_s26 + $0x70] sm:$0xff]  }
0x180b   : > { %v4408_v35 = vpop.xlane.xlu0 %4407 }
0x180c   : > { %v4412_v36 = vsub.f32 %v4404_v20, %v4408_v35 }
0x180e   : > { %v4414_v37 = vmul.f32 1.442695, %v4412_v36 }
0x180f   : > { %v4411_v38 = vpop.xlane.xlu1 %4410 }
0x1810   : > { %6706 = vpow2.f32 %v4414_v37  ;;  %v4413_v39 = vsub.f32 %v4405_v33, %v4411_v38 }
0x1812   : > { %v4416_v41 = vmul.f32 1.442695, %v4413_v39 }
0x1814   : > { %6708 = vpow2.f32 %v4416_v41 }
0x181d   : > { %v6707_v42 = vpop.eup %6706 }
0x181e   : > { %v4418_v43 = vsel %vm769_vm4, %v6707_v42, 0.0 }
0x181f   : > { %4419 = vadd.xlane.f32.xlu0 %v4418_v43 }
0x1821   : > { %v6709_v44 = vpop.eup %6708 }
0x1822   : > { %v4421_v13 = vsel %vm769_vm4, %v6709_v44, 0.0 }
0x1823   : > { %4422 = vadd.xlane.f32.xlu1 %v4421_v13 }
0x18a8   : > { %v4420_v53 = vpop.xlane.xlu0 %4419 }
0x18a9   : > { %6710 = vrcp.f32 %v4420_v53  ;;  %v5947_v53 = vld [vmem:[%s6921_s16 + $0x17] ss:$0 sm:$0xff] }
0x18ac   : > { %v4423_v52 = vpop.xlane.xlu1 %4422 }
0x18ad   : > { %6712 = vrcp.f32 %v4423_v52 }
0x18b6   : > { %v6711_v54 = vpop.eup %6710 }
0x18b7   : > { %v4426_v55 = vmul.f32 %v6711_v54, %v6707_v42 }
0x18b9   : > { %6479 = vmatmul.mubr.msk.f32.vlgmr.msra.gmra.mxu0 %vm769_vm4, %v4426_v55 }
0x18ba   : > { %v6713_v56 = vpop.eup %6712  ;;  %6488 = vmatprep.mubr.msk.bf16.mxu0 %vm6794_vm2, %v6793_v7  ;;  %6487 = vmatpush3.bf16.msra.mxu0 %v4581_v2 }
0x18bb   : > { %v4427_v61 = vmul.f32 %v6713_v56, %v6709_v44  ;;  %6500 = vmatprep.subr.bf16.mxu0 %v6793_v7 }
0x18bd   : > { %6484 = vmatmul.mubr.msk.f32.vlgmr.msra.gmra.mxu1 %vm769_vm4, %v4427_v61 }
0x18be   : > { %6493 = vmatpush3.bf16.msra.mxu1 %v6642_v57  ;;  %6496 = vmatprep.mubr.msk.bf16.mxu1 %vm6794_vm2, %v6793_v7 }
0x18bf   : > { %6494 = vmatprep.subr.bf16.mxu1 %v6793_v7 }
0x18c2   : > { %6495 = vmatpush3.bf16.msra.mxu1 %v6643_v63 }
0x18c3   : > { %6508 = vmatprep.subr.bf16.mxu1 %v6793_v7 }
0x18c5   : > { %6497 = vmatmul.mubr.msk.bf16.vlgmr.msra.gmra.mxu1 %vm592_vm3, %v7226_v60 }
0x18c6   : > { %6512 = vmatprep.mubr.msk.bf16.mxu1 %vm6794_vm2, %v6793_v7  ;;  %6509 = vmatpush3.bf16.msra.mxu1 %v6646_v21 }
0x18c7   : > { %6510 = vmatprep.subr.bf16.mxu1 %v6793_v7 }
0x18ca   : > { %6511 = vmatpush3.bf16.msra.mxu1 %v6647_v34 }
0x18cb   : > { %6526 = vmatprep.subr.mxu1 %v6793_v7 }
0x18cd   : > { %6513 = vmatmul.mubr.msk.bf16.vlgmr.msra.gmra.mxu1 %vm592_vm3, %v7205_v40 }
0x18ce   : > { %6528 = vmatprep.mubr.msk.f32.mxu1 %vm6794_vm2, %v6793_v7 }
0x1979   : > { %v4497_v4 = vpop.f32.mrf.mxu0 }
0x197b   : > { %v6480_v5 = vpop.f32.mrf.mxu0 }
0x197d   : > { %v4570_v8 = vpop.f32.mrf.mxu1 }
0x197e   : > { %v4574_v10 = vpack.c.bf16 %v4570_v8, %v4497_v4 }
0x197f   : > { %v6485_v12 = vpop.f32.mrf.mxu1 }
0x1980   : > { %6489 = vmatmul.mubr.msk.bf16.vlgmr.msra.gmra.mxu0 %vm769_vm4, %v4574_v10 }
0x1981   : > { %6501 = vmatpush3.bf16.msra.mxu0 %v6644_v9  ;;  %6504 = vmatprep.mubr.msk.bf16.mxu0 %vm6794_vm2, %v6793_v7  ;;  %v5957_v9 = vld [vmem:[%s6896_s11 + $0x1c] sm:$0xf] }
0x1982   : > { %6502 = vmatprep.subr.bf16.mxu0 %v6793_v7  ;;  %v5153_v10 = vsel %vm1620_vm5, %v5957_v9, 0 }
0x1985   : > { %v4685_v60 = vpop.f32.mrf.mxu1  ;;  %6503 = vmatpush3.bf16.msra.mxu0 %v6645_v15 }
0x1986   : > { %6516 = vmatprep.subr.mxu0 %v6793_v7  ;;  %v4686_v62 = vadd.f32 %v5929_v32, %v4685_v60 }
0x1987   : > { %v6498_v18 = vpop.f32.mrf.mxu1 }
0x1988   : > { %6505 = vmatmul.mubr.msk.bf16.vlgmr.msra.gmra.mxu0 %vm592_vm3, %v7205_v40 }
0x1989   : > { %v4688_v22 = vpop.f32.mrf.mxu1  ;;  %6518 = vmatprep.mubr.msk.f32.mxu0 %vm6794_vm2, %v6793_v7 }
0x198a   : > { %v4689_v1 = vadd.f32 %v5929_v32, %v4688_v22 }
0x198b   : > { %v6499_v23 = vpop.f32.mrf.mxu1 }
0x198c   : > { %v5200_v23 = vsub.s32 3, %v7189_v11 }
0x198d   : > { %v4817_v52 = vpop.f32.mrf.mxu1 }
0x198e   : > { %v4818_v54 = vadd.f32 %v5947_v53, %v4817_v52 }
0x198f   : > { %v6514_v55 = vpop.f32.mrf.mxu1 }
0x1990   : > { %6527 = vmatpush3.msra.mxu1 %v4818_v54 }
0x1991   : > { %v4820_v56 = vpop.f32.mrf.mxu1  ;;  %6536 = vmatprep.subr.bf16.mxu1 %v6793_v7 }
0x1992   : > { %v4821_v57 = vadd.f32 %v5947_v53, %v4820_v56  ;;  %v6650_v56 = vld [vmem:[%s6906_s22 + $0x18] sm:$0xff]  }
0x1993   : > { %v6515_v61 = vpop.f32.mrf.mxu1 }
0x1994   : > { %v6652_v61 = vld [vmem:[%s6906_s22 + $0x8] sm:$0xff]  }
0x1a40   : > { %v4617_v26 = vpop.f32.mrf.mxu0 }
0x1a41   : > { %v7416_v27 = vadd.f32 %v4617_v26, %v4048_v25  ;;  %v5201_v25 = vrot.slane %v7193_v14, %v5200_v23 }
0x1a42   : > { %v6490_v28 = vpop.f32.mrf.mxu0 }
0x1a44   : > { %v4620_v30 = vpop.f32.mrf.mxu0 }
0x1a45   : > { %v7420_v31 = vadd.f32 %v4620_v30, %v4051_v29 }
0x1a46   : > { %v6491_v3 = vpop.f32.mrf.mxu0 }
0x1a48   : > { %v4751_v20 = vpop.f32.mrf.mxu0 }
0x1a49   : > { %v4752_v6 = vadd.f32 %v5938_v17, %v4751_v20 }
0x1a4a   : > { %v6506_v19 = vpop.f32.mrf.mxu0 }
0x1a4b   : > { %6517 = vmatpush3.xpose.msk.msra.mxu0 %vm769_vm4, %v4752_v6 }
0x1a4c   : > { %v4754_v16 = vpop.f32.mrf.mxu0  ;;  %6521 = vmatprep.subr.mxu0 %v6793_v7 }
0x1a4d   : > { %v4755_v33 = vadd.f32 %v5938_v17, %v4754_v16 }
0x1a4e   : > { %v6507_v24 = vpop.f32.mrf.mxu0  ;;  %6519 = vmatmul.mubr.msk.f32.vlgmr.msra.gmra.mxu0 %vm769_vm4, %v4686_v62 }
0x1a4f   : > { %6522 = vmatpush3.xpose.msk.msra.mxu0 %vm769_vm4, %v4755_v33  ;;  %6523 = vmatprep.mubr.msk.f32.mxu0 %vm6794_vm2, %v6793_v7 }
0x1a50   : > { %6531 = vmatprep.subr.mxu0 %v6793_v7 }
0x1a52   : > { %6524 = vmatmul.mubr.msk.f32.vlgmr.msra.gmra.mxu0 %vm769_vm4, %v4689_v1 }
0x1a53   : > { %6533 = vmatprep.mubr.msk.f32.mxu0 %vm6794_vm2, %v6793_v7  ;;  %6532 = vmatpush3.msra.mxu0 %v4821_v57  ;;  %v6651_v57 = vld [vmem:[%s6906_s22 + $0x10] sm:$0xff]  }
0x1a54   : > { %6542 = vmatprep.subr.bf16.mxu0 %v6793_v7 }
0x1b0e   : > { %v4896_v35 = vpop.f32.mrf.mxu0 }
0x1b0f   : > { %v4976_v36 = vmul.f32 0.35355338, %v4896_v35 }
0x1b10   : > { %v6520_v37 = vpop.f32.mrf.mxu0 }
0x1b11   : > { %v4978_v38 = vsel %vm769_vm4, %v4976_v36, -inf }
0x1b12   : > { %4979 = vmax.xlane.f32.xlu0 %v4978_v38  ;;  %v4972_v39 = vpop.f32.mrf.mxu0 }
0x1b13   : > { %v4977_v41 = vmul.f32 0.35355338, %v4972_v39 }
0x1b14   : > { %v6525_v42 = vpop.f32.mrf.mxu0 }
0x1b15   : > { %v4981_v43 = vsel %vm769_vm4, %v4977_v41, -inf }
0x1b16   : > { %4982 = vmax.xlane.f32.xlu1 %v4981_v43 }
0x1b9b   : > { %v4980_v44 = vpop.xlane.xlu0 %4979 }
0x1b9c   : > { %v4984_v13 = vsub.f32 %v4976_v36, %v4980_v44  ;;  %v6648_v36 = vld [vmem:[%s6901_s17 + $0x8] sm:$0xff]   ;;  %v5234_v44 = vsub.s32 4, %v7189_v11 }
0x1b9e   : > { %v4986_v45 = vmul.f32 1.442695, %v4984_v13 }
0x1b9f   : > { %v4983_v40 = vpop.xlane.xlu1 %4982 }
0x1ba0   : > { %6714 = vpow2.f32 %v4986_v45  ;;  %v4985_v46 = vsub.f32 %v4977_v41, %v4983_v40  ;;  %v7476_v40 = vld [vmem:[%s6912_s2] sm:$0xff] }
0x1ba2   : > { %v4988_v47 = vmul.f32 1.442695, %v4985_v46  ;;  %v5235_v46 = vrot.slane %v7476_v40, %v5234_v44  ;;  %v6795_v44 = vmov -1.0  }
0x1ba4   : > { %6716 = vpow2.f32 %v4988_v47  ;;  %v5240_v47 = vsub.s32 5, %v7189_v11 }
0x1bad   : > { %v6715_v48 = vpop.eup %6714 }
0x1bae   : > { %v4990_v49 = vsel %vm769_vm4, %v6715_v48, 0.0 }
0x1baf   : > { %4991 = vadd.xlane.f32.xlu0 %v4990_v49 }
0x1bb1   : > { %v6717_v50 = vpop.eup %6716 }
0x1bb2   : > { %v4993_v51 = vsel %vm769_vm4, %v6717_v50, 0.0 }
0x1bb3   : > { %4994 = vadd.xlane.f32.xlu1 %v4993_v51  ;;  %v5241_v51 = vrot.slane %v7476_v40, %v5240_v47 }
0x1c38   : > { %v4992_v63 = vpop.xlane.xlu0 %4991 }
0x1c39   : > { %6718 = vrcp.f32 %v4992_v63  ;;  %v6653_v63 = vld [vmem:[%s6906_s22] sm:$0xff]  }
0x1c3c   : > { %v4995_v0 = vpop.xlane.xlu1 %4994 }
0x1c3d   : > { %6720 = vrcp.f32 %v4995_v0  ;;  %v5959_v0 = vld [vmem:[%s537_s30] ss:$0 sm:$0xff] }
0x1c46   : > { %v6719_v2 = vpop.eup %6718 }
0x1c47   : > { %v4998_v4 = vmul.f32 %v6719_v2, %v6715_v48 }
0x1c49   : > { %6529 = vmatmul.mubr.msk.f32.vlgmr.msra.gmra.mxu1 %vm769_vm4, %v4998_v4 }
0x1c4a   : > { %v6721_v5 = vpop.eup %6720  ;;  %6538 = vmatprep.mubr.msk.bf16.mxu1 %vm6794_vm2, %v6793_v7  ;;  %6537 = vmatpush3.bf16.msra.mxu1 %v5153_v10 }
0x1c4b   : > { %v4999_v8 = vmul.f32 %v6721_v5, %v6717_v50  ;;  %6550 = vmatprep.subr.bf16.mxu1 %v6793_v7 }
0x1c4d   : > { %6534 = vmatmul.mubr.msk.f32.vlgmr.msra.gmra.mxu0 %vm769_vm4, %v4999_v8 }
0x1c4e   : > { %6546 = vmatprep.mubr.msk.bf16.mxu0 %vm6794_vm2, %v6793_v7  ;;  %6543 = vmatpush3.bf16.msra.mxu0 %v6648_v36 }
0x1c4f   : > { %6544 = vmatprep.subr.bf16.mxu0 %v6793_v7 }
0x1d09   : > { %v5069_v12 = vpop.f32.mrf.mxu1 }
0x1d0b   : > { %v6530_v15 = vpop.f32.mrf.mxu1 }
0x1d0d   : > { %v5142_v60 = vpop.f32.mrf.mxu0 }
0x1d0e   : > { %v5146_v18 = vpack.c.bf16 %v5142_v60, %v5069_v12 }
0x1d0f   : > { %v6535_v22 = vpop.f32.mrf.mxu0 }
0x1d10   : > { %6539 = vmatmul.mubr.msk.bf16.vlgmr.msra.gmra.mxu1 %vm769_vm4, %v5146_v18 }
0x1d11   : > { %6558 = vmatprep.mubr.msk.bf16.mxu1 %vm6794_vm2, %v6793_v7  ;;  %6551 = vmatpush3.bf16.msra.mxu1 %v6650_v56 }
0x1d12   : > { %6552 = vmatprep.subr.bf16.mxu1 %v6793_v7 }
0x1d15   : > { %6553 = vmatpush3.bf16.msra.mxu1 %v6651_v57 }
0x1d16   : > { %6554 = vmatprep.subr.bf16.mxu1 %v6793_v7 }
0x1d19   : > { %6555 = vmatpush3.bf16.msra.mxu1 %v6652_v61 }
0x1d1a   : > { %6556 = vmatprep.subr.bf16.mxu1 %v6793_v7 }
0x1d1d   : > { %6557 = vmatpush3.bf16.msra.mxu1 %v6653_v63  ;;  %v5375_v63 = vsub.s32 6, %v7189_v11 }
0x1dd0   : > { %v5189_v26 = vpop.f32.mrf.mxu1 }
0x1dd1   : > { %v5196_v28 = vadd.f32 %v5189_v26, %v7416_v27 }
0x1dd2   : > { %v6540_v29 = vpop.f32.mrf.mxu1 }
0x1dd3   : > { %v5202_v30 = vadd.f32 %v5201_v25, %v5196_v28 }
0x1dd4   : > { %v5192_v3 = vpop.f32.mrf.mxu1 }
0x1dd5   : > { %v5197_v17 = vadd.f32 %v5192_v3, %v7420_v31  ;;  %v5204_v20 = vadd.f32 %v5202_v30, %v7220_v58 }
0x1dd6   : > { %v6541_v32 = vpop.f32.mrf.mxu1 }
0x1dd7   : > { %v5203_v6 = vadd.f32 %v5201_v25, %v5197_v17  ;;  %v5206_v19 = vsel %vm592_vm3, %v5204_v20, 0.0 }
0x1dd8   : > { %5207 = vadd.xlane.f32.xlu0 %v5206_v19 }
0x1dd9   : > { %v5205_v62 = vadd.f32 %v5203_v6, %v7222_v59  ;;  %v6649_v59 = vld [vmem:[%s6901_s17] sm:$0xff]  }
0x1dda   : > { %6545 = vmatpush3.bf16.msra.mxu0 %v6649_v59 }
0x1ddb   : > { %v5209_v14 = vsel %vm592_vm3, %v5205_v62, 0.0 }
0x1ddc   : > { %5210 = vadd.xlane.f32.xlu1 %v5209_v14 }
0x1e61   : > { %v5208_v27 = vpop.xlane.xlu0 %5207 }
0x1e62   : > { %v5212_v16 = vmul.f32 0.03125, %v5208_v27 }
0x1e64   : > { %v5214_v33 = vsub.f32 %v5204_v20, %v5212_v16 }
0x1e65   : > { %v5211_v24 = vpop.xlane.xlu1 %5210 }
0x1e66   : > { %v5213_v1 = vmul.f32 0.03125, %v5211_v24  ;;  %v5216_v31 = vmul.f32 %v5214_v33, %v5214_v33 }
0x1e68   : > { %v5215_v21 = vsub.f32 %v5205_v62, %v5213_v1  ;;  %v5218_v58 = vsel %vm592_vm3, %v5216_v31, 0.0 }
0x1e69   : > { %5219 = vadd.xlane.f32.xlu0 %v5218_v58 }
0x1e6a   : > { %v5217_v34 = vmul.f32 %v5215_v21, %v5215_v21 }
0x1e6c   : > { %v5221_v35 = vsel %vm592_vm3, %v5217_v34, 0.0 }
0x1e6d   : > { %5222 = vadd.xlane.f32.xlu1 %v5221_v35 }
0x1ef2   : > { %v5220_v37 = vpop.xlane.xlu0 %5219 }
0x1ef3   : > { %v5224_v38 = vmul.f32 0.03125, %v5220_v37 }
0x1ef5   : > { %v5226_v39 = vadd.f32 1e-12, %v5224_v38 }
0x1ef6   : > { %v5223_v41 = vpop.xlane.xlu1 %5222 }
0x1ef7   : > { %6722 = vrsqrt.f32 %v5226_v39  ;;  %v5225_v42 = vmul.f32 0.03125, %v5223_v41 }
0x1ef9   : > { %v5227_v43 = vadd.f32 1e-12, %v5225_v42 }
0x1efb   : > { %6724 = vrsqrt.f32 %v5227_v43 }
0x1f04   : > { %v6723_v13 = vpop.eup %6722 }
0x1f05   : > { %v5230_v45 = vmul.f32 %v6723_v13, %v5214_v33 }
0x1f07   : > { %v5236_v50 = vmul.f32 %v5235_v46, %v5230_v45 }
0x1f08   : > { %v6725_v48 = vpop.eup %6724 }
0x1f09   : > { %v5231_v49 = vmul.f32 %v6725_v48, %v5215_v21  ;;  %v7481_v52 = vadd.f32 %v5241_v51, %v5236_v50 }
0x1f0b   : > { %v5237_v53 = vmul.f32 %v5235_v46, %v5231_v49 }
0x1f0d   : > { %v7483_v54 = vadd.f32 %v5241_v51, %v5237_v53 }
0x1f0f   : > { %v5244_v55 = vpack.c.bf16 %v7483_v54, %v7481_v52 }
0x1f11   : > { %6547 = vmatmul.mubr.msk.bf16.vlgmr.msra.gmra.mxu0 %vm592_vm3, %v5244_v55 }
0x1fd1   : > { %v5305_v2 = vpop.f32.mrf.mxu0 }
0x1fd2   : > { %v5306_v4 = vadd.f32 %v5959_v0, %v5305_v2 }
0x1fd3   : > { %v6548_v5 = vpop.f32.mrf.mxu0 }
0x1fd4   : > { %v5314_v8 = vmul.f32 0.70710677, %v5306_v4  ;;  %v5312_v51 = vmul.f32 0.5, %v5306_v4 }
0x1fd5   : > { %v5308_v9 = vpop.f32.mrf.mxu0 }
0x1fd6   : > { %v5320_v10 = vand.u32 2147483647, %v5314_v8  ;;  %v5309_v12 = vadd.f32 %v5959_v0, %v5308_v9  ;;  %vm5316_vm6 = vcmp.ge.f32.partialorder %v5314_v8, 0.0  ;;  %v5376_v0 = vrot.slane %v7476_v40, %v5375_v63 }
0x1fd7   : > { %v6549_v15 = vpop.f32.mrf.mxu0  ;;  %v5318_v13 = vsel %vm5316_vm6, 1.0, %v6795_v44 }
0x1fd8   : > { %v5322_v60 = vmul.f32 0.3275911, %v5320_v10  ;;  %v5315_v18 = vmul.f32 0.70710677, %v5309_v12  ;;  %v5346_v26 = vsub.f32 0.0, %v5320_v10  ;;  %v5313_v53 = vmul.f32 0.5, %v5309_v12 }
0x1fda   : > { %v5324_v22 = vadd.f32 1.0, %v5322_v60  ;;  %v5321_v23 = vand.u32 2147483647, %v5315_v18  ;;  %v5348_v28 = vmul.f32 %v5346_v26, %v5320_v10  ;;  %vm5317_vm7 = vcmp.ge.f32.partialorder %v5315_v18, 0.0 }
0x1fdb   : > { %v5319_v48 = vsel %vm5317_vm7, 1.0, %v6795_v44 }
0x1fdc   : > { %6726 = vrcp.f32 %v5324_v22  ;;  %v5323_v7 = vmul.f32 0.3275911, %v5321_v23  ;;  %v5347_v29 = vsub.f32 0.0, %v5321_v23  ;;  %v5350_v17 = vmul.f32 1.442695, %v5348_v28 }
0x1fde   : > { %v5325_v25 = vadd.f32 1.0, %v5323_v7  ;;  %v5349_v20 = vmul.f32 %v5347_v29, %v5321_v23 }
0x1fe0   : > { %6728 = vrcp.f32 %v5325_v25  ;;  %v5352_v14 = vmul.f32 1.442695, %v5349_v20 }
0x1fe1   : > { %6730 = vpow2.f32 %v5350_v17 }
0x1fe2   : > { %6732 = vpow2.f32 %v5352_v14 }
0x1fe9   : > { %v6727_v30 = vpop.eup %6726 }
0x1fea   : > { %v5328_v3 = vmul.f32 1.0614054, %v6727_v30 }
0x1fec   : > { %v5330_v32 = vadd.f32 -1.4531521, %v5328_v3 }
0x1fed   : > { %v6729_v6 = vpop.eup %6728 }
0x1fee   : > { %v5332_v19 = vmul.f32 %v6727_v30, %v5330_v32  ;;  %v5329_v62 = vmul.f32 1.0614054, %v6729_v6  ;;  %v6731_v37 = vpop.eup %6730 }
0x1fef   : > { %v6733_v43 = vpop.eup %6732 }
0x1ff0   : > { %v5334_v27 = vadd.f32 1.4214138, %v5332_v19  ;;  %v5331_v16 = vadd.f32 -1.4531521, %v5329_v62  ;;  %v5476_v62 = vsub.s32 7, %v7189_v11 }
0x1ff2   : > { %v5336_v33 = vmul.f32 %v6727_v30, %v5334_v27  ;;  %v5333_v24 = vmul.f32 %v6729_v6, %v5331_v16  ;;  %v5477_v14 = vrot.slane %v7476_v40, %v5476_v62 }
0x1ff4   : > { %v5338_v1 = vadd.f32 -0.28449672, %v5336_v33  ;;  %v5335_v31 = vadd.f32 1.4214138, %v5333_v24  ;;  %v5968_v33 = vld [vmem:[%s6912_s2 + $0x8] ss:$0 sm:$0xff] }
0x1ff6   : > { %v5340_v21 = vmul.f32 %v6727_v30, %v5338_v1  ;;  %v5337_v58 = vmul.f32 %v6729_v6, %v5335_v31 }
0x1ff8   : > { %v5342_v34 = vadd.f32 0.2548296, %v5340_v21  ;;  %v5339_v35 = vadd.f32 -0.28449672, %v5337_v58 }
0x1ffa   : > { %v5344_v36 = vmul.f32 %v6727_v30, %v5342_v34  ;;  %v5341_v59 = vmul.f32 %v6729_v6, %v5339_v35 }
0x1ffc   : > { %v5354_v38 = vmul.f32 %v6731_v37, %v5344_v36  ;;  %v5343_v39 = vadd.f32 0.2548296, %v5341_v59 }
0x1ffe   : > { %v5356_v41 = vsub.f32 1.0, %v5354_v38  ;;  %v5345_v42 = vmul.f32 %v6729_v6, %v5343_v39 }
0x2000   : > { %v5358_v45 = vmul.f32 %v5356_v41, %v5318_v13  ;;  %v5355_v46 = vmul.f32 %v6733_v43, %v5345_v42 }
0x2002   : > { %v5357_v47 = vsub.f32 1.0, %v5355_v46  ;;  %v5360_v49 = vadd.f32 1.0, %v5358_v45 }
0x2004   : > { %v5359_v50 = vmul.f32 %v5357_v47, %v5319_v48  ;;  %v5362_v56 = vmul.f32 %v5360_v49, %v5312_v51 }
0x2006   : > { %v5361_v55 = vadd.f32 1.0, %v5359_v50 }
0x2008   : > { %v5363_v57 = vmul.f32 %v5361_v55, %v5313_v53 }
0x200a   : > { %v5364_v61 = vpack.c.bf16 %v5363_v57, %v5362_v56 }
0x200c   : > { %6559 = vmatmul.mubr.msk.bf16.vlgmr.msra.gmra.mxu1 %vm5401_vm8, %v5364_v61 }
0x20cc   : > { %v5439_v2 = vpop.f32.mrf.mxu1 }
0x20cd   : > { %v5440_v5 = vadd.f32 %v5439_v2, %v5376_v0 }
0x20ce   : > { %v6560_v8 = vpop.f32.mrf.mxu1 }
0x20cf   : > { %v5446_v9 = vadd.f32 %v5440_v5, %v7481_v52 }
0x20d0   : > { %v5442_v10 = vpop.f32.mrf.mxu1 }
0x20d1   : > { %v5443_v15 = vadd.f32 %v5442_v10, %v5376_v0  ;;  %v5448_v4 = vsel %vm592_vm3, %v5446_v9, 0.0 }
0x20d2   : > { %5449 = vadd.xlane.f32.xlu0 %v5448_v4  ;;  %v6561_v12 = vpop.f32.mrf.mxu1 }
0x20d3   : > { %v5447_v60 = vadd.f32 %v5443_v15, %v7483_v54 }
0x20d5   : > { %v5451_v18 = vsel %vm592_vm3, %v5447_v60, 0.0 }
0x20d6   : > { %5452 = vadd.xlane.f32.xlu1 %v5451_v18 }
0x215b   : > { %v5450_v22 = vpop.xlane.xlu0 %5449 }
0x215c   : > { %v5454_v23 = vmul.f32 0.03125, %v5450_v22 }
0x215e   : > { %v5456_v7 = vsub.f32 %v5446_v9, %v5454_v23 }
0x215f   : > { %v5453_v25 = vpop.xlane.xlu1 %5452 }
0x2160   : > { %v5455_v26 = vmul.f32 0.03125, %v5453_v25  ;;  %v5458_v28 = vmul.f32 %v5456_v7, %v5456_v7 }
0x2162   : > { %v5457_v29 = vsub.f32 %v5447_v60, %v5455_v26  ;;  %v5460_v52 = vsel %vm592_vm3, %v5458_v28, 0.0 }
0x2163   : > { %5461 = vadd.xlane.f32.xlu0 %v5460_v52 }
0x2164   : > { %v5459_v30 = vmul.f32 %v5457_v29, %v5457_v29 }
0x2166   : > { %v5463_v3 = vsel %vm592_vm3, %v5459_v30, 0.0 }
0x2167   : > { %5464 = vadd.xlane.f32.xlu1 %v5463_v3 }
0x21ec   : > { %v5462_v17 = vpop.xlane.xlu0 %5461 }
0x21ed   : > { %v5466_v54 = vmul.f32 0.03125, %v5462_v17 }
0x21ef   : > { %v5468_v20 = vadd.f32 1e-12, %v5466_v54 }
0x21f0   : > { %v5465_v32 = vpop.xlane.xlu1 %5464 }
0x21f1   : > { %6734 = vrsqrt.f32 %v5468_v20  ;;  %v5467_v6 = vmul.f32 0.03125, %v5465_v32 }
0x21f3   : > { %v5469_v19 = vadd.f32 1e-12, %v5467_v6 }
0x21f5   : > { %6736 = vrsqrt.f32 %v5469_v19 }
0x21fe   : > { %v6735_v27 = vpop.eup %6734 }
0x21ff   : > { %v5472_v16 = vmul.f32 %v6735_v27, %v5456_v7 }
0x2201   : > { %v5478_v24 = vmul.f32 %v5477_v14, %v5472_v16 }
0x2202   : > { %v6737_v1 = vpop.eup %6736 }
0x2203   : > { %v5484_v31 = vadd.f32 %v5968_v33, %v5478_v24  ;;  %v5473_v21 = vmul.f32 %v6737_v1, %v5457_v29 }
0x2205   : > { %5486 = vst.msk [vmem:[#allocation2] sm:$0xff] %vm592_vm3, %v5484_v31  ;;  %v5479_v58 = vmul.f32 %v5477_v14, %v5473_v21  ;;  %5491 = sbr.rel (%p5969_p6) target bundleno = 8715 (0x220b), region = 68 }
0x2207   : > { %v5485_v34 = vadd.f32 %v5968_v33, %v5479_v58 }
0x2209   : > { %5487 = vst.msk [vmem:[#allocation2 + $0x8] sm:$0xff] %vm592_vm3, %v5485_v34 }
0x220a   : > { %5492 = vst.msk [vmem:[#allocation4] sm:$0xff] %vm592_vm3, %v5484_v31  ;;  %5493 = vst.msk [vmem:[#allocation4 + $0x8] sm:$0xff] %vm592_vm3, %v5485_v34 }
0x220b PF: > { %s7562_s2 = sadd.s32 4294967295, %s6791_s15   ;;  %s6796_s26 = smov [#allocation4]  }
0x220c   : > { %p7518_p7 = scmp.eq.s32.totalorder %s7562_s2, 1  ;;  %s5503_s11 = sshll.u32 %s6796_s26, 4  ;;  %s5504_s11 = int_to_ptr.vmem [resolvable:$true] %s5503_s11 }
0x220d   : > { %s6741_s22 = scalar_lea.vmem %s5504_s11, 256  ;;  %p6748_p11 = scmp.lt.s32.totalorder %s5504_s11, %s5504_s11 }
0x220e   : > { %p6742_p8 = scmp.ne.s32.totalorder %s5504_s11, %s6741_s22  ;;  %p6749_p12 = scmp.lt.s32.totalorder %s6741_s22, %s6741_s22 }
0x2210   : > { %p6743_p9 = pnand %p6742_p8, %p7518_p7  ;;  %p6750_p13 = por %p6749_p12, %p6748_p11 }
0x2212   : > { %p6744_p10 = pneg %p6743_p9 }
0x2214   : > { %p6751_p0 = pnand %p6750_p13, %p6744_p10 }
0x2216   : > { %6754 = shalt.err (!%p6751_p0)
}
0x2217   : > { %s6797_s13 = smov 128   ;;  %s6798_s24 = smov 8  }
0x2218   : > { %6564 = dma.vmem_to_hbm [thread:$0]  (%p7518_p7), %s5504_s11, 256, %s7552_s10, [#allocation5], %s6797_s13, %s6797_s13, %s6798_s24  }
0x2219   : > { %6778 = dma.done.wait (%p7518_p7), [#allocation5], 256  }
0x221a   : > { %6780 = vsyncadd (%p7518_p7), [#allocation5], 4294967040 }
0x221b PF: > { %s21_s15 = sadd.s32 1, %s6791_s15   ;;  %s7564_s13 = sld [smem:[#allocation7_spill]] }
0x221c   : > { %p18_p1 = scmp.ge.s32.totalorder %s21_s15, 4   ;;  %s7565_s14 = sld [smem:[#allocation8_spill]] }
0x221e   :  { %20 = sbr.rel (!%p18_p1) target bundleno = 6 (0x6), region = 175 }
0x2223   :  { %5519 = vsyncpa [#allocation5], 1 }
0x2224   :  { %5521 = vsyncpa [#allocation5 + $0x1], 1 }

</bundles_post_ra>
